<compile_context>
chip_gen: v6e
topology: v6e:2x2x1
jax: 0.10.0
libtpu: 0.0.40
codegen_flags: <defaults>
</compile_context>

<pallas_src>
import math

import jax
import jax.numpy as jnp
from jax.experimental import pallas as pl
from jax.experimental.pallas import tpu as pltpu


# ------------------------- tiling helper -------------------------

def _plan_tiles(n, target=4096):
    """Return (tile, padded_n).  tile obeys the (...,8/128) Pallas block rule and
    padded_n is a multiple of tile (pad-and-slice instead of one giant tile)."""
    if n <= target:
        return n, n
    if n % 128 == 0:
        t = (target // 128) * 128
        while t >= 128 and n % t:
            t -= 128
        if t >= 128:
            return t, n
    t = max(128, (target // 128) * 128)
    return t, ((n + t - 1) // t) * t


def _full_spec(a):
    nd = a.ndim
    return pl.BlockSpec(a.shape, lambda b, i, _nd=nd: (0,) * _nd)


# ------------------------- kernel 1: position encoder -------------------------

def _posenc_kernel(pts_ref, sel_ref, phase_ref, out_ref):
    # pts: (1, T, 3) f32; sel: (3, 6E) f32 (selector * freq); phase: (1, 6E) f32
    # out: (1, T, 6E) bf16
    ang = jnp.dot(pts_ref[0], sel_ref[...],
                  preferred_element_type=jnp.float32) + phase_ref[...]     # (T, 6E)
    # single EUP transcendental per element: cos(x) == sin(x + pi/2)
    out_ref[0] = jnp.sin(ang).astype(jnp.bfloat16)


def position_encode(sample_points, freq_bands, *, tile):
    """sample_points (B, Np, 3) f32 -> (B, Np, 6E) bf16 encodings in torch's
    per-point [sin(x f), cos(x f), sin(y f), cos(y f), sin(z f), cos(z f)] order."""
    B, Np, _ = sample_points.shape
    E = freq_bands.shape[0]
    C = 6 * E
    T = tile

    jj = jnp.arange(C)
    sel = (jj[None, :] // (2 * E) == jnp.arange(3)[:, None]).astype(jnp.float32)   # (3, 6E)
    sel_f = sel * freq_bands[jj % E][None, :]                                       # freq folded in
    is_sin = ((jj // E) % 2) == 0
    phase = jnp.where(is_sin, 0.0, math.pi / 2).astype(jnp.float32)[None, :]        # (1, 6E)

    return pl.pallas_call(
        _posenc_kernel,
        out_shape=jax.ShapeDtypeStruct((B, Np, C), jnp.bfloat16),
        grid=(B, Np // T),
        in_specs=[
            pl.BlockSpec((1, T, 3), lambda b, i: (b, i, 0)),
            pl.BlockSpec((3, C), lambda b, i: (0, 0)),
            pl.BlockSpec((1, C), lambda b, i: (0, 0)),
        ],
        out_specs=pl.BlockSpec((1, T, C), lambda b, i: (b, i, 0)),
        compiler_params=pltpu.CompilerParams(
            dimension_semantics=("parallel", "parallel")),
    )(sample_points, sel_f, phase)


# ---------------- kernel 2: fused pointwise head + color MLP (channel-major) ----------------

def _pointwise_kernel(scr_ref, pts_ref, w1_ref,
                      w2_ref, b2_ref, w3_ref, b3_ref, w4_ref, b4_ref,
                      w5_ref, b5_ref, out_ref, x_scr):
    f32, bf16 = jnp.float32, jnp.bfloat16
    ce = scr_ref.shape[1]          # 6E scrambled-encoding rows
    cp = pts_ref.shape[1]          # 4 rows: x, y, z, 1

    # Assemble the (ce+cp, T) first-layer activation in VMEM: big encoding slab
    # plus the 4 small point/ones rows.  This removes the separate K=3 matmul
    # and the per-batch embedding broadcast-add (they ride in w1's last columns).
    x_scr[0:ce, :] = scr_ref[0]
    x_scr[ce:ce + cp, :] = pts_ref[0]

    h = jnp.maximum(jnp.dot(w1_ref[0], x_scr[...],
                            preferred_element_type=f32), 0.0)                       # (64, T)
    h = jnp.maximum(jnp.dot(w2_ref[...], h.astype(bf16),
                            preferred_element_type=f32) + b2_ref[...], 0.0)         # (128, T)
    h = jnp.maximum(jnp.dot(w3_ref[...], h.astype(bf16),
                            preferred_element_type=f32) + b3_ref[...], 0.0)         # (256, T)
    h = jnp.maximum(jnp.dot(w4_ref[...], h.astype(bf16),
                            preferred_element_type=f32) + b4_ref[...], 0.0)         # (64, T)
    # Final layer transposed on the MXU: (64, T)^T @ (64, 3) -> (T, 3), written
    # straight into the (B, N, 3) output (no glue transpose / extra HBM pass).
    out = jax.lax.dot_general(h.astype(bf16), w5_ref[...],
                              (((0,), (0,)), ((), ())),
                              preferred_element_type=f32) + b5_ref[...]             # (T, 3)
    # trailing ReLU followed by torch.clamp(0, 1) == clip to [0, 1]
    out_ref[0] = jnp.clip(out, 0.0, 1.0)


def pointwise_net(enc_view, pts_aug, weights, *, tile):
    """enc_view (B, 6E, Np) bf16 (torch .view(B,-1,N) layout), pts_aug (B, 4, Np)
    bf16 ([x, y, z, 1] channel-major) -> colors (B, Np, 3) f32."""
    B, C, Np = enc_view.shape
    CP = pts_aug.shape[1]
    T = tile
    w1_full = weights[0]

    return pl.pallas_call(
        _pointwise_kernel,
        out_shape=jax.ShapeDtypeStruct((B, Np, 3), jnp.float32),
        grid=(B, Np // T),
        in_specs=[
            pl.BlockSpec((1, C, T), lambda b, i: (b, 0, i)),
            pl.BlockSpec((1, CP, T), lambda b, i: (b, 0, i)),
            pl.BlockSpec((1,) + w1_full.shape[1:], lambda b, i: (b, 0, 0)),
        ] + [_full_spec(a) for a in weights[1:]],
        out_specs=pl.BlockSpec((1, T, 3), lambda b, i: (b, i, 0)),
        scratch_shapes=[pltpu.VMEM((C + CP, T), jnp.bfloat16)],
        compiler_params=pltpu.CompilerParams(
            dimension_semantics=("parallel", "parallel"),
            vmem_limit_bytes=48 * 1024 * 1024),
    )(enc_view, pts_aug, *weights)


# ------------------------- parameter setup -------------------------

def init_params(key, color_dim, shape_dim, pos_dim):
    E = pos_dim
    cfeat = color_dim + shape_dim + 6 * E
    ks = jax.random.split(key, 8)

    def w(k, shape):
        fan_in = shape[0]
        return jax.random.normal(k, shape, jnp.float32) / jnp.sqrt(jnp.float32(fan_in))

    freq_bands = jnp.array(
        [1.0 / 10000.0 ** (2 * (i // 2) / E) for i in range(E)], dtype=jnp.float32)

    return {
        "freq_bands": freq_bands,
        # PointUNet stand-in head: cfeat -> 6
        "wu": w(ks[0], (cfeat, 6)), "bu": jnp.zeros((1, 6), jnp.float32),
        # MLP: 9 -> 64 -> 128 -> 256 -> 64 -> 3 (first layer split into 6 + 3 rows)
        "w1a": w(ks[1], (6, 64)), "w1b": w(ks[2], (3, 64)),
        "b1": jnp.zeros((1, 64), jnp.float32),
        "w2": w(ks[3], (64, 128)), "b2": jnp.zeros((1, 128), jnp.float32),
        "w3": w(ks[4], (128, 256)), "b3": jnp.zeros((1, 256), jnp.float32),
        "w4": w(ks[5], (256, 64)), "b4": jnp.zeros((1, 64), jnp.float32),
        "w5": w(ks[6], (64, 3)), "b5": jnp.zeros((1, 3), jnp.float32),
    }


# ------------------------- CPTNet forward (glue) -------------------------

def cptnet_forward(params, color_embeddings, shape_conditions, sample_points,
                   pos_emb_dim, *, tile_target=4096):
    B, N, _ = sample_points.shape
    E = pos_emb_dim
    C = 6 * E
    CS = color_embeddings.shape[1] + shape_conditions.shape[1]
    f32, bf16 = jnp.float32, jnp.bfloat16
    pts = sample_points.astype(f32)

    # --- PositionEncoder (Pallas), pad-and-slice if N does not tile cleanly ---
    T, Np = _plan_tiles(N, tile_target)
    pts_in = pts if Np == N else jnp.pad(pts, ((0, 0), (0, Np - N), (0, 0)))
    enc = position_encode(pts_in, params["freq_bands"], tile=T)           # (B, Np, 6E) bf16
    if Np != N:
        enc = enc[:, :N]
    # torch: encodings.view(B, -1, N) -- pure row-major reinterpretation (reshape only).
    # TODO(synk): this point/channel scramble (faithful to the torch code) is what
    # blocks fusing the encoder into the MLP kernel / a lane-dense encoder store.
    enc_view = enc.reshape(B, C, N)                                       # (B, 6E, N)

    # --- fold PointUNet head (cfeat->6) into the first MLP layer (->64), and the
    #     per-batch embedding + all first-layer biases into its last column ---
    Wf = params["wu"] @ params["w1a"]                                     # (cfeat, 64)
    bias1 = params["bu"] @ params["w1a"] + params["b1"]                   # (1, 64)
    emb = jnp.concatenate([color_embeddings, shape_conditions], axis=1).astype(f32)
    eb = emb @ Wf[:CS] + bias1                                            # (B, 64)
    w1_full = jnp.concatenate([
        jnp.broadcast_to(Wf[CS:].T[None], (B, 64, C)),                    # encoding cols
        jnp.broadcast_to(params["w1b"].T[None], (B, 64, 3)),              # raw point cols
        eb[:, :, None],                                                   # ones-row column
    ], axis=2).astype(bf16)                                               # (B, 64, 6E+4)

    weights = (
        w1_full,
        params["w2"].T.astype(bf16), params["b2"].T.astype(f32),          # (128,64),(128,1)
        params["w3"].T.astype(bf16), params["b3"].T.astype(f32),          # (256,128),(256,1)
        params["w4"].T.astype(bf16), params["b4"].T.astype(f32),          # (64,256),(64,1)
        params["w5"].astype(bf16),   params["b5"].astype(f32),            # (64,3),(1,3)
    )

    # raw points channel-major with a trailing ones row (carries the emb+bias column)
    pts_aug = jnp.concatenate(
        [jnp.transpose(pts, (0, 2, 1)), jnp.ones((B, 1, N), f32)], axis=1).astype(bf16)
    if Np != N:
        enc_view = jnp.pad(enc_view, ((0, 0), (0, 0), (0, Np - N)))
        pts_aug = jnp.pad(pts_aug, ((0, 0), (0, 0), (0, Np - N)))

    pred_colors = pointwise_net(enc_view, pts_aug, weights, tile=T)       # (B, Np, 3) f32
    if Np != N:
        pred_colors = pred_colors[:, :N]

    # TODO(synk): PVCNN sa/fp/attention stack, pc_to_uv, pred_imgs and
    # loss1/loss2/loss3 are not defined in the provided source.
    return pred_colors


# ------------------------- pure-JAX reference (unfused, f32) -------------------------

def cptnet_reference(params, color_embeddings, shape_conditions, sample_points,
                     pos_emb_dim):
    B, N, _ = sample_points.shape
    E = pos_emb_dim
    pts = sample_points.astype(jnp.float32)
    ang = pts[..., None] * params["freq_bands"][None, None, None, :]     # (B,N,3,E)
    enc = jnp.concatenate([jnp.sin(ang), jnp.cos(ang)], axis=-1)         # (B,N,3,2E)
    pos_view = enc.reshape(B, 6 * E, N)                                  # torch .view(B,-1,N)
    emb = jnp.concatenate([color_embeddings, shape_conditions], axis=1).astype(jnp.float32)
    feat = jnp.broadcast_to(emb[:, :, None], (B, emb.shape[1], N))
    fe = jnp.concatenate([feat, pos_view], axis=1)                       # (B, cfeat, N)
    feat_rows = jnp.transpose(fe, (0, 2, 1)).reshape(B * N, -1)
    pts_rows = pts.reshape(B * N, 3)
    pred = feat_rows @ params["wu"] + params["bu"]
    h = jnp.maximum(pred @ params["w1a"] + pts_rows @ params["w1b"] + params["b1"], 0.0)
    h = jnp.maximum(h @ params["w2"] + params["b2"], 0.0)
    h = jnp.maximum(h @ params["w3"] + params["b3"], 0.0)
    h = jnp.maximum(h @ params["w4"] + params["b4"], 0.0)
    h = h @ params["w5"] + params["b5"]
    return jnp.clip(h, 0.0, 1.0).reshape(B, N, 3)


# ------------------------- demo -------------------------

if __name__ == "__main__":
    B = 2                 # batch_size
    N = 200               # num_out_points; deliberately not a multiple of 128 to
                          # exercise the pad-and-slice tail path at tile_target=128
    COLOR_EMB_DIM = 16
    SHAPE_EMB_DIM = 8
    POS_EMB_DIM = 8       # -> 6*8 = 48 position channels

    key = jax.random.PRNGKey(0)
    k_pts, k_col, k_shp = jax.random.split(key, 3)
    sample_points = jax.random.uniform(k_pts, (B, N, 3), jnp.float32)
    color_embeddings = jax.random.normal(k_col, (B, COLOR_EMB_DIM), jnp.float32)
    shape_conditions = jax.random.normal(k_shp, (B, SHAPE_EMB_DIM), jnp.float32)

    params = init_params(jax.random.PRNGKey(1), COLOR_EMB_DIM, SHAPE_EMB_DIM, POS_EMB_DIM)

    # small tile_target forces a multi-tile grid + padding at this demo size;
    # production sizes use the default tile_target=4096.
    fwd = jax.jit(lambda p, ce, sc, sp: cptnet_forward(
        p, ce, sc, sp, POS_EMB_DIM, tile_target=128))
    pred_colors = fwd(params, color_embeddings, shape_conditions, sample_points)
    pred_colors = jax.block_until_ready(pred_colors)

    assert pred_colors.shape == (B, N, 3)
    assert bool(jnp.all(pred_colors >= 0.0)) and bool(jnp.all(pred_colors <= 1.0))

    ref = cptnet_reference(params, color_embeddings, shape_conditions,
                           sample_points, POS_EMB_DIM)
    max_err = float(jnp.max(jnp.abs(pred_colors - ref)))
    assert max_err < 0.1, f"mismatch vs f32 reference: {max_err}"

    print("KERNEL_OK")
</pallas_src>

<mosaic_0001>
module attributes {stable_mosaic.version = 11 : i64} {
  func.func @_posenc_kernel(%arg0: i32, %arg1: i32, %arg2: memref<1x128x3xf32, #tpu.memory_space<vmem>>, %arg3: memref<3x48xf32, #tpu.memory_space<vmem>>, %arg4: memref<1x48xf32, #tpu.memory_space<vmem>>, %arg5: memref<1x128x48xbf16, #tpu.memory_space<vmem>>) attributes {dimension_semantics = [#tpu.dimension_semantics<parallel>, #tpu.dimension_semantics<parallel>], iteration_bounds = array<i64: 2, 2>, scalar_prefetch = 0 : i64, scratch_operands = 0 : i64, tpu.core_type = #tpu.core_type<tc>, window_params = [{transform_indices = @transform_0, window_bounds = array<i64: 1, 128, 3>}, {pipeline_mode = #tpu.pipeline_mode<synchronous>, transform_indices = @transform_1, window_bounds = array<i64: 3, 48>}, {pipeline_mode = #tpu.pipeline_mode<synchronous>, transform_indices = @transform_2, window_bounds = array<i64: 1, 48>}, {transform_indices = @transform_3, window_bounds = array<i64: 1, 128, 48>}]} {
    %c0 = arith.constant 0 : index
    %c0_0 = arith.constant 0 : index
    %c0_1 = arith.constant 0 : index
    %0 = vector.load %arg2[%c0, %c0_0, %c0_1] : memref<1x128x3xf32, #tpu.memory_space<vmem>>, vector<1x128x3xf32>
    %1 = vector.shape_cast %0 : vector<1x128x3xf32> to vector<128x3xf32>
    %c0_2 = arith.constant 0 : index
    %c0_3 = arith.constant 0 : index
    %2 = vector.load %arg3[%c0_2, %c0_3] : memref<3x48xf32, #tpu.memory_space<vmem>>, vector<3x48xf32>
    %cst = arith.constant dense<0.000000e+00> : vector<128x48xf32>
    %3 = tpu.matmul %1, %2, %cst {dimension_numbers = #tpu.dot_dimension_numbers<[1], [0], [0], [1], [0, 0, 1, 1], [], []>} : vector<128x3xf32>, vector<3x48xf32>, vector<128x48xf32> -> vector<128x48xf32>
    %c0_4 = arith.constant 0 : index
    %c0_5 = arith.constant 0 : index
    %4 = vector.load %arg4[%c0_4, %c0_5] : memref<1x48xf32, #tpu.memory_space<vmem>>, vector<1x48xf32>
    %5 = vector.broadcast %4 : vector<1x48xf32> to vector<128x48xf32>
    %6 = arith.addf %3, %5 : vector<128x48xf32>
    %7 = math.sin %6 : vector<128x48xf32>
    %8 = arith.truncf %7 : vector<128x48xf32> to vector<128x48xbf16>
    %c0_6 = arith.constant 0 : index
    %c0_7 = arith.constant 0 : index
    %c0_8 = arith.constant 0 : index
    %9 = vector.load %arg5[%c0_6, %c0_7, %c0_8] : memref<1x128x48xbf16, #tpu.memory_space<vmem>>, vector<1x128x48xbf16>
    %10 = vector.shape_cast %9 : vector<1x128x48xbf16> to vector<128x48xbf16>
    %11 = vector.shape_cast %8 : vector<128x48xbf16> to vector<1x128x48xbf16>
    tpu.vector_store %arg5[%c0_6, %c0_7, %c0_8], %11 {strides = array<i32>} : memref<1x128x48xbf16, #tpu.memory_space<vmem>>, vector<1x128x48xbf16>,
    return
  }
  func.func @transform_0(%arg0: i32, %arg1: i32) -> (i32, i32, i32) {
    %c0_i32 = arith.constant 0 : i32
    %c0_i32_0 = arith.constant 0 : i32
    return %arg0, %arg1, %c0_i32 : i32, i32, i32
  }
  func.func @transform_1(%arg0: i32, %arg1: i32) -> (i32, i32) {
    %c0_i32 = arith.constant 0 : i32
    %c0_i32_0 = arith.constant 0 : i32
    %c0_i32_1 = arith.constant 0 : i32
    return %c0_i32, %c0_i32_0 : i32, i32
  }
  func.func @transform_2(%arg0: i32, %arg1: i32) -> (i32, i32) {
    %c0_i32 = arith.constant 0 : i32
    %c0_i32_0 = arith.constant 0 : i32
    %c0_i32_1 = arith.constant 0 : i32
    return %c0_i32, %c0_i32_0 : i32, i32
  }
  func.func @transform_3(%arg0: i32, %arg1: i32) -> (i32, i32, i32) {
    %c0_i32 = arith.constant 0 : i32
    %c0_i32_0 = arith.constant 0 : i32
    return %arg0, %arg1, %c0_i32 : i32, i32, i32
  }
}

module attributes {stable_mosaic.version = 11 : i64} {
  func.func @_pointwise_kernel(%arg0: i32, %arg1: i32, %arg2: memref<1x48x128xbf16, #tpu.memory_space<vmem>>, %arg3: memref<1x4x128xbf16, #tpu.memory_space<vmem>>, %arg4: memref<1x64x52xbf16, #tpu.memory_space<vmem>>, %arg5: memref<128x64xbf16, #tpu.memory_space<vmem>>, %arg6: memref<128x1xf32, #tpu.memory_space<vmem>>, %arg7: memref<256x128xbf16, #tpu.memory_space<vmem>>, %arg8: memref<256x1xf32, #tpu.memory_space<vmem>>, %arg9: memref<64x256xbf16, #tpu.memory_space<vmem>>, %arg10: memref<64x1xf32, #tpu.memory_space<vmem>>, %arg11: memref<64x3xbf16, #tpu.memory_space<vmem>>, %arg12: memref<1x3xf32, #tpu.memory_space<vmem>>, %arg13: memref<1x128x3xf32, #tpu.memory_space<vmem>>, %arg14: memref<52x128xbf16, #tpu.memory_space<vmem>>) attributes {dimension_semantics = [#tpu.dimension_semantics<parallel>, #tpu.dimension_semantics<parallel>], iteration_bounds = array<i64: 2, 2>, scalar_prefetch = 0 : i64, scratch_operands = 1 : i64, tpu.core_type = #tpu.core_type<tc>, window_params = [{transform_indices = @transform_0, window_bounds = array<i64: 1, 48, 128>}, {transform_indices = @transform_1, window_bounds = array<i64: 1, 4, 128>}, {transform_indices = @transform_2, window_bounds = array<i64: 1, 64, 52>}, {pipeline_mode = #tpu.pipeline_mode<synchronous>, transform_indices = @transform_3, window_bounds = array<i64: 128, 64>}, {pipeline_mode = #tpu.pipeline_mode<synchronous>, transform_indices = @transform_4, window_bounds = array<i64: 128, 1>}, {pipeline_mode = #tpu.pipeline_mode<synchronous>, transform_indices = @transform_5, window_bounds = array<i64: 256, 128>}, {pipeline_mode = #tpu.pipeline_mode<synchronous>, transform_indices = @transform_6, window_bounds = array<i64: 256, 1>}, {pipeline_mode = #tpu.pipeline_mode<synchronous>, transform_indices = @transform_7, window_bounds = array<i64: 64, 256>}, {pipeline_mode = #tpu.pipeline_mode<synchronous>, transform_indices = @transform_8, window_bounds = array<i64: 64, 1>}, {pipeline_mode = #tpu.pipeline_mode<synchronous>, transform_indices = @transform_9, window_bounds = array<i64: 64, 3>}, {pipeline_mode = #tpu.pipeline_mode<synchronous>, transform_indices = @transform_10, window_bounds = array<i64: 1, 3>}, {transform_indices = @transform_11, window_bounds = array<i64: 1, 128, 3>}]} {
    %c0 = arith.constant 0 : index
    %c0_0 = arith.constant 0 : index
    %c0_1 = arith.constant 0 : index
    %0 = vector.load %arg2[%c0, %c0_0, %c0_1] : memref<1x48x128xbf16, #tpu.memory_space<vmem>>, vector<1x48x128xbf16>
    %1 = vector.shape_cast %0 : vector<1x48x128xbf16> to vector<48x128xbf16>
    %c0_2 = arith.constant 0 : index
    %c0_3 = arith.constant 0 : index
    %2 = vector.load %arg14[%c0_2, %c0_3] : memref<52x128xbf16, #tpu.memory_space<vmem>>, vector<48x128xbf16>
    tpu.vector_store %arg14[%c0_2, %c0_3], %1 {strides = array<i32>} : memref<52x128xbf16, #tpu.memory_space<vmem>>, vector<48x128xbf16>,
    %c0_4 = arith.constant 0 : index
    %c0_5 = arith.constant 0 : index
    %c0_6 = arith.constant 0 : index
    %3 = vector.load %arg3[%c0_4, %c0_5, %c0_6] : memref<1x4x128xbf16, #tpu.memory_space<vmem>>, vector<1x4x128xbf16>
    %4 = vector.shape_cast %3 : vector<1x4x128xbf16> to vector<4x128xbf16>
    %c48 = arith.constant 48 : index
    %c0_7 = arith.constant 0 : index
    %5 = vector.load %arg14[%c48, %c0_7] : memref<52x128xbf16, #tpu.memory_space<vmem>>, vector<4x128xbf16>
    tpu.vector_store %arg14[%c48, %c0_7], %4 {strides = array<i32>} : memref<52x128xbf16, #tpu.memory_space<vmem>>, vector<4x128xbf16>,
    %c0_8 = arith.constant 0 : index
    %c0_9 = arith.constant 0 : index
    %c0_10 = arith.constant 0 : index
    %6 = vector.load %arg4[%c0_8, %c0_9, %c0_10] : memref<1x64x52xbf16, #tpu.memory_space<vmem>>, vector<1x64x52xbf16>
    %7 = vector.shape_cast %6 : vector<1x64x52xbf16> to vector<64x52xbf16>
    %c0_11 = arith.constant 0 : index
    %c0_12 = arith.constant 0 : index
    %8 = vector.load %arg14[%c0_11, %c0_12] : memref<52x128xbf16, #tpu.memory_space<vmem>>, vector<52x128xbf16>
    %cst = arith.constant dense<0.000000e+00> : vector<64x128xf32>
    %9 = tpu.matmul %7, %8, %cst {dimension_numbers = #tpu.dot_dimension_numbers<[1], [0], [0], [1], [0, 0, 1, 1], [], []>} : vector<64x52xbf16>, vector<52x128xbf16>, vector<64x128xf32> -> vector<64x128xf32>
    %cst_13 = arith.constant 0.000000e+00 : f32
    %10 = vector.broadcast %cst_13 : f32 to vector<64x128xf32>
    %11 = arith.maximumf %9, %10 : vector<64x128xf32>
    %c0_14 = arith.constant 0 : index
    %c0_15 = arith.constant 0 : index
    %12 = vector.load %arg5[%c0_14, %c0_15] : memref<128x64xbf16, #tpu.memory_space<vmem>>, vector<128x64xbf16>
    %13 = arith.truncf %11 : vector<64x128xf32> to vector<64x128xbf16>
    %cst_16 = arith.constant dense<0.000000e+00> : vector<128x128xf32>
    %14 = tpu.matmul %12, %13, %cst_16 {dimension_numbers = #tpu.dot_dimension_numbers<[1], [0], [0], [1], [0, 0, 1, 1], [], []>} : vector<128x64xbf16>, vector<64x128xbf16>, vector<128x128xf32> -> vector<128x128xf32>
    %c0_17 = arith.constant 0 : index
    %c0_18 = arith.constant 0 : index
    %15 = vector.load %arg6[%c0_17, %c0_18] : memref<128x1xf32, #tpu.memory_space<vmem>>, vector<128x1xf32>
    %16 = vector.broadcast %15 : vector<128x1xf32> to vector<128x128xf32>
    %17 = arith.addf %14, %16 : vector<128x128xf32>
    %cst_19 = arith.constant 0.000000e+00 : f32
    %18 = vector.broadcast %cst_19 : f32 to vector<128x128xf32>
    %19 = arith.maximumf %17, %18 : vector<128x128xf32>
    %c0_20 = arith.constant 0 : index
    %c0_21 = arith.constant 0 : index
    %20 = vector.load %arg7[%c0_20, %c0_21] : memref<256x128xbf16, #tpu.memory_space<vmem>>, vector<256x128xbf16>
    %21 = arith.truncf %19 : vector<128x128xf32> to vector<128x128xbf16>
    %cst_22 = arith.constant dense<0.000000e+00> : vector<256x128xf32>
    %22 = tpu.matmul %20, %21, %cst_22 {dimension_numbers = #tpu.dot_dimension_numbers<[1], [0], [0], [1], [0, 0, 1, 1], [], []>} : vector<256x128xbf16>, vector<128x128xbf16>, vector<256x128xf32> -> vector<256x128xf32>
    %c0_23 = arith.constant 0 : index
    %c0_24 = arith.constant 0 : index
    %23 = vector.load %arg8[%c0_23, %c0_24] : memref<256x1xf32, #tpu.memory_space<vmem>>, vector<256x1xf32>
    %24 = vector.broadcast %23 : vector<256x1xf32> to vector<256x128xf32>
    %25 = arith.addf %22, %24 : vector<256x128xf32>
    %cst_25 = arith.constant 0.000000e+00 : f32
    %26 = vector.broadcast %cst_25 : f32 to vector<256x128xf32>
    %27 = arith.maximumf %25, %26 : vector<256x128xf32>
    %c0_26 = arith.constant 0 : index
    %c0_27 = arith.constant 0 : index
    %28 = vector.load %arg9[%c0_26, %c0_27] : memref<64x256xbf16, #tpu.memory_space<vmem>>, vector<64x256xbf16>
    %29 = arith.truncf %27 : vector<256x128xf32> to vector<256x128xbf16>
    %cst_28 = arith.constant dense<0.000000e+00> : vector<64x128xf32>
    %30 = tpu.matmul %28, %29, %cst_28 {dimension_numbers = #tpu.dot_dimension_numbers<[1], [0], [0], [1], [0, 0, 1, 1], [], []>} : vector<64x256xbf16>, vector<256x128xbf16>, vector<64x128xf32> -> vector<64x128xf32>
    %c0_29 = arith.constant 0 : index
    %c0_30 = arith.constant 0 : index
    %31 = vector.load %arg10[%c0_29, %c0_30] : memref<64x1xf32, #tpu.memory_space<vmem>>, vector<64x1xf32>
    %32 = vector.broadcast %31 : vector<64x1xf32> to vector<64x128xf32>
    %33 = arith.addf %30, %32 : vector<64x128xf32>
    %cst_31 = arith.constant 0.000000e+00 : f32
    %34 = vector.broadcast %cst_31 : f32 to vector<64x128xf32>
    %35 = arith.maximumf %33, %34 : vector<64x128xf32>
    %36 = arith.truncf %35 : vector<64x128xf32> to vector<64x128xbf16>
    %c0_32 = arith.constant 0 : index
    %c0_33 = arith.constant 0 : index
    %37 = vector.load %arg11[%c0_32, %c0_33] : memref<64x3xbf16, #tpu.memory_space<vmem>>, vector<64x3xbf16>
    %cst_34 = arith.constant dense<0.000000e+00> : vector<128x3xf32>
    %38 = tpu.matmul %36, %37, %cst_34 {dimension_numbers = #tpu.dot_dimension_numbers<[0], [0], [1], [1], [0, 1, 1, 1], [], []>} : vector<64x128xbf16>, vector<64x3xbf16>, vector<128x3xf32> -> vector<128x3xf32>
    %c0_35 = arith.constant 0 : index
    %c0_36 = arith.constant 0 : index
    %39 = vector.load %arg12[%c0_35, %c0_36] : memref<1x3xf32, #tpu.memory_space<vmem>>, vector<1x3xf32>
    %40 = vector.broadcast %39 : vector<1x3xf32> to vector<128x3xf32>
    %41 = arith.addf %38, %40 : vector<128x3xf32>
    %cst_37 = arith.constant 0.000000e+00 : f32
    %cst_38 = arith.constant 1.000000e+00 : f32
    %42 = vector.broadcast %cst_37 : f32 to vector<128x3xf32>
    %43 = arith.maximumf %42, %41 : vector<128x3xf32>
    %44 = vector.broadcast %cst_38 : f32 to vector<128x3xf32>
    %45 = arith.minimumf %44, %43 : vector<128x3xf32>
    %c0_39 = arith.constant 0 : index
    %c0_40 = arith.constant 0 : index
    %c0_41 = arith.constant 0 : index
    %46 = vector.load %arg13[%c0_39, %c0_40, %c0_41] : memref<1x128x3xf32, #tpu.memory_space<vmem>>, vector<1x128x3xf32>
    %47 = vector.shape_cast %46 : vector<1x128x3xf32> to vector<128x3xf32>
    %48 = vector.shape_cast %45 : vector<128x3xf32> to vector<1x128x3xf32>
    tpu.vector_store %arg13[%c0_39, %c0_40, %c0_41], %48 {strides = array<i32>} : memref<1x128x3xf32, #tpu.memory_space<vmem>>, vector<1x128x3xf32>,
    return
  }
  func.func @transform_0(%arg0: i32, %arg1: i32) -> (i32, i32, i32) {
    %c0_i32 = arith.constant 0 : i32
    %c0_i32_0 = arith.constant 0 : i32
    return %arg0, %c0_i32, %arg1 : i32, i32, i32
  }
  func.func @transform_1(%arg0: i32, %arg1: i32) -> (i32, i32, i32) {
    %c0_i32 = arith.constant 0 : i32
    %c0_i32_0 = arith.constant 0 : i32
    return %arg0, %c0_i32, %arg1 : i32, i32, i32
  }
  func.func @transform_2(%arg0: i32, %arg1: i32) -> (i32, i32, i32) {
    %c0_i32 = arith.constant 0 : i32
    %c0_i32_0 = arith.constant 0 : i32
    %c0_i32_1 = arith.constant 0 : i32
    return %arg0, %c0_i32, %c0_i32_0 : i32, i32, i32
  }
  func.func @transform_3(%arg0: i32, %arg1: i32) -> (i32, i32) {
    %c0_i32 = arith.constant 0 : i32
    %c0_i32_0 = arith.constant 0 : i32
    %c0_i32_1 = arith.constant 0 : i32
    return %c0_i32, %c0_i32_0 : i32, i32
  }
  func.func @transform_4(%arg0: i32, %arg1: i32) -> (i32, i32) {
    %c0_i32 = arith.constant 0 : i32
    %c0_i32_0 = arith.constant 0 : i32
    %c0_i32_1 = arith.constant 0 : i32
    return %c0_i32, %c0_i32_0 : i32, i32
  }
  func.func @transform_5(%arg0: i32, %arg1: i32) -> (i32, i32) {
    %c0_i32 = arith.constant 0 : i32
    %c0_i32_0 = arith.constant 0 : i32
    %c0_i32_1 = arith.constant 0 : i32
    return %c0_i32, %c0_i32_0 : i32, i32
  }
  func.func @transform_6(%arg0: i32, %arg1: i32) -> (i32, i32) {
    %c0_i32 = arith.constant 0 : i32
    %c0_i32_0 = arith.constant 0 : i32
    %c0_i32_1 = arith.constant 0 : i32
    return %c0_i32, %c0_i32_0 : i32, i32
  }
  func.func @transform_7(%arg0: i32, %arg1: i32) -> (i32, i32) {
    %c0_i32 = arith.constant 0 : i32
    %c0_i32_0 = arith.constant 0 : i32
    %c0_i32_1 = arith.constant 0 : i32
    return %c0_i32, %c0_i32_0 : i32, i32
  }
  func.func @transform_8(%arg0: i32, %arg1: i32) -> (i32, i32) {
    %c0_i32 = arith.constant 0 : i32
    %c0_i32_0 = arith.constant 0 : i32
    %c0_i32_1 = arith.constant 0 : i32
    return %c0_i32, %c0_i32_0 : i32, i32
  }
  func.func @transform_9(%arg0: i32, %arg1: i32) -> (i32, i32) {
    %c0_i32 = arith.constant 0 : i32
    %c0_i32_0 = arith.constant 0 : i32
    %c0_i32_1 = arith.constant 0 : i32
    return %c0_i32, %c0_i32_0 : i32, i32
  }
  func.func @transform_10(%arg0: i32, %arg1: i32) -> (i32, i32) {
    %c0_i32 = arith.constant 0 : i32
    %c0_i32_0 = arith.constant 0 : i32
    %c0_i32_1 = arith.constant 0 : i32
    return %c0_i32, %c0_i32_0 : i32, i32
  }
  func.func @transform_11(%arg0: i32, %arg1: i32) -> (i32, i32, i32) {
    %c0_i32 = arith.constant 0 : i32
    %c0_i32_0 = arith.constant 0 : i32
    return %arg0, %arg1, %c0_i32 : i32, i32, i32
  }
}

</mosaic_0001>

<bundles_post_ra>
// kernel: _lambda_.2
= control target key start
LH: loop header
LB: loop body
LE: loop exit
PB: predicated region body
PF: predicated region fallthrough
CT: control target
= control target key end

     0   :  { %s2681_s12 = smov 0   ;;  %s2683_s13 = smov 0   ;;  %s3925_s0 = inlined_call_operand.vmem [shape: f32[2,256,3], index: 0, kind: input, shape index: {}]   ;;  %s3926_s1 = inlined_call_operand.vmem [shape: f32[3,48], index: 1, kind: input, shape index: {}]   ;;  %s3927_s2 = inlined_call_operand.vmem [shape: f32[1,48], index: 2, kind: input, shape index: {}]   ;;  %s3928_s3 = inlined_call_operand.vmem [shape: bf16[2,256,48], index: 3, kind: output, shape index: {}]  }
   0x1   :  { %s2685_s14 = smov 0   ;;  %s2687_s15 = smov 0  }
   0x2   :  { %s2689_s16 = smov 0  }
   0x3 LB: > { %s22_s17 = sadd.s32 1, %s2645_s14  ;;  %s25_s18 = sadd.s32 1, %s2649_s15  ;;  %s2653_s16 = sphi %s2689_s16, %s13_s16   ;;  %s2649_s15 = sphi %s2687_s15, %s3960_s15   ;;  %s2645_s14 = sphi %s2685_s14, %s3959_s14   ;;  %s2641_s13 = sphi %s2683_s13, %s3958_s13   ;;  %s2637_s12 = sphi %s2681_s12, %s3957_s12  }
   0x4   : > { %p23_p0 = scmp.ge.s32.totalorder %s22_s17, 2  ;;  %p2271_p1 = scmp.ge.s32.totalorder %s2653_s16, 1 }
   0x5   : > { %p158_p2 = scmp.lt.s32.totalorder %s2653_s16, 5 }
   0x6   : > { %s3962_s17 = smov (%p23_p0, %s22_s17), 0  ;;  %s3964_s18 = smov (!%p23_p0, %s25_s18), %s2649_s15 }
   0x7   : > { %p159_p3 = pnand %p2271_p1, %p158_p2  ;;  %p27_p4 = scmp.ge.s32.totalorder %s3964_s18, 2 }
   0x8   : > { %s2272_s21 = sshll.u32 (!%p159_p3), %s2637_s12, 4  ;;  %p191_p5 = scmp.lt.s32.totalorder (!%p159_p3), %s2641_s13, 1 }
   0x9   : > { %s3966_s18 = smov (%p27_p4, %s3964_s18), 0  ;;  %162 = sbr.rel (%p159_p3) target bundleno = 656 (0x290), region = 32 }
   0xa   : > { %p193_p6 = scmp.lt.s32.totalorder (!%p159_p3), %s2272_s21, 31 }
   0xe   : > { %v226_v0 = vld [vmem:[%s3926_s1] sm:$0x7]  ;;  %vm283_vm0 = vcmask 1042432   ;;  %s3968_s13 = smov (!%p191_p5, %s2641_s13), 1  ;;  %s3970_s21 = smov (!%p193_p6, %s2272_s21), 31  ;;  %vm234_vm1 = vcmask 23552  }
   0xf   : > { %2411 = vmatprep.subr.msk.mxu0 %vm283_vm0, %v226_v0  ;;  %2437 = vmatprep.subr.msk.mxu1 %vm283_vm0, %v226_v0  ;;  %s2273_s22 = sshll.u32 %s3968_s13, 5  ;;  %v2739_v17 = vld [vmem:[%s3927_s2] ss:$0 sm:$0xff]  ;;  %v2655_v53 = vmov 683565275  }
  0x10   : > { %2412 = vmatpush3.msk.msra.mxu0 %vm283_vm0, %v226_v0  ;;  %2438 = vmatpush3.msk.msra.mxu1 %vm283_vm0, %v226_v0  ;;  %s2714_s23 = sadd.s32 %s2273_s22, %s3970_s21  ;;  %v2656_v57 = vmov 2475754826   ;;  %v2657_v59 = vmov 2131351028   ;;  %v2658_v61 = vmov 2102212464  }
  0x11   : > { %s2274_s24 = sshll.u32 %s2714_s23, 3  ;;  %v2659_v63 = vmov 920167782   ;;  %s2277_s30 = sshll.u32 %s2714_s23, 2 }
  0x12   : > { %s198_s27 = scalar_lea.vmem %s3925_s0, %s2274_s24  ;;  %s3016_s6 = scalar_lea.vmem %s3928_s3, %s2277_s30 }
  0x13   : > { %v210_v1 = vld [vmem:[%s198_s27] sm:$0xff]  ;;  %v211_v3 = vld [vmem:[%s198_s27 + $0x8] sm:$0xff]  ;;  %v212_v5 = vld [vmem:[%s198_s27 + $0x10] sm:$0xff] }
  0x14   : > { %v218_v2 = vld [vmem:[%s198_s27 + $0x40] sm:$0xff]  ;;  %2413 = vmatprep.mubr.msk.f32.mxu0 %vm234_vm1, %v210_v1  ;;  %v219_v4 = vld [vmem:[%s198_s27 + $0x48] sm:$0xff]  ;;  %v220_v6 = vld [vmem:[%s198_s27 + $0x50] sm:$0xff] }
  0x15   : > { %2425 = vmatprep.mubr.msk.f32.mxu1 %vm234_vm1, %v218_v2  ;;  %2414 = vmatmul.mubr.msk.f32.vlgmr.msra.gmra.mxu0 %vm234_vm1, %v211_v3  ;;  %v213_v7 = vld [vmem:[%s198_s27 + $0x18] sm:$0xff]  ;;  %v214_v9 = vld [vmem:[%s198_s27 + $0x20] sm:$0xff]  ;;  %v215_v11 = vld [vmem:[%s198_s27 + $0x28] sm:$0xff] }
  0x16   : > { %2426 = vmatmul.mubr.msk.f32.vlgmr.msra.gmra.mxu1 %vm234_vm1, %v219_v4  ;;  %2416 = vmatprep.mubr.msk.f32.mxu0 %vm234_vm1, %v212_v5  ;;  %v221_v8 = vld [vmem:[%s198_s27 + $0x58] sm:$0xff]  ;;  %v222_v10 = vld [vmem:[%s198_s27 + $0x60] sm:$0xff]  ;;  %v223_v12 = vld [vmem:[%s198_s27 + $0x68] sm:$0xff] }
  0x17   : > { %2428 = vmatprep.mubr.msk.f32.mxu1 %vm234_vm1, %v220_v6  ;;  %v216_v13 = vld [vmem:[%s198_s27 + $0x30] sm:$0xff]  ;;  %v217_v15 = vld [vmem:[%s198_s27 + $0x38] sm:$0xff]  ;;  %v2660_v6 = vmov 1326507024  }
  0x18   : > { %v224_v14 = vld [vmem:[%s198_s27 + $0x70] sm:$0xff]  ;;  %v225_v16 = vld [vmem:[%s198_s27 + $0x78] sm:$0xff] }
  0x19   : > { %2417 = vmatmul.mubr.msk.f32.gmra.mxu0 %vm234_vm1, %v213_v7 }
  0x1a   : > { %2429 = vmatmul.mubr.msk.f32.gmra.mxu1 %vm234_vm1, %v221_v8  ;;  %2419 = vmatprep.mubr.msk.f32.mxu0 %vm234_vm1, %v214_v9 }
  0x1b   : > { %2431 = vmatprep.mubr.msk.f32.mxu1 %vm234_vm1, %v222_v10 }
  0x1d   : > { %2420 = vmatmul.mubr.msk.f32.gmra.mxu0 %vm234_vm1, %v215_v11 }
  0x1e   : > { %2432 = vmatmul.mubr.msk.f32.gmra.mxu1 %vm234_vm1, %v223_v12  ;;  %2422 = vmatprep.mubr.msk.f32.mxu0 %vm234_vm1, %v216_v13 }
  0x1f   : > { %2434 = vmatprep.mubr.msk.f32.mxu1 %vm234_vm1, %v224_v14 }
  0x21   : > { %2423 = vmatmul.mubr.msk.f32.gmra.mxu0 %vm234_vm1, %v217_v15 }
  0x22   : > { %2435 = vmatmul.mubr.msk.f32.gmra.mxu1 %vm234_vm1, %v225_v16 }
  0xd5   : > { %v2415_v18 = vpop.f32.mrf.mxu0 }
  0xd6   : > { %v2427_v19 = vpop.f32.mrf.mxu1  ;;  %v2742_v20 = vadd.f32 %v2415_v18, %v2739_v17 }
  0xd7   : > { %v2745_v21 = vadd.f32 %v2427_v19, %v2739_v17  ;;  %v353_v22 = vpop.f32.mrf.mxu0 }
  0xd8   : > { %v536_v23 = vand.u32 2147483647, %v2742_v20  ;;  %v539_v24 = vand.u32 2139095040, %v2742_v20  ;;  %v2754_v29 = vadd.f32 %v2739_v17, %v353_v22  ;;  %v393_v41 = vpop.f32.mrf.mxu1  ;;  %vm538_vm15 = vcmp.lt.s32.totalorder %v2742_v20, 0 }
  0xd9   : > { %v1368_v25 = vand.u32 2147483647, %v2745_v21  ;;  %v1371_v26 = vand.u32 2139095040, %v2745_v21  ;;  %v2761_v47 = vadd.f32 %v2739_v17, %v393_v41  ;;  %vm1370_vm0 = vcmp.lt.s32.totalorder %v2745_v21, 0 }
  0xda   : > { %v540_v27 = vshrl.u32 %v539_v24, 23  ;;  %v543_v28 = vand.u32 8388607, %v536_v23  ;;  %v435_v34 = vand.u32 2139095040, %v2754_v29  ;;  %v432_v39 = vand.u32 2147483647, %v2754_v29 }
  0xdb   : > { %v1372_v30 = vshrl.u32 %v1371_v26, 23  ;;  %v1375_v31 = vand.u32 8388607, %v1368_v25  ;;  %vm2862_vm1 = vcmp.le.f32.partialorder %v536_v23, 0.7853982 }
  0xdc   : > { %v2300_v32 = vadd.s32 4294967169, %v540_v27  ;;  %v544_v35 = vor.u32 8388608, %v543_v28  ;;  %v436_v40 = vshrl.u32 %v435_v34, 23  ;;  %v2771_v51 = vand.u32 8388607, %v432_v39 }
  0xdd   : > { %v2332_v33 = vadd.s32 4294967169, %v1372_v30  ;;  %v1376_v37 = vor.u32 8388608, %v1375_v31 }
  0xde   : > { %v546_v36 = vadd.s32 1, %v2300_v32  ;;  %v2296_v43 = vadd.s32 4294967169, %v436_v40  ;;  %v2763_v48 = vshll.u32 %v544_v35, 8 }
  0xdf   : > { %v1378_v38 = vadd.s32 1, %v2332_v33  ;;  %v2767_v50 = vshll.u32 %v1376_v37, 8 }
  0xe0   : > { %vm547_vm2 = vcmp.gt.s32.totalorder %v546_v36, 0  ;;  %v2774_v56 = vadd.s32 1, %v2296_v43 }
  0xe1   : > { %v548_v42 = vsel %vm547_vm2, %v546_v36, 0  ;;  %vm1379_vm3 = vcmp.gt.s32.totalorder %v1378_v38, 0  ;;  %vm2870_vm2 = vcmp.le.f32.partialorder %v1368_v25, 0.7853982 }
  0xe2   : > { %v549_v44 = vshrl.u32 %v548_v42, 5  ;;  %v550_v45 = vand.u32 31, %v548_v42  ;;  %v1380_v46 = vsel %vm1379_vm3, %v1378_v38, 0  ;;  %vm443_vm13 = vcmp.gt.s32.totalorder %v2774_v56, 0 }
  0xe3   : > { %v2765_v49 = vshrl.u32 %v1380_v46, 5  ;;  %v1382_v55 = vand.u32 31, %v1380_v46 }
  0xe4   : > { %v551_v52 = vsub.s32 32, %v550_v45  ;;  %v553_v54 = vshll.u32 %v2655_v53, %v550_v45  ;;  %v556_v58 = vshll.u32 %v2656_v57, %v550_v45  ;;  %v559_v60 = vshll.u32 %v2657_v59, %v550_v45 }
  0xe5   : > { %v562_v62 = vshll.u32 %v2658_v61, %v550_v45  ;;  %v565_v0 = vshll.u32 %v2659_v63, %v550_v45  ;;  %vm568_vm4 = vcmp.lt.s32.totalorder %v549_v44, 1  ;;  %vm569_vm5 = vcmp.lt.s32.totalorder %v549_v44, 2 }
  0xe6   : > { %v554_v1 = vshrl.u32 %v2656_v57, %v551_v52  ;;  %v557_v2 = vshrl.u32 %v2657_v59, %v551_v52  ;;  %v560_v3 = vshrl.u32 %v2658_v61, %v551_v52  ;;  %v552_v4 = vshrl.u32 %v2655_v53, %v551_v52 }
  0xe7   : > { %v563_v5 = vshrl.u32 %v2659_v63, %v551_v52  ;;  %v566_v7 = vshrl.u32 %v2660_v6, %v551_v52  ;;  %v1383_v11 = vsub.s32 32, %v1382_v55  ;;  %vm570_vm6 = vcmp.lt.s32.totalorder %v549_v44, 3 }
  0xe8   : > { %v555_v8 = vor.u32 %v554_v1, %v553_v54  ;;  %v558_v9 = vor.u32 %v557_v2, %v556_v58  ;;  %v561_v10 = vor.u32 %v560_v3, %v559_v60  ;;  %vm571_vm7 = vcmp.lt.s32.totalorder %v549_v44, 4 }
  0xe9   : > { %v564_v12 = vor.u32 %v563_v5, %v562_v62  ;;  %v567_v13 = vor.u32 %v566_v7, %v565_v0  ;;  %v1385_v26 = vshll.u32 %v2655_v53, %v1382_v55  ;;  %v1386_v30 = vshrl.u32 %v2656_v57, %v1383_v11 }
  0xea   : > { %v572_v14 = vsel %vm568_vm4, %v552_v4, %v555_v8  ;;  %v573_v15 = vsel %vm571_vm7, %v561_v10, 2102212464  ;;  %v576_v16 = vsel %vm568_vm4, %v555_v8, %v558_v9  ;;  %v580_v18 = vsel %vm568_vm4, %v558_v9, %v561_v10 }
  0xeb   : > { %v574_v19 = vsel %vm570_vm6, %v558_v9, %v573_v15  ;;  %v577_v22 = vsel %vm571_vm7, %v564_v12, 920167782  ;;  %v581_v24 = vsel %vm571_vm7, %v567_v13, 1326507024  ;;  %v1388_v31 = vshll.u32 %v2656_v57, %v1382_v55 }
  0xec   : > { %v578_v27 = vsel %vm570_vm6, %v561_v10, %v577_v22  ;;  %v582_v28 = vsel %vm570_vm6, %v564_v12, %v581_v24  ;;  %v575_v32 = vsel %vm569_vm5, %v572_v14, %v574_v19  ;;  %v1389_v35 = vshrl.u32 %v2657_v59, %v1383_v11 }
  0xed   : > { %v579_v33 = vsel %vm569_vm5, %v576_v16, %v578_v27  ;;  %v583_v34 = vsel %vm569_vm5, %v580_v18, %v582_v28  ;;  %v1387_v41 = vor.u32 %v1386_v30, %v1385_v26  ;;  %v1391_v43 = vshll.u32 %v2657_v59, %v1382_v55 }
  0xee   : > { %v2797_v36 = vmul.u32.u64.low %v2763_v48, %v583_v34  ;;  %v2798_v37 = vmul.u32.u64.high %v2763_v48, %v583_v34, %v2797_v36  ;;  %v2801_v38 = vmul.u32.u64.low %v2763_v48, %v579_v33  ;;  %v2802_v40 = vmul.u32.u64.high %v2763_v48, %v579_v33, %v2801_v38 }
  0xef   : > { %v1390_v42 = vor.u32 %v1389_v35, %v1388_v31  ;;  %v1392_v45 = vshrl.u32 %v2658_v61, %v1383_v11  ;;  %v1384_v46 = vshrl.u32 %v2655_v53, %v1383_v11  ;;  %v1394_v44 = vshll.u32 %v2658_v61, %v1382_v55 }
  0xf0   : > { %v1395_v52 = vshrl.u32 %v2659_v63, %v1383_v11  ;;  %v1398_v54 = vshrl.u32 %v2660_v6, %v1383_v11  ;;  %v591_v58 = vmul.u32 %v2763_v48, %v575_v32  ;;  %v1397_v62 = vshll.u32 %v2659_v63, %v1382_v55 }
  0xf1   : > { %v1393_v60 = vor.u32 %v1392_v45, %v1391_v43  ;;  %vm1400_vm8 = vcmp.lt.s32.totalorder %v2765_v49, 1  ;;  %vm593_vm9 = vc.u32 %v2798_v37, %v2801_v38  ;;  %v594_v0 = vadd.s32 1, %v2802_v40 }
  0xf2   : > { %v1396_v1 = vor.u32 %v1395_v52, %v1394_v44  ;;  %vm1401_vm10 = vcmp.lt.s32.totalorder %v2765_v49, 2  ;;  %v1399_v2 = vor.u32 %v1398_v54, %v1397_v62  ;;  %vm1402_vm11 = vcmp.lt.s32.totalorder %v2765_v49, 3 }
  0xf3   : > { %vm1403_vm12 = vcmp.lt.s32.totalorder %v2765_v49, 4  ;;  %v1408_v3 = vsel %vm1400_vm8, %v1387_v41, %v1390_v42  ;;  %v595_v48 = vsel %vm593_vm9, %v594_v0, %v2802_v40  ;;  %v1412_v55 = vsel %vm1400_vm8, %v1390_v42, %v1393_v60 }
  0xf4   : > { %v1405_v4 = vsel %vm1403_vm12, %v1393_v60, 2102212464  ;;  %v1409_v5 = vsel %vm1403_vm12, %v1396_v1, 920167782  ;;  %v596_v7 = vadd.s32 %v595_v48, %v591_v58  ;;  %v1404_v8 = vsel %vm1400_vm8, %v1384_v46, %v1387_v41 }
  0xf5   : > { %v1410_v9 = vsel %vm1402_vm11, %v1393_v60, %v1409_v5  ;;  %v1413_v10 = vsel %vm1403_vm12, %v1399_v2, 1326507024  ;;  %v1406_v11 = vsel %vm1402_vm11, %v1390_v42, %v1405_v4  ;;  %v444_v24 = vsel %vm443_vm13, %v2774_v56, 0 }
  0xf6   : > { %v1411_v12 = vsel %vm1401_vm10, %v1408_v3, %v1410_v9  ;;  %v1414_v13 = vsel %vm1402_vm11, %v1396_v1, %v1413_v10  ;;  %v597_v14 = vadd.s32 536870912, %v596_v7  ;;  %v1407_v27 = vsel %vm1401_vm10, %v1404_v8, %v1406_v11 }
  0xf7   : > { %v1415_v15 = vsel %vm1401_vm10, %v1412_v55, %v1414_v13  ;;  %v2825_v16 = vmul.u32.u64.low %v2767_v50, %v1411_v12  ;;  %v2826_v18 = vmul.u32.u64.high %v2767_v50, %v1411_v12, %v2825_v16  ;;  %v446_v28 = vand.u32 31, %v444_v24 }
  0xf8   : > { %v2830_v19 = vmul.u32.u64.low %v2767_v50, %v1415_v15  ;;  %v2831_v22 = vmul.u32.u64.high %v2767_v50, %v1415_v15, %v2830_v19  ;;  %v598_v26 = vshrl.u32 %v597_v14, 30  ;;  %v1267_v30 = vand.u32 2139095040, %v2761_v47 }
  0xf9   : > { %v1426_v32 = vadd.s32 1, %v2826_v18  ;;  %v440_v33 = vor.u32 8388608, %v2771_v51  ;;  %v447_v34 = vsub.s32 32, %v446_v28  ;;  %v1423_v35 = vmul.u32 %v2767_v50, %v1407_v27 }
  0xfa   : > { %v599_v31 = vshll.u32 %v598_v26, 30  ;;  %vm1425_vm14 = vc.u32 %v2831_v22, %v2825_v16  ;;  %v1264_v40 = vand.u32 2147483647, %v2761_v47  ;;  %v1268_v41 = vshrl.u32 %v1267_v30, 23 }
  0xfb   : > { %v1427_v56 = vsel %vm1425_vm14, %v1426_v32, %v2826_v18  ;;  %v592_v42 = vadd.s32 %v2801_v38, %v2798_v37  ;;  %v450_v50 = vshrl.u32 %v2656_v57, %v447_v34  ;;  %v2851_v43 = vshll.u32 %v440_v33, 8 }
  0xfc   : > { %v2842_v36 = vsub.s32 %v596_v7, %v599_v31  ;;  %v1428_v49 = vadd.s32 %v1427_v56, %v1423_v35  ;;  %v622_v45 = vsub.s32 4, %v598_v26  ;;  %v445_v44 = vshrl.u32 %v444_v24, 5 }
  0xfd   : > { %v453_v52 = vshrl.u32 %v2657_v59, %v447_v34  ;;  %v449_v58 = vshll.u32 %v2655_v53, %v446_v28  ;;  %v456_v60 = vshrl.u32 %v2658_v61, %v447_v34  ;;  %v459_v37 = vshrl.u32 %v2659_v63, %v447_v34 }
  0xfe   : > { %v602_v51 = vsub.s32 0, %v2842_v36  ;;  %v1429_v46 = vadd.s32 536870912, %v1428_v49  ;;  %v452_v62 = vshll.u32 %v2656_v57, %v446_v28  ;;  %v462_v0 = vshrl.u32 %v2660_v6, %v447_v34 }
  0xff   : > { %v2328_v1 = vadd.s32 4294967169, %v1268_v41  ;;  %v451_v48 = vor.u32 %v450_v50, %v449_v58  ;;  %v455_v4 = vshll.u32 %v2657_v59, %v446_v28  ;;  %v458_v5 = vshll.u32 %v2658_v61, %v446_v28 }
 0x100   : > { %v2301_v54 = vmin.u32 %v602_v51, %v2842_v36  ;;  %v1430_v38 = vshrl.u32 %v1429_v46, 30  ;;  %v454_v9 = vor.u32 %v453_v52, %v452_v62  ;;  %v461_v23 = vshll.u32 %v2659_v63, %v446_v28 }
 0x101   : > { %v623_v11 = vsel %vm538_vm15, %v622_v45, %v598_v26  ;;  %v457_v12 = vor.u32 %v456_v60, %v455_v4  ;;  %v460_v13 = vor.u32 %v459_v37, %v458_v5  ;;  %v448_v15 = vshrl.u32 %v2655_v53, %v447_v34 }
 0x102   : > { %v604_v3 = vclz %v2301_v54  ;;  %v1431_v7 = vshll.u32 %v1430_v38, 30  ;;  %v1454_v8 = vsub.s32 4, %v1430_v38  ;;  %v463_v18 = vor.u32 %v462_v0, %v461_v23 }
 0x103   : > { %vm464_vm3 = vcmp.lt.s32.totalorder %v445_v44, 1  ;;  %vm465_vm5 = vcmp.lt.s32.totalorder %v445_v44, 2  ;;  %vm466_vm6 = vcmp.lt.s32.totalorder %v445_v44, 3  ;;  %vm467_vm7 = vcmp.lt.s32.totalorder %v445_v44, 4 }
 0x104   : > { %v2302_v10 = vadd.s32 4294967294, %v604_v3  ;;  %v2877_v14 = vsub.s32 %v1428_v49, %v1431_v7  ;;  %v1455_v24 = vsel %vm1370_vm0, %v1454_v8, %v1430_v38  ;;  %v472_v26 = vsel %vm464_vm3, %v451_v48, %v454_v9 }
 0x105   : > { %v469_v30 = vsel %vm467_vm7, %v457_v12, 2102212464  ;;  %v473_v31 = vsel %vm467_vm7, %v460_v13, 920167782  ;;  %v476_v35 = vsel %vm464_vm3, %v454_v9, %v457_v12  ;;  %v477_v51 = vsel %vm467_vm7, %v463_v18, 1326507024 }
 0x106   : > { %vm2303_vm4 = vcmp.lt.s32.totalorder %v2302_v10, 0  ;;  %v1434_v19 = vsub.s32 0, %v2877_v14  ;;  %v474_v34 = vsel %vm466_vm6, %v457_v12, %v473_v31  ;;  %v625_v50 = vsel %vm2862_vm1, 0, %v623_v11 }
 0x107   : > { %v607_v25 = vsel %vm2303_vm4, 0, %v2302_v10  ;;  %v475_v41 = vsel %vm465_vm5, %v472_v26, %v474_v34  ;;  %v468_v46 = vsel %vm464_vm3, %v448_v15, %v451_v48  ;;  %v1457_v58 = vsel %vm2870_vm2, 0, %v1455_v24  ;;  %v2418_v24 = vpop.f32.mrf.mxu0 }
 0x108   : > { %v608_v27 = vsub.s32 32, %v607_v25  ;;  %v612_v28 = vsub.s32 4294967266, %v607_v25  ;;  %v609_v32 = vshll.u32 %v2842_v36, %v607_v25  ;;  %v2333_v33 = vmin.u32 %v1434_v19, %v2877_v14 }
 0x109   : > { %v470_v36 = vsel %vm466_vm6, %v454_v9, %v469_v30  ;;  %v2901_v38 = vmul.u32.u64.low %v2851_v43, %v475_v41  ;;  %v2902_v62 = vmul.u32.u64.high %v2851_v43, %v475_v41, %v2901_v38  ;;  %v629_v5 = vadd.s32 3, %v625_v50 }
 0x10a   : > { %v610_v56 = vshrl.u32 %v592_v42, %v608_v27  ;;  %v613_v49 = vadd.s32 127, %v612_v28  ;;  %v1436_v45 = vclz %v2333_v33  ;;  %v478_v42 = vsel %vm466_vm6, %v460_v13, %v477_v51 }
 0x10b   : > { %v479_v37 = vsel %vm465_vm5, %v476_v35, %v478_v42  ;;  %v471_v3 = vsel %vm465_vm5, %v468_v46, %v470_v36  ;;  %v1424_v7 = vadd.s32 %v2825_v16, %v2831_v22  ;;  %v1274_v8 = vadd.s32 1, %v2328_v1 }
 0x10c   : > { %v611_v52 = vor.u32 %v610_v56, %v609_v32  ;;  %v614_v54 = vshll.u32 %v613_v49, 23  ;;  %v2334_v60 = vadd.s32 4294967294, %v1436_v45  ;;  %v1461_v11 = vadd.s32 3, %v1457_v58 }
 0x10d   : > { %v2907_v48 = vmul.u32.u64.low %v2851_v43, %v479_v37  ;;  %v2908_v4 = vmul.u32.u64.high %v2851_v43, %v479_v37, %v2907_v48  ;;  %v487_v15 = vmul.u32 %v2851_v43, %v471_v3  ;;  %v490_v44 = vadd.s32 1, %v2902_v62 }
 0x10e   : > { %v615_v0 = vor.u32 4788187, %v614_v54  ;;  %vm2335_vm8 = vcmp.lt.s32.totalorder %v2334_v60, 0  ;;  %v618_v23 = vcvt.s32.f32 %v611_v52  ;;  %vm1275_vm10 = vcmp.gt.s32.totalorder %v1274_v8, 0 }
 0x10f   : > { %v1439_v10 = vsel %vm2335_vm8, 0, %v2334_v60  ;;  %vm489_vm9 = vc.u32 %v2908_v4, %v2901_v38  ;;  %v1276_v19 = vsel %vm1275_vm10, %v1274_v8, 0  ;;  %v1271_v43 = vand.u32 8388607, %v1264_v40 }
 0x110   : > { %v616_v9 = vand.u32 2147483647, %v615_v0  ;;  %v1440_v12 = vsub.s32 32, %v1439_v10  ;;  %v1444_v13 = vsub.s32 4294967266, %v1439_v10  ;;  %v1441_v25 = vshll.u32 %v2877_v14, %v1439_v10 }
 0x111   : > { %v491_v1 = vsel %vm489_vm9, %v490_v44, %v2902_v62  ;;  %v1278_v28 = vand.u32 31, %v1276_v19  ;;  %v2923_v34 = vadd.f32 %v2418_v24, %v2739_v17  ;;  %v2928_v56 = vand.u32 3, %v629_v5 }
 0x112   : > { %v619_v18 = vmul.f32 %v618_v23, %v616_v9  ;;  %v1442_v16 = vshrl.u32 %v1424_v7, %v1440_v12  ;;  %v1445_v22 = vadd.s32 127, %v1444_v13  ;;  %v492_v27 = vadd.s32 %v491_v1, %v487_v15 }
 0x113   : > { %v1279_v33 = vsub.s32 32, %v1278_v28  ;;  %v2930_v41 = vand.u32 3, %v1461_v11  ;;  %v1272_v50 = vor.u32 8388608, %v1271_v43  ;;  %vm434_vm11 = vcmp.lt.s32.totalorder %v2754_v29, 0 }
 0x114   : > { %v620_v26 = vxor.u32 2147483648, %v619_v18  ;;  %v1443_v30 = vor.u32 %v1442_v16, %v1441_v25  ;;  %v1446_v31 = vshll.u32 %v1445_v22, 23  ;;  %v493_v32 = vadd.s32 536870912, %v492_v27 }
 0x115   : > { %v1282_v45 = vshrl.u32 %v2656_v57, %v1279_v33  ;;  %v1285_v52 = vshrl.u32 %v2657_v59, %v1279_v33  ;;  %v2935_v2 = vshrl.u32 %v1276_v19, 5  ;;  %v1281_v58 = vshll.u32 %v2655_v53, %v1278_v28 }
 0x116   : > { %v621_v14 = vsel %vm538_vm15, %v620_v26, %v619_v18  ;;  %v1447_v49 = vor.u32 4788187, %v1446_v31  ;;  %v494_v51 = vshrl.u32 %v493_v32, 30  ;;  %v1450_v36 = vcvt.s32.f32 %v1443_v30 }
 0x117   : > { %v624_v35 = vsel %vm2862_vm1, %v2742_v20, %v621_v14  ;;  %v1288_v42 = vshrl.u32 %v2658_v61, %v1279_v33  ;;  %v1284_v37 = vshll.u32 %v2656_v57, %v1278_v28  ;;  %v1290_v62 = vshll.u32 %v2658_v61, %v1278_v28 }
 0x118   : > { %2549 = vcosq.f32 %v624_v35  ;;  %v1448_v46 = vand.u32 2147483647, %v1447_v49  ;;  %v495_v54 = vshll.u32 %v494_v51, 30  ;;  %v1291_v0 = vshrl.u32 %v2659_v63, %v1279_v33 }
 0x119   : > { %2551 = vsinq.f32 %v624_v35  ;;  %v1283_v48 = vor.u32 %v1282_v45, %v1281_v58  ;;  %v1287_v5 = vshll.u32 %v2657_v59, %v1278_v28  ;;  %v747_v7 = vand.u32 2139095040, %v2923_v34 }
 0x11a   : > { %v1451_v60 = vmul.f32 %v1450_v36, %v1448_v46  ;;  %v2942_v3 = vsub.s32 %v492_v27, %v495_v54  ;;  %v1286_v9 = vor.u32 %v1285_v52, %v1284_v37  ;;  %v1292_v23 = vor.u32 %v1291_v0, %v1290_v62 }
 0x11b   : > { %v1294_v10 = vshrl.u32 %v2660_v6, %v1279_v33  ;;  %v488_v11 = vadd.s32 %v2901_v38, %v2908_v4  ;;  %v1289_v13 = vor.u32 %v1288_v42, %v1287_v5  ;;  %v1293_v15 = vshll.u32 %v2659_v63, %v1278_v28 }
 0x11c   : > { %v1452_v8 = vxor.u32 2147483648, %v1451_v60  ;;  %v498_v12 = vsub.s32 0, %v2942_v3  ;;  %vm635_vm12 = vcmp.eq.s32.totalorder %v2928_v56, 2  ;;  %v518_v18 = vsub.s32 4, %v494_v51 }
 0x11d   : > { %vm1296_vm13 = vcmp.lt.s32.totalorder %v2935_v2, 1  ;;  %v2955_v25 = vshll.u32 %v1272_v50, 8  ;;  %vm632_vm14 = vcmp.eq.s32.totalorder %v2928_v56, 0  ;;  %v1295_v16 = vor.u32 %v1294_v10, %v1293_v15 }
 0x11e   : > { %v1453_v44 = vsel %vm1370_vm0, %v1452_v8, %v1451_v60  ;;  %v2297_v4 = vmin.u32 %v498_v12, %v2942_v3  ;;  %vm1299_vm15 = vcmp.lt.s32.totalorder %v2935_v2, 4  ;;  %vm631_vm1 = vcmp.lt.s32.totalorder %v2928_v56, 2 }
 0x11f   : > { %v1456_v38 = vsel %vm2870_vm2, %v2745_v21, %v1453_v44  ;;  %v1280_v22 = vshrl.u32 %v2655_v53, %v1279_v33  ;;  %v1304_v1 = vsel %vm1296_vm13, %v1283_v48, %v1286_v9  ;;  %v1305_v19 = vsel %vm1299_vm15, %v1292_v23, 920167782 }
 0x120   : > { %2553 = vcosq.f32 %v1456_v38  ;;  %vm628_vm0 = vweird.f32 %v2742_v20  ;;  %vm2972_vm2 = vcmp.le.f32.partialorder %v432_v39, 0.7853982  ;;  %v500_v24 = vclz %v2297_v4 }
 0x121   : > { %2555 = vsinq.f32 %v1456_v38  ;;  %vm1298_vm3 = vcmp.lt.s32.totalorder %v2935_v2, 3  ;;  %v1301_v26 = vsel %vm1299_vm15, %v1289_v13, 2102212464  ;;  %vm2160_vm4 = vcmask 388096  }
 0x122   : > { %v519_v27 = vsel %vm434_vm11, %v518_v18, %v494_v51  ;;  %vm1297_vm5 = vcmp.lt.s32.totalorder %v2935_v2, 2  ;;  %v1306_v43 = vsel %vm1298_vm3, %v1289_v13, %v1305_v19  ;;  %v1308_v28 = vsel %vm1296_vm13, %v1286_v9, %v1289_v13  ;;  %v2430_v13 = vpop.f32.mrf.mxu1 }
 0x123   : > { %v2298_v39 = vadd.s32 4294967294, %v500_v24  ;;  %v1300_v30 = vsel %vm1296_vm13, %v1280_v22, %v1283_v48  ;;  %v1307_v31 = vsel %vm1297_vm5, %v1304_v1, %v1306_v43  ;;  %v1309_v14 = vsel %vm1299_vm15, %v1295_v16, 1326507024 }
 0x124   : > { %v1302_v33 = vsel %vm1298_vm3, %v1286_v9, %v1301_v26  ;;  %v1310_v35 = vsel %vm1298_vm3, %v1292_v23, %v1309_v14  ;;  %v2991_v49 = vmul.u32.u64.low %v2955_v25, %v1307_v31  ;;  %v2992_v51 = vmul.u32.u64.high %v2955_v25, %v1307_v31, %v2991_v49 }
 0x125   : > { %v2550_v32 = vpop.eup %2549  ;;  %vm2299_vm6 = vcmp.lt.s32.totalorder %v2298_v39, 0  ;;  %v1311_v46 = vsel %vm1297_vm5, %v1308_v28, %v1310_v35  ;;  %v748_v36 = vshrl.u32 %v747_v7, 23  ;;  %v1303_v0 = vsel %vm1297_vm5, %v1300_v30, %v1302_v33 }
 0x126   : > { %v2552_v50 = vpop.eup %2551  ;;  %v636_v45 = vxor.u32 2147483648, %v2550_v32  ;;  %v503_v54 = vsel %vm2299_vm6, 0, %v2298_v39  ;;  %v2998_v58 = vmul.u32.u64.low %v2955_v25, %v1311_v46  ;;  %v2999_v42 = vmul.u32.u64.high %v2955_v25, %v1311_v46, %v2998_v58 }
 0x127   : > { %v633_v52 = vxor.u32 2147483648, %v2552_v50  ;;  %v504_v37 = vsub.s32 32, %v503_v54  ;;  %v508_v62 = vsub.s32 4294967266, %v503_v54  ;;  %v1322_v5 = vadd.s32 1, %v2992_v51 }
 0x128   : > { %v637_v60 = vsel %vm635_vm12, %v636_v45, %v2552_v50  ;;  %v744_v7 = vand.u32 2147483647, %v2923_v34  ;;  %v2308_v8 = vadd.s32 4294967169, %v748_v36  ;;  %v505_v23 = vshll.u32 %v2942_v3, %v503_v54 }
 0x129   : > { %v634_v48 = vsel %vm632_vm14, %v2550_v32, %v633_v52  ;;  %v506_v10 = vshrl.u32 %v488_v11, %v504_v37  ;;  %v509_v12 = vadd.s32 127, %v508_v62  ;;  %v521_v15 = vsel %vm2972_vm2, 0, %v519_v27 }
 0x12a   : > { %v638_v9 = vsel %vm631_vm1, %v634_v48, %v637_v60  ;;  %v1319_v56 = vmul.u32 %v2955_v25, %v1303_v0  ;;  %vm1321_vm7 = vc.u32 %v2999_v42, %v2991_v49  ;;  %v754_v4 = vadd.s32 1, %v2308_v8 }
 0x12b   : > { %v639_v2 = vsel %vm628_vm0, nan, %v638_v9  ;;  %v507_v11 = vor.u32 %v506_v10, %v505_v23  ;;  %v510_v44 = vshll.u32 %v509_v12, 23  ;;  %v1323_v18 = vsel %vm1321_vm7, %v1322_v5, %v2992_v51 }
 0x12c   : > { %v2379_v3 = vpack.c.bf16 %v639_v2, %v639_v2  ;;  %v1324_v38 = vadd.s32 %v1323_v18, %v1319_v56  ;;  %v3027_v16 = vadd.f32 %v2430_v13, %v2739_v17  ;;  %vm1464_vm8 = vcmp.eq.s32.totalorder %v2930_v41, 0 }
 0x12d   : > { %v2554_v20 = vpop.eup %2553  ;;  %vm1467_vm9 = vcmp.eq.s32.totalorder %v2930_v41, 2  ;;  %v511_v25 = vor.u32 4788187, %v510_v44  ;;  %v525_v22 = vadd.s32 3, %v521_v15  ;;  %v751_v26 = vand.u32 8388607, %v744_v7 }
 0x12e   : > { %2162 = vst.msk [vmem:[%s3016_s6 + $0x4] sm:$0xf] %vm2160_vm4, %v2379_v3  ;;  %v2556_v1 = vpop.eup %2555  ;;  %v1468_v19 = vxor.u32 2147483648, %v2554_v20  ;;  %v1325_v24 = vadd.s32 536870912, %v1324_v38  ;;  %vm755_vm10 = vcmp.gt.s32.totalorder %v754_v4, 0  ;;  %v514_v28 = vcvt.s32.f32 %v507_v11 }
 0x12f   : > { %v1465_v27 = vxor.u32 2147483648, %v2556_v1  ;;  %v512_v43 = vand.u32 2147483647, %v511_v25  ;;  %v756_v39 = vsel %vm755_vm10, %v754_v4, 0  ;;  %v1579_v32 = vand.u32 2139095040, %v3027_v16 }
 0x130   : > { %v1469_v30 = vsel %vm1467_vm9, %v1468_v19, %v2556_v1  ;;  %v3035_v31 = vshrl.u32 %v1325_v24, 30  ;;  %v758_v14 = vand.u32 31, %v756_v39  ;;  %vm1463_vm12 = vcmp.lt.s32.totalorder %v2930_v41, 2 }
 0x131   : > { %v1466_v33 = vsel %vm1464_vm8, %v2554_v20, %v1465_v27  ;;  %v515_v35 = vmul.f32 %v514_v28, %v512_v43  ;;  %vm1460_vm13 = vweird.f32 %v2745_v21  ;;  %v3043_v52 = vand.u32 3, %v525_v22 }
 0x132   : > { %v1470_v51 = vsel %vm1463_vm12, %v1466_v33, %v1469_v30  ;;  %v1327_v50 = vshll.u32 %v3035_v31, 30  ;;  %v759_v45 = vsub.s32 32, %v758_v14  ;;  %v752_v60 = vor.u32 8388608, %v751_v26 }
 0x133   : > { %v1471_v46 = vsel %vm1460_vm13, nan, %v1470_v51  ;;  %v516_v36 = vxor.u32 2147483648, %v515_v35  ;;  %v1580_v37 = vshrl.u32 %v1579_v32, 23  ;;  %v761_v62 = vshll.u32 %v2655_v53, %v758_v14 }
 0x134   : > { %v2387_v54 = vpack.c.bf16 %v1471_v46, %v1471_v46  ;;  %v3045_v58 = vsub.s32 %v1324_v38, %v1327_v50  ;;  %v762_v21 = vshrl.u32 %v2656_v57, %v759_v45  ;;  %v765_v0 = vshrl.u32 %v2657_v59, %v759_v45 }
 0x135   : > { %v517_v41 = vsel %vm434_vm11, %v516_v36, %v515_v35  ;;  %v757_v8 = vshrl.u32 %v756_v39, 5  ;;  %v764_v9 = vshll.u32 %v2656_v57, %v758_v14  ;;  %v767_v10 = vshll.u32 %v2657_v59, %v758_v14 }
 0x136   : > { %2170 = vst.msk [vmem:[%s3016_s6 + $0x24] sm:$0xf] %vm2160_vm4, %v2387_v54  ;;  %v520_v48 = vsel %vm2972_vm2, %v2754_v29, %v517_v41  ;;  %v1330_v5 = vsub.s32 0, %v3045_v58  ;;  %v763_v23 = vor.u32 %v762_v21, %v761_v62  ;;  %v768_v12 = vshrl.u32 %v2658_v61, %v759_v45 }
 0x137   : > { %2557 = vcosq.f32 %v520_v48  ;;  %v766_v2 = vor.u32 %v765_v0, %v764_v9  ;;  %v770_v15 = vshll.u32 %v2658_v61, %v758_v14  ;;  %v771_v55 = vshrl.u32 %v2659_v63, %v759_v45 }
 0x138   : > { %2559 = vsinq.f32 %v520_v48  ;;  %v2329_v13 = vmin.u32 %v1330_v5, %v3045_v58  ;;  %v769_v56 = vor.u32 %v768_v12, %v767_v10  ;;  %v773_v3 = vshll.u32 %v2659_v63, %v758_v14 }
 0x139   : > { %v774_v11 = vshrl.u32 %v2660_v6, %v759_v45  ;;  %v1320_v44 = vadd.s32 %v2991_v49, %v2999_v42  ;;  %v792_v38 = vshll.u32 %v752_v60, 8  ;;  %v2340_v4 = vadd.s32 4294967169, %v1580_v37 }
 0x13a   : > { %v1332_v18 = vclz %v2329_v13  ;;  %vm1266_vm11 = vcmp.lt.s32.totalorder %v2761_v47, 0  ;;  %v1350_v20 = vsub.s32 4, %v3035_v31  ;;  %v760_v25 = vshrl.u32 %v2655_v53, %v759_v45 }
 0x13b   : > { %v772_v22 = vor.u32 %v771_v55, %v770_v15  ;;  %v775_v1 = vor.u32 %v774_v11, %v773_v3  ;;  %vm776_vm14 = vcmp.lt.s32.totalorder %v757_v8, 1  ;;  %vm778_vm15 = vcmp.lt.s32.totalorder %v757_v8, 3 }
 0x13c   : > { %v2330_v19 = vadd.s32 4294967294, %v1332_v18  ;;  %vm779_vm1 = vcmp.lt.s32.totalorder %v757_v8, 4  ;;  %v784_v26 = vsel %vm776_vm14, %v763_v23, %v766_v2  ;;  %v788_v43 = vsel %vm776_vm14, %v766_v2, %v769_v56 }
 0x13d   : > { %v781_v24 = vsel %vm779_vm1, %v769_v56, 2102212464  ;;  %v785_v27 = vsel %vm779_vm1, %v772_v22, 920167782  ;;  %vm777_vm2 = vcmp.lt.s32.totalorder %v757_v8, 2  ;;  %v780_v39 = vsel %vm776_vm14, %v760_v25, %v763_v23 }
 0x13e   : > { %vm2331_vm0 = vcmp.lt.s32.totalorder %v2330_v19, 0  ;;  %v786_v49 = vsel %vm778_vm15, %v769_v56, %v785_v27  ;;  %v789_v42 = vsel %vm779_vm1, %v775_v1, 1326507024  ;;  %v782_v35 = vsel %vm778_vm15, %v766_v2, %v781_v24 }
 0x13f   : > { %v1335_v28 = vsel %vm2331_vm0, 0, %v2330_v19  ;;  %v787_v30 = vsel %vm777_vm2, %v784_v26, %v786_v49  ;;  %v790_v14 = vsel %vm778_vm15, %v772_v22, %v789_v42  ;;  %vm3085_vm3 = vcmp.le.f32.partialorder %v1264_v40, 0.7853982 }
 0x140   : > { %v1336_v32 = vsub.s32 32, %v1335_v28  ;;  %v1340_v33 = vsub.s32 4294967266, %v1335_v28  ;;  %v791_v51 = vsel %vm777_vm2, %v788_v43, %v790_v14  ;;  %v1337_v60 = vshll.u32 %v3045_v58, %v1335_v28 }
 0x141   : > { %v3076_v50 = vmul.u32.u64.low %v792_v38, %v791_v51  ;;  %v3077_v45 = vmul.u32.u64.high %v792_v38, %v791_v51, %v3076_v50  ;;  %v3079_v46 = vmul.u32.u64.low %v792_v38, %v787_v30  ;;  %v3080_v36 = vmul.u32.u64.high %v792_v38, %v787_v30, %v3079_v46 }
 0x142   : > { %v1338_v37 = vshrl.u32 %v1320_v44, %v1336_v32  ;;  %v1341_v41 = vadd.s32 127, %v1340_v33  ;;  %vm527_vm5 = vcmp.lt.s32.totalorder %v3043_v52, 2  ;;  %vm528_vm6 = vcmp.eq.s32.totalorder %v3043_v52, 0 }
 0x143   : > { %v783_v62 = vsel %vm777_vm2, %v780_v39, %v782_v35  ;;  %v1586_v21 = vadd.s32 1, %v2340_v4  ;;  %vm531_vm7 = vcmp.eq.s32.totalorder %v3043_v52, 2  ;;  %v1351_v40 = vsel %vm1266_vm11, %v1350_v20, %v3035_v31 }
 0x144   : > { %v2558_v0 = vpop.eup %2557  ;;  %v1339_v48 = vor.u32 %v1338_v37, %v1337_v60  ;;  %v1342_v5 = vshll.u32 %v1341_v41, 23  ;;  %vm801_vm8 = vc.u32 %v3077_v45, %v3079_v46  ;;  %v802_v23 = vadd.s32 1, %v3080_v36 }
 0x145   : > { %v2560_v9 = vpop.eup %2559  ;;  %v532_v58 = vxor.u32 2147483648, %v2558_v0  ;;  %v1576_v8 = vand.u32 2147483647, %v3027_v16  ;;  %v799_v13 = vmul.u32 %v792_v38, %v783_v62  ;;  %vm1587_vm9 = vcmp.gt.s32.totalorder %v1586_v21, 0 }
 0x146   : > { %v529_v10 = vxor.u32 2147483648, %v2560_v9  ;;  %v1343_v12 = vor.u32 4788187, %v1342_v5  ;;  %v1353_v15 = vsel %vm3085_vm3, 0, %v1351_v40  ;;  %v803_v56 = vsel %vm801_vm8, %v802_v23, %v3080_v36  ;;  %v363_v36 = vpop.f32.mrf.mxu0 }
 0x147   : > { %v533_v2 = vsel %vm531_vm7, %v532_v58, %v2560_v9  ;;  %v1588_v31 = vsel %vm1587_vm9, %v1586_v21, 0  ;;  %v1346_v11 = vcvt.s32.f32 %v1339_v48  ;;  %v804_v44 = vadd.s32 %v803_v56, %v799_v13 }
 0x148   : > { %v530_v55 = vsel %vm528_vm6, %v2558_v0, %v529_v10  ;;  %v1344_v3 = vand.u32 2147483647, %v1343_v12  ;;  %vm524_vm10 = vweird.f32 %v2754_v29  ;;  %v1590_v38 = vand.u32 31, %v1588_v31 }
 0x149   : > { %v534_v18 = vsel %vm527_vm5, %v530_v55, %v533_v2  ;;  %v805_v25 = vadd.s32 536870912, %v804_v44  ;;  %v1583_v22 = vand.u32 8388607, %v1576_v8  ;;  %v1357_v19 = vadd.s32 3, %v1353_v15 }
 0x14a   : > { %v535_v4 = vsel %vm524_vm10, nan, %v534_v18  ;;  %v1347_v20 = vmul.f32 %v1346_v11, %v1344_v3  ;;  %v3111_v24 = vshrl.u32 %v1588_v31, 5  ;;  %v1591_v26 = vsub.s32 32, %v1590_v38 }
 0x14b   : > { %v2378_v1 = vpack.c.bf16 %v535_v4, %v535_v4  ;;  %v806_v43 = vshrl.u32 %v805_v25, 30  ;;  %v1593_v49 = vshll.u32 %v2655_v53, %v1590_v38  ;;  %v1596_v29 = vshll.u32 %v2656_v57, %v1590_v38 }
 0x14c   : > { %v1348_v27 = vxor.u32 2147483648, %v1347_v20  ;;  %v1594_v52 = vshrl.u32 %v2656_v57, %v1591_v26  ;;  %v1597_v42 = vshrl.u32 %v2657_v59, %v1591_v26  ;;  %v1599_v28 = vshll.u32 %v2657_v59, %v1590_v38 }
 0x14d   : > { %2161 = vst.msk [vmem:[%s3016_s6] sm:$0xf] %vm2160_vm4, %v2378_v1  ;;  %v1600_v39 = vshrl.u32 %v2658_v61, %v1591_v26  ;;  %v807_v14 = vshll.u32 %v806_v43, 30  ;;  %v1602_v32 = vshll.u32 %v2658_v61, %v1590_v38  ;;  %v1603_v33 = vshrl.u32 %v2659_v63, %v1591_v26 }
 0x14e   : > { %v1349_v30 = vsel %vm1266_vm11, %v1348_v27, %v1347_v20  ;;  %v1595_v51 = vor.u32 %v1594_v52, %v1593_v49  ;;  %v1598_v50 = vor.u32 %v1597_v42, %v1596_v29  ;;  %vm746_vm12 = vcmp.lt.s32.totalorder %v2923_v34, 0 }
 0x14f   : > { %v1352_v35 = vsel %vm3085_vm3, %v2761_v47, %v1349_v30  ;;  %v3129_v60 = vsub.s32 %v804_v44, %v807_v14  ;;  %v1601_v37 = vor.u32 %v1600_v39, %v1599_v28  ;;  %v1604_v41 = vor.u32 %v1603_v33, %v1602_v32 }
 0x150   : > { %2561 = vcosq.f32 %v1352_v35  ;;  %v3131_v62 = vand.u32 3, %v1357_v19  ;;  %v1605_v21 = vshll.u32 %v2659_v63, %v1590_v38  ;;  %v1606_v0 = vshrl.u32 %v2660_v6, %v1591_v26 }
 0x151   : > { %2563 = vsinq.f32 %v1352_v35  ;;  %v810_v54 = vsub.s32 0, %v3129_v60  ;;  %v1584_v48 = vor.u32 8388608, %v1583_v22  ;;  %vm1608_vm13 = vcmp.lt.s32.totalorder %v3111_v24, 1 }
 0x152   : > { %v3138_v5 = vadd.f32 %v2739_v17, %v363_v36  ;;  %vm3142_vm11 = vcmp.le.f32.partialorder %v744_v7, 0.7853982  ;;  %v1592_v9 = vshrl.u32 %v2655_v53, %v1591_v26  ;;  %v1607_v58 = vor.u32 %v1606_v0, %v1605_v21 }
 0x153   : > { %vm1610_vm14 = vcmp.lt.s32.totalorder %v3111_v24, 3  ;;  %vm1611_vm15 = vcmp.lt.s32.totalorder %v3111_v24, 4  ;;  %v2309_v23 = vmin.u32 %v810_v54, %v3129_v60  ;;  %v1616_v17 = vsel %vm1608_vm13, %v1595_v51, %v1598_v50 }
 0x154   : > { %v1613_v10 = vsel %vm1611_vm15, %v1601_v37, 2102212464  ;;  %v1617_v12 = vsel %vm1611_vm15, %v1604_v41, 920167782  ;;  %v830_v13 = vsub.s32 4, %v806_v43  ;;  %v1620_v2 = vsel %vm1608_vm13, %v1598_v50, %v1601_v37 }
 0x155   : > { %v1618_v7 = vsel %vm1610_vm14, %v1601_v37, %v1617_v12  ;;  %v1621_v15 = vsel %vm1611_vm15, %v1607_v58, 1326507024  ;;  %v812_v56 = vclz %v2309_v23  ;;  %vm1609_vm1 = vcmp.lt.s32.totalorder %v3111_v24, 2 }
 0x156   : > { %v1612_v31 = vsel %vm1608_vm13, %v1592_v9, %v1595_v51  ;;  %v1624_v55 = vshll.u32 %v1584_v48, 8  ;;  %v1614_v3 = vsel %vm1610_vm14, %v1598_v50, %v1613_v10  ;;  %v1619_v11 = vsel %vm1609_vm1, %v1616_v17, %v1618_v7  ;;  %v403_v10 = vpop.f32.mrf.mxu1 }
 0x157   : > { %v1622_v44 = vsel %vm1610_vm14, %v1604_v41, %v1621_v15  ;;  %v643_v18 = vand.u32 2139095040, %v3138_v5  ;;  %v2310_v38 = vadd.s32 4294967294, %v812_v56  ;;  %vm1359_vm0 = vcmp.lt.s32.totalorder %v3131_v62, 2 }
 0x158   : > { %v1623_v4 = vsel %vm1609_vm1, %v1620_v2, %v1622_v44  ;;  %v3168_v20 = vmul.u32.u64.low %v1624_v55, %v1619_v11  ;;  %v3169_v25 = vmul.u32.u64.high %v1624_v55, %v1619_v11, %v3168_v20  ;;  %v831_v22 = vsel %vm746_vm12, %v830_v13, %v806_v43 }
 0x159   : > { %v3175_v1 = vmul.u32.u64.low %v1624_v55, %v1623_v4  ;;  %v3176_v19 = vmul.u32.u64.high %v1624_v55, %v1623_v4, %v3175_v1  ;;  %v644_v26 = vshrl.u32 %v643_v18, 23  ;;  %vm1360_vm2 = vcmp.eq.s32.totalorder %v3131_v62, 0 }
 0x15a   : > { %vm1363_vm3 = vcmp.eq.s32.totalorder %v3131_v62, 2  ;;  %vm2311_vm5 = vcmp.lt.s32.totalorder %v2310_v38, 0  ;;  %v1615_v27 = vsel %vm1609_vm1, %v1612_v31, %v1614_v3  ;;  %v800_v49 = vadd.s32 %v3079_v46, %v3077_v45 }
 0x15b   : > { %v815_v29 = vsel %vm2311_vm5, 0, %v2310_v38  ;;  %v640_v52 = vand.u32 2147483647, %v3138_v5  ;;  %v2304_v42 = vadd.s32 4294967169, %v644_v26  ;;  %v833_v39 = vsel %vm3142_vm11, 0, %v831_v22 }
 0x15c   : > { %v816_v43 = vsub.s32 32, %v815_v29  ;;  %v820_v28 = vsub.s32 4294967266, %v815_v29  ;;  %v1634_v30 = vadd.s32 1, %v3169_v25  ;;  %v817_v32 = vshll.u32 %v3129_v60, %v815_v29 }
 0x15d   : > { %v2562_v14 = vpop.eup %2561  ;;  %v1631_v33 = vmul.u32 %v1624_v55, %v1615_v27  ;;  %vm1633_vm6 = vc.u32 %v3176_v19, %v3168_v20  ;;  %v650_v24 = vadd.s32 1, %v2304_v42  ;;  %v837_v37 = vadd.s32 3, %v833_v39  ;;  %v3206_v55 = vld [vmem:[%s3927_s2] ss:$0 sm:$0xff] }
 0x15e   : > { %v2564_v45 = vpop.eup %2563  ;;  %v1364_v46 = vxor.u32 2147483648, %v2562_v14  ;;  %v818_v35 = vshrl.u32 %v800_v49, %v816_v43  ;;  %v821_v51 = vadd.s32 127, %v820_v28  ;;  %v1635_v50 = vsel %vm1633_vm6, %v1634_v30, %v3169_v25 }
 0x15f   : > { %v1361_v36 = vxor.u32 2147483648, %v2564_v45  ;;  %v1636_v41 = vadd.s32 %v1635_v50, %v1631_v33  ;;  %vm651_vm7 = vcmp.gt.s32.totalorder %v650_v24, 0  ;;  %v647_v58 = vand.u32 8388607, %v640_v52 }
 0x160   : > { %v1365_v21 = vsel %vm1363_vm3, %v1364_v46, %v2564_v45  ;;  %v819_v0 = vor.u32 %v818_v35, %v817_v32  ;;  %v822_v60 = vshll.u32 %v821_v51, 23  ;;  %v652_v54 = vsel %vm651_vm7, %v650_v24, 0 }
 0x161   : > { %v1362_v48 = vsel %vm1360_vm2, %v2562_v14, %v1361_v36  ;;  %v1637_v9 = vadd.s32 536870912, %v1636_v41  ;;  %v654_v23 = vand.u32 31, %v652_v54  ;;  %vm1356_vm8 = vweird.f32 %v2761_v47 }
 0x162   : > { %v1366_v17 = vsel %vm1359_vm0, %v1362_v48, %v1365_v21  ;;  %v823_v12 = vor.u32 4788187, %v822_v60  ;;  %v826_v31 = vcvt.s32.f32 %v819_v0  ;;  %v3209_v3 = vadd.f32 %v3206_v55, %v403_v10 }
 0x163   : > { %v1367_v13 = vsel %vm1356_vm8, nan, %v1366_v17  ;;  %v3201_v7 = vshrl.u32 %v1637_v9, 30  ;;  %v655_v2 = vsub.s32 32, %v654_v23  ;;  %v3211_v47 = vand.u32 3, %v837_v37 }
 0x164   : > { %v2386_v15 = vpack.c.bf16 %v1367_v13, %v1367_v13  ;;  %v824_v56 = vand.u32 2147483647, %v823_v12  ;;  %v648_v11 = vor.u32 8388608, %v647_v58  ;;  %v657_v38 = vshll.u32 %v2655_v53, %v654_v23 }
 0x165   : > { %v1639_v62 = vshll.u32 %v3201_v7, 30  ;;  %v658_v44 = vshrl.u32 %v2656_v57, %v655_v2  ;;  %v661_v4 = vshrl.u32 %v2657_v59, %v655_v2  ;;  %v664_v25 = vshrl.u32 %v2658_v61, %v655_v2 }
 0x166   : > { %2169 = vst.msk [vmem:[%s3016_s6 + $0x20] sm:$0xf] %vm2160_vm4, %v2386_v15  ;;  %v827_v18 = vmul.f32 %v826_v31, %v824_v56  ;;  %v660_v1 = vshll.u32 %v2656_v57, %v654_v23  ;;  %v663_v26 = vshll.u32 %v2657_v59, %v654_v23  ;;  %v667_v27 = vshrl.u32 %v2659_v63, %v655_v2 }
 0x167   : > { %v3220_v22 = vsub.s32 %v1636_v41, %v1639_v62  ;;  %v653_v29 = vshrl.u32 %v652_v54, 5  ;;  %v666_v42 = vshll.u32 %v2658_v61, %v654_v23  ;;  %v1475_v43 = vand.u32 2139095040, %v3209_v3 }
 0x168   : > { %v828_v49 = vxor.u32 2147483648, %v827_v18  ;;  %v659_v39 = vor.u32 %v658_v44, %v657_v38  ;;  %v662_v30 = vor.u32 %v661_v4, %v660_v1  ;;  %v665_v14 = vor.u32 %v664_v25, %v663_v26  ;;  %v2421_v4 = vpop.f32.mrf.mxu0 }
 0x169   : > { %v1642_v28 = vsub.s32 0, %v3220_v22  ;;  %vm1578_vm9 = vcmp.lt.s32.totalorder %v3027_v16, 0  ;;  %v668_v33 = vor.u32 %v667_v27, %v666_v42  ;;  %v669_v24 = vshll.u32 %v2659_v63, %v654_v23 }
 0x16a   : > { %v829_v32 = vsel %vm746_vm12, %v828_v49, %v827_v18  ;;  %v670_v45 = vshrl.u32 %v2660_v6, %v655_v2  ;;  %v1662_v51 = vsub.s32 4, %v3201_v7  ;;  %v3238_v50 = vshll.u32 %v648_v11, 8 }
 0x16b   : > { %v832_v46 = vsel %vm3142_vm11, %v2923_v34, %v829_v32  ;;  %v2341_v35 = vmin.u32 %v1642_v28, %v3220_v22  ;;  %v656_v36 = vshrl.u32 %v2655_v53, %v655_v2  ;;  %vm672_vm10 = vcmp.lt.s32.totalorder %v653_v29, 1 }
 0x16c   : > { %2565 = vcosq.f32 %v832_v46  ;;  %v671_v37 = vor.u32 %v670_v45, %v669_v24  ;;  %vm3243_vm12 = vcmp.le.f32.partialorder %v1576_v8, 0.7853982  ;;  %vm673_vm13 = vcmp.lt.s32.totalorder %v653_v29, 2 }
 0x16d   : > { %2567 = vsinq.f32 %v832_v46  ;;  %v1644_v40 = vclz %v2341_v35  ;;  %vm675_vm11 = vcmp.lt.s32.totalorder %v653_v29, 4  ;;  %vm674_vm14 = vcmp.lt.s32.totalorder %v653_v29, 3 }
 0x16e   : > { %v677_v21 = vsel %vm675_vm11, %v665_v14, 2102212464  ;;  %v680_v0 = vsel %vm672_vm10, %v659_v39, %v662_v30  ;;  %v681_v60 = vsel %vm675_vm11, %v668_v33, 920167782  ;;  %v676_v48 = vsel %vm672_vm10, %v656_v36, %v659_v39 }
 0x16f   : > { %v2342_v54 = vadd.s32 4294967294, %v1644_v40  ;;  %v682_v9 = vsel %vm674_vm14, %v665_v14, %v681_v60  ;;  %v684_v58 = vsel %vm672_vm10, %v662_v30, %v665_v14  ;;  %v678_v23 = vsel %vm674_vm14, %v662_v30, %v677_v21 }
 0x170   : > { %v683_v10 = vsel %vm673_vm13, %v680_v0, %v682_v9  ;;  %v685_v17 = vsel %vm675_vm11, %v671_v37, 1326507024  ;;  %v1476_v12 = vshrl.u32 %v1475_v43, 23  ;;  %v1472_v31 = vand.u32 2147483647, %v3209_v3 }
 0x171   : > { %vm2343_vm15 = vcmp.lt.s32.totalorder %v2342_v54, 0  ;;  %v686_v8 = vsel %vm674_vm14, %v668_v33, %v685_v17  ;;  %v3249_v13 = vmul.u32.u64.low %v3238_v50, %v683_v10  ;;  %v3250_v2 = vmul.u32.u64.high %v3238_v50, %v683_v10, %v3249_v13 }
 0x172   : > { %v1647_v15 = vsel %vm2343_vm15, 0, %v2342_v54  ;;  %v687_v56 = vsel %vm673_vm13, %v684_v58, %v686_v8  ;;  %v2336_v62 = vadd.s32 4294967169, %v1476_v12  ;;  %v1632_v11 = vadd.s32 %v3168_v20, %v3176_v19 }
 0x173   : > { %v1648_v44 = vsub.s32 32, %v1647_v15  ;;  %v1652_v18 = vsub.s32 4294967266, %v1647_v15  ;;  %v1663_v38 = vsel %vm1578_vm9, %v1662_v51, %v3201_v7  ;;  %v679_v25 = vsel %vm673_vm13, %v676_v48, %v678_v23 }
 0x174   : > { %v3262_v1 = vmul.u32.u64.low %v3238_v50, %v687_v56  ;;  %v3263_v26 = vmul.u32.u64.high %v3238_v50, %v687_v56, %v3262_v1  ;;  %v1482_v27 = vadd.s32 1, %v2336_v62  ;;  %v1649_v49 = vshll.u32 %v3220_v22, %v1647_v15 }
 0x175   : > { %v1650_v42 = vshrl.u32 %v1632_v11, %v1648_v44  ;;  %v1653_v43 = vadd.s32 127, %v1652_v18  ;;  %v698_v20 = vadd.s32 1, %v3250_v2  ;;  %vm836_vm1 = vweird.f32 %v2923_v34 }
 0x176   : > { %v1665_v19 = vsel %vm3243_vm12, 0, %v1663_v38  ;;  %vm1483_vm0 = vcmp.gt.s32.totalorder %v1482_v27, 0  ;;  %v3271_v7 = vadd.f32 %v3206_v55, %v2421_v4  ;;  %v1479_v39 = vand.u32 8388607, %v1472_v31 }
 0x177   : > { %v1651_v29 = vor.u32 %v1650_v42, %v1649_v49  ;;  %v1654_v28 = vshll.u32 %v1653_v43, 23  ;;  %v1484_v30 = vsel %vm1483_vm0, %v1482_v27, 0  ;;  %vm839_vm2 = vcmp.lt.s32.totalorder %v3211_v47, 2 }
 0x178   : > { %v695_v22 = vmul.u32 %v3238_v50, %v679_v25  ;;  %vm697_vm3 = vc.u32 %v3263_v26, %v3249_v13  ;;  %v1486_v14 = vand.u32 31, %v1484_v30  ;;  %vm840_vm5 = vcmp.eq.s32.totalorder %v3211_v47, 0 }
 0x179   : > { %v2566_v32 = vpop.eup %2565  ;;  %vm843_vm6 = vcmp.eq.s32.totalorder %v3211_v47, 2  ;;  %v1655_v33 = vor.u32 4788187, %v1654_v28  ;;  %v699_v24 = vsel %vm697_vm3, %v698_v20, %v3250_v2  ;;  %v1669_v35 = vadd.s32 3, %v1665_v19 }
 0x17a   : > { %v2568_v45 = vpop.eup %2567  ;;  %v844_v46 = vxor.u32 2147483648, %v2566_v32  ;;  %v700_v51 = vadd.s32 %v699_v24, %v695_v22  ;;  %v1487_v36 = vsub.s32 32, %v1486_v14  ;;  %v1658_v50 = vcvt.s32.f32 %v1651_v29 }
 0x17b   : > { %v841_v37 = vxor.u32 2147483648, %v2568_v45  ;;  %v1656_v40 = vand.u32 2147483647, %v1655_v33  ;;  %v1480_v21 = vor.u32 8388608, %v1479_v39  ;;  %v3282_v54 = vshrl.u32 %v1484_v30, 5 }
 0x17c   : > { %v845_v0 = vsel %vm843_vm6, %v844_v46, %v2568_v45  ;;  %v701_v60 = vadd.s32 536870912, %v700_v51  ;;  %v1490_v48 = vshrl.u32 %v2656_v57, %v1487_v36  ;;  %v1489_v23 = vshll.u32 %v2655_v53, %v1486_v14 }
 0x17d   : > { %v842_v9 = vsel %vm840_vm5, %v2566_v32, %v841_v37  ;;  %v1659_v58 = vmul.f32 %v1658_v50, %v1656_v40  ;;  %v1493_v10 = vshrl.u32 %v2657_v59, %v1487_v36  ;;  %v1492_v8 = vshll.u32 %v2656_v57, %v1486_v14 }
 0x17e   : > { %v846_v17 = vsel %vm839_vm2, %v842_v9, %v845_v0  ;;  %v3291_v12 = vshrl.u32 %v701_v60, 30  ;;  %v1496_v2 = vshrl.u32 %v2658_v61, %v1487_v36  ;;  %v1491_v62 = vor.u32 %v1490_v48, %v1489_v23 }
 0x17f   : > { %v847_v15 = vsel %vm836_vm1, nan, %v846_v17  ;;  %v1660_v56 = vxor.u32 2147483648, %v1659_v58  ;;  %v1495_v11 = vshll.u32 %v2657_v59, %v1486_v14  ;;  %v1498_v47 = vshll.u32 %v2658_v61, %v1486_v14 }
 0x180   : > { %v2381_v44 = vpack.c.bf16 %v847_v15, %v847_v15  ;;  %v703_v18 = vshll.u32 %v3291_v12, 30  ;;  %v1499_v38 = vshrl.u32 %v2659_v63, %v1487_v36  ;;  %v1494_v25 = vor.u32 %v1493_v10, %v1492_v8 }
 0x181   : > { %v1661_v4 = vsel %vm1578_vm9, %v1660_v56, %v1659_v58  ;;  %v1501_v1 = vshll.u32 %v2659_v63, %v1486_v14  ;;  %v1502_v34 = vshrl.u32 %v2660_v6, %v1487_v36  ;;  %v1497_v42 = vor.u32 %v1496_v2, %v1495_v11 }
 0x182   : > { %2164 = vst.msk [vmem:[%s3016_s6 + $0xc] sm:$0xf] %vm2160_vm4, %v2381_v44  ;;  %v1664_v27 = vsel %vm3243_vm12, %v3027_v16, %v1661_v4  ;;  %v3310_v49 = vsub.s32 %v700_v51, %v703_v18  ;;  %v1500_v43 = vor.u32 %v1499_v38, %v1498_v47  ;;  %v955_v19 = vand.u32 2139095040, %v3271_v7 }
 0x183   : > { %2569 = vcosq.f32 %v1664_v27  ;;  %v1503_v20 = vor.u32 %v1502_v34, %v1501_v1  ;;  %v3313_v29 = vand.u32 3, %v1669_v35  ;;  %v1520_v39 = vshll.u32 %v1480_v21, 8 }
 0x184   : > { %2571 = vsinq.f32 %v1664_v27  ;;  %v706_v28 = vsub.s32 0, %v3310_v49  ;;  %v1488_v30 = vshrl.u32 %v2655_v53, %v1487_v36  ;;  %vm1504_vm7 = vcmp.lt.s32.totalorder %v3282_v54, 1 }
 0x185   : > { %vm1506_vm8 = vcmp.lt.s32.totalorder %v3282_v54, 3  ;;  %vm1507_vm9 = vcmp.lt.s32.totalorder %v3282_v54, 4  ;;  %v1512_v14 = vsel %vm1504_vm7, %v1491_v62, %v1494_v25  ;;  %v1516_v24 = vsel %vm1504_vm7, %v1494_v25, %v1497_v42 }
 0x186   : > { %v2305_v41 = vmin.u32 %v706_v28, %v3310_v49  ;;  %v1509_v22 = vsel %vm1507_vm9, %v1497_v42, 2102212464  ;;  %v1513_v32 = vsel %vm1507_vm9, %v1500_v43, 920167782  ;;  %v1517_v45 = vsel %vm1507_vm9, %v1503_v20, 1326507024 }
 0x187   : > { %v1514_v33 = vsel %vm1506_vm8, %v1497_v42, %v1513_v32  ;;  %v956_v46 = vshrl.u32 %v955_v19, 23  ;;  %v726_v51 = vsub.s32 4, %v3291_v12  ;;  %vm1505_vm10 = vcmp.lt.s32.totalorder %v3282_v54, 2 }
 0x188   : > { %v708_v35 = vclz %v2305_v41  ;;  %v1508_v36 = vsel %vm1504_vm7, %v1488_v30, %v1491_v62  ;;  %v1510_v37 = vsel %vm1506_vm8, %v1494_v25, %v1509_v22  ;;  %v1515_v40 = vsel %vm1505_vm10, %v1512_v14, %v1514_v33 }
 0x189   : > { %v1518_v50 = vsel %vm1506_vm8, %v1500_v43, %v1517_v45  ;;  %v2316_v21 = vadd.s32 4294967169, %v956_v46  ;;  %v3329_v48 = vmul.u32.u64.low %v1520_v39, %v1515_v40  ;;  %v3330_v9 = vmul.u32.u64.high %v1520_v39, %v1515_v40, %v3329_v48 }
 0x18a   : > { %v2306_v0 = vadd.s32 4294967294, %v708_v35  ;;  %v1519_v60 = vsel %vm1505_vm10, %v1516_v24, %v1518_v50  ;;  %vm3335_vm12 = vcmp.le.f32.partialorder %v640_v52, 0.7853982  ;;  %vm642_vm13 = vcmp.lt.s32.totalorder %v3138_v5, 0 }
 0x18b   : > { %v3339_v23 = vmul.u32.u64.low %v1520_v39, %v1519_v60  ;;  %v3340_v10 = vmul.u32.u64.high %v1520_v39, %v1519_v60, %v3339_v23  ;;  %v1511_v54 = vsel %vm1505_vm10, %v1508_v36, %v1510_v37  ;;  %v962_v17 = vadd.s32 1, %v2316_v21 }
 0x18c   : > { %vm2307_vm11 = vcmp.lt.s32.totalorder %v2306_v0, 0  ;;  %vm1672_vm14 = vcmp.eq.s32.totalorder %v3313_v29, 0  ;;  %v696_v8 = vadd.s32 %v3249_v13, %v3263_v26  ;;  %v952_v15 = vand.u32 2147483647, %v3271_v7  ;;  %v2433_v23 = vpop.f32.mrf.mxu1 }
 0x18d   : > { %v711_v2 = vsel %vm2307_vm11, 0, %v2306_v0  ;;  %v727_v62 = vsel %vm642_vm13, %v726_v51, %v3291_v12  ;;  %v1530_v11 = vadd.s32 1, %v3330_v9  ;;  %v1527_v18 = vmul.u32 %v1520_v39, %v1511_v54 }
 0x18e   : > { %v712_v52 = vsub.s32 32, %v711_v2  ;;  %v716_v56 = vsub.s32 4294967266, %v711_v2  ;;  %v713_v44 = vshll.u32 %v3310_v49, %v711_v2  ;;  %vm1529_vm15 = vc.u32 %v3340_v10, %v3329_v48 }
 0x18f   : > { %vm963_vm1 = vcmp.gt.s32.totalorder %v962_v17, 0  ;;  %v1531_v38 = vsel %vm1529_vm15, %v1530_v11, %v3330_v9  ;;  %vm1675_vm0 = vcmp.eq.s32.totalorder %v3313_v29, 2  ;;  %v729_v43 = vsel %vm3335_vm12, 0, %v727_v62 }
 0x190   : > { %v2570_v47 = vpop.eup %2569  ;;  %v714_v13 = vshrl.u32 %v696_v8, %v712_v52  ;;  %v717_v26 = vadd.s32 127, %v716_v56  ;;  %v964_v4 = vsel %vm963_vm1, %v962_v17, 0  ;;  %v1532_v12 = vadd.s32 %v1531_v38, %v1527_v18 }
 0x191   : > { %v2572_v25 = vpop.eup %2571  ;;  %v1676_v1 = vxor.u32 2147483648, %v2570_v47  ;;  %v966_v34 = vand.u32 31, %v964_v4  ;;  %v959_v28 = vand.u32 8388607, %v952_v15  ;;  %vm1671_vm2 = vcmp.lt.s32.totalorder %v3313_v29, 2 }
 0x192   : > { %v1673_v27 = vxor.u32 2147483648, %v2572_v25  ;;  %v715_v42 = vor.u32 %v714_v13, %v713_v44  ;;  %v718_v49 = vshll.u32 %v717_v26, 23  ;;  %v1533_v19 = vadd.s32 536870912, %v1532_v12 }
 0x193   : > { %v1677_v20 = vsel %vm1675_vm0, %v1676_v1, %v2572_v25  ;;  %v967_v39 = vsub.s32 32, %v966_v34  ;;  %vm1668_vm3 = vweird.f32 %v3027_v16  ;;  %v3364_v14 = vadd.s32 3, %v729_v43 }
 0x194   : > { %v1674_v30 = vsel %vm1672_vm14, %v2570_v47, %v1673_v27  ;;  %v719_v41 = vor.u32 4788187, %v718_v49  ;;  %v3366_v32 = vshrl.u32 %v1533_v19, 30  ;;  %v722_v45 = vcvt.s32.f32 %v715_v42 }
 0x195   : > { %v1678_v22 = vsel %vm1671_vm2, %v1674_v30, %v1677_v20  ;;  %v970_v46 = vshrl.u32 %v2656_v57, %v967_v39  ;;  %v960_v36 = vor.u32 8388608, %v959_v28  ;;  %v973_v29 = vshrl.u32 %v2657_v59, %v967_v39 }
 0x196   : > { %v1679_v33 = vsel %vm1668_vm3, nan, %v1678_v22  ;;  %v720_v24 = vand.u32 2147483647, %v719_v41  ;;  %v1535_v51 = vshll.u32 %v3366_v32, 30  ;;  %v965_v40 = vshrl.u32 %v964_v4, 5 }
 0x197   : > { %v2389_v35 = vpack.c.bf16 %v1679_v33, %v1679_v33  ;;  %v969_v16 = vshll.u32 %v2655_v53, %v966_v34  ;;  %v976_v50 = vshrl.u32 %v2658_v61, %v967_v39  ;;  %v972_v0 = vshll.u32 %v2656_v57, %v966_v34  ;;  %v373_v33 = vpop.f32.mrf.mxu0 }
 0x198   : > { %v723_v37 = vmul.f32 %v722_v45, %v720_v24  ;;  %v3375_v21 = vsub.s32 %v1532_v12, %v1535_v51  ;;  %v975_v60 = vshll.u32 %v2657_v59, %v966_v34  ;;  %v979_v9 = vshrl.u32 %v2659_v63, %v967_v39 }
 0x199   : > { %2172 = vst.msk [vmem:[%s3016_s6 + $0x2c] sm:$0xf] %vm2160_vm4, %v2389_v35  ;;  %v971_v17 = vor.u32 %v970_v46, %v969_v16  ;;  %v978_v8 = vshll.u32 %v2658_v61, %v966_v34  ;;  %v982_v2 = vshrl.u32 %v2660_v6, %v967_v39  ;;  %vm1474_vm5 = vcmp.lt.s32.totalorder %v3209_v3, 0 }
 0x19a   : > { %v724_v54 = vxor.u32 2147483648, %v723_v37  ;;  %v1538_v52 = vsub.s32 0, %v3375_v21  ;;  %v974_v56 = vor.u32 %v973_v29, %v972_v0  ;;  %v977_v62 = vor.u32 %v976_v50, %v975_v60 }
 0x19b   : > { %v981_v11 = vshll.u32 %v2659_v63, %v966_v34  ;;  %v1528_v18 = vadd.s32 %v3329_v48, %v3340_v10  ;;  %v980_v47 = vor.u32 %v979_v9, %v978_v8  ;;  %v3390_v13 = vadd.f32 %v3206_v55, %v2433_v23 }
 0x19c   : > { %v725_v44 = vsel %vm642_vm13, %v724_v54, %v723_v37  ;;  %v2337_v38 = vmin.u32 %v1538_v52, %v3375_v21  ;;  %v1000_v25 = vshll.u32 %v960_v36, 8  ;;  %v968_v1 = vshrl.u32 %v2655_v53, %v967_v39 }
 0x19d   : > { %v728_v26 = vsel %vm3335_vm12, %v3138_v5, %v725_v44  ;;  %v983_v4 = vor.u32 %v982_v2, %v981_v11  ;;  %vm984_vm6 = vcmp.lt.s32.totalorder %v965_v40, 1  ;;  %vm987_vm7 = vcmp.lt.s32.totalorder %v965_v40, 4 }
 0x19e   : > { %2573 = vcosq.f32 %v728_v26  ;;  %vm3399_vm8 = vcmp.le.f32.partialorder %v1472_v31, 0.7853982  ;;  %v1540_v10 = vclz %v2337_v38  ;;  %v989_v12 = vsel %vm987_vm7, %v977_v62, 2102212464 }
 0x19f   : > { %2575 = vsinq.f32 %v728_v26  ;;  %v992_v58 = vsel %vm984_vm6, %v971_v17, %v974_v56  ;;  %v1558_v34 = vsub.s32 4, %v3366_v32  ;;  %vm986_vm9 = vcmp.lt.s32.totalorder %v965_v40, 3 }
 0x1a0   : > { %v993_v27 = vsel %vm987_vm7, %v980_v47, 920167782  ;;  %v996_v42 = vsel %vm984_vm6, %v974_v56, %v977_v62  ;;  %v2338_v49 = vadd.s32 4294967294, %v1540_v10  ;;  %vm985_vm10 = vcmp.lt.s32.totalorder %v965_v40, 2 }
 0x1a1   : > { %v994_v43 = vsel %vm986_vm9, %v977_v62, %v993_v27  ;;  %v997_v20 = vsel %vm987_vm7, %v983_v4, 1326507024  ;;  %v988_v19 = vsel %vm984_vm6, %v968_v1, %v971_v17  ;;  %v990_v28 = vsel %vm986_vm9, %v974_v56, %v989_v12  ;;  %v413_v12 = vpop.f32.mrf.mxu1 }
 0x1a2   : > { %v995_v39 = vsel %vm985_vm10, %v992_v58, %v994_v43  ;;  %v998_v31 = vsel %vm986_vm9, %v980_v47, %v997_v20  ;;  %vm2339_vm12 = vcmp.lt.s32.totalorder %v2338_v49, 0  ;;  %v1559_v45 = vsel %vm1474_vm5, %v1558_v34, %v3366_v32 }
 0x1a3   : > { %v999_v30 = vsel %vm985_vm10, %v996_v42, %v998_v31  ;;  %v3406_v41 = vmul.u32.u64.low %v1000_v25, %v995_v39  ;;  %v3407_v22 = vmul.u32.u64.high %v1000_v25, %v995_v39, %v3406_v41  ;;  %v1543_v24 = vsel %vm2339_vm12, 0, %v2338_v49 }
 0x1a4   : > { %v3412_v46 = vmul.u32.u64.low %v1000_v25, %v999_v30  ;;  %v3413_v35 = vmul.u32.u64.high %v1000_v25, %v999_v30, %v3412_v46  ;;  %v1544_v51 = vsub.s32 32, %v1543_v24  ;;  %v1548_v36 = vsub.s32 4294967266, %v1543_v24 }
 0x1a5   : > { %v991_v29 = vsel %vm985_vm10, %v988_v19, %v990_v28  ;;  %v1787_v37 = vand.u32 2139095040, %v3390_v13  ;;  %v734_v16 = vand.u32 3, %v3364_v14  ;;  %v1545_v50 = vshll.u32 %v3375_v21, %v1543_v24 }
 0x1a6   : > { %v1784_v0 = vand.u32 2147483647, %v3390_v13  ;;  %v3421_v60 = vadd.f32 %v3206_v55, %v373_v33  ;;  %v1546_v9 = vshrl.u32 %v1528_v18, %v1544_v51  ;;  %v1549_v32 = vadd.s32 127, %v1548_v36 }
 0x1a7   : > { %v1010_v23 = vadd.s32 1, %v3407_v22  ;;  %v1788_v54 = vshrl.u32 %v1787_v37, 23  ;;  %v1561_v40 = vsel %vm3399_vm8, 0, %v1559_v45  ;;  %v1007_v17 = vmul.u32 %v1000_v25, %v991_v29 }
 0x1a8   : > { %vm1009_vm13 = vc.u32 %v3413_v35, %v3406_v41  ;;  %v1547_v8 = vor.u32 %v1546_v9, %v1545_v50  ;;  %v1550_v14 = vshll.u32 %v1549_v32, 23  ;;  %vm735_vm11 = vcmp.lt.s32.totalorder %v734_v16, 2 }
 0x1a9   : > { %v1011_v21 = vsel %vm1009_vm13, %v1010_v23, %v3407_v22  ;;  %v2348_v2 = vadd.s32 4294967169, %v1788_v54  ;;  %v1791_v56 = vand.u32 8388607, %v1784_v0  ;;  %vm736_vm14 = vcmp.eq.s32.totalorder %v734_v16, 0 }
 0x1aa   : > { %v1012_v52 = vadd.s32 %v1011_v21, %v1007_v17  ;;  %v1551_v11 = vor.u32 4788187, %v1550_v14  ;;  %v851_v18 = vand.u32 2139095040, %v3421_v60  ;;  %vm739_vm15 = vcmp.eq.s32.totalorder %v734_v16, 2 }
 0x1ab   : > { %v2574_v62 = vpop.eup %2573  ;;  %v1794_v44 = vadd.s32 1, %v2348_v2  ;;  %v1565_v38 = vadd.s32 3, %v1561_v40  ;;  %v1554_v10 = vcvt.s32.f32 %v1547_v8  ;;  %v1792_v27 = vor.u32 8388608, %v1791_v56 }
 0x1ac   : > { %v2576_v47 = vpop.eup %2575  ;;  %v740_v26 = vxor.u32 2147483648, %v2574_v62  ;;  %v1013_v4 = vadd.s32 536870912, %v1012_v52  ;;  %v1552_v1 = vand.u32 2147483647, %v1551_v11  ;;  %v852_v19 = vshrl.u32 %v851_v18, 23 }
 0x1ad   : > { %v737_v25 = vxor.u32 2147483648, %v2576_v47  ;;  %vm1795_vm1 = vcmp.gt.s32.totalorder %v1794_v44, 0  ;;  %vm732_vm0 = vweird.f32 %v3138_v5  ;;  %v3438_v31 = vadd.f32 %v3206_v55, %v413_v12 }
 0x1ae   : > { %v741_v58 = vsel %vm739_vm15, %v740_v26, %v2576_v47  ;;  %v3431_v34 = vshrl.u32 %v1013_v4, 30  ;;  %v1796_v42 = vsel %vm1795_vm1, %v1794_v44, 0  ;;  %v1555_v43 = vmul.f32 %v1554_v10, %v1552_v1 }
 0x1af   : > { %v738_v49 = vsel %vm736_vm14, %v2574_v62, %v737_v25  ;;  %v1798_v20 = vand.u32 31, %v1796_v42  ;;  %v3440_v33 = vand.u32 3, %v1565_v38  ;;  %v1008_v46 = vadd.s32 %v3406_v41, %v3413_v35 }
 0x1b0   : > { %v742_v28 = vsel %vm735_vm11, %v738_v49, %v741_v58  ;;  %v1015_v39 = vshll.u32 %v3431_v34, 30  ;;  %v1556_v22 = vxor.u32 2147483648, %v1555_v43  ;;  %v848_v5 = vand.u32 2147483647, %v3421_v60 }
 0x1b1   : > { %v743_v30 = vsel %vm732_vm0, nan, %v742_v28  ;;  %v1799_v24 = vsub.s32 32, %v1798_v20  ;;  %v3449_v37 = vshll.u32 %v1792_v27, 8  ;;  %v2312_v16 = vadd.s32 4294967169, %v852_v19 }
 0x1b2   : > { %v2380_v45 = vpack.c.bf16 %v743_v30, %v743_v30  ;;  %v3443_v51 = vsub.s32 %v1012_v52, %v1015_v39  ;;  %v1557_v36 = vsel %vm1474_vm5, %v1556_v22, %v1555_v43  ;;  %v1801_v35 = vshll.u32 %v2655_v53, %v1798_v20 }
 0x1b3   : > { %v1802_v29 = vshrl.u32 %v2656_v57, %v1799_v24  ;;  %v1560_v50 = vsel %vm3399_vm8, %v3209_v3, %v1557_v36  ;;  %v1805_v9 = vshrl.u32 %v2657_v59, %v1799_v24  ;;  %v1804_v32 = vshll.u32 %v2656_v57, %v1798_v20 }
 0x1b4   : > { %2163 = vst.msk [vmem:[%s3016_s6 + $0x8] sm:$0xf] %vm2160_vm4, %v2380_v45  ;;  %v1018_v41 = vsub.s32 0, %v3443_v51  ;;  %2577 = vcosq.f32 %v1560_v50  ;;  %v1807_v23 = vshll.u32 %v2657_v59, %v1798_v20  ;;  %v1808_v54 = vshrl.u32 %v2658_v61, %v1799_v24 }
 0x1b5   : > { %2579 = vsinq.f32 %v1560_v50  ;;  %v1797_v17 = vshrl.u32 %v1796_v42, 5  ;;  %v1803_v8 = vor.u32 %v1802_v29, %v1801_v35  ;;  %v1806_v48 = vor.u32 %v1805_v9, %v1804_v32 }
 0x1b6   : > { %v2317_v40 = vmin.u32 %v1018_v41, %v3443_v51  ;;  %v1809_v14 = vor.u32 %v1808_v54, %v1807_v23  ;;  %v1810_v21 = vshll.u32 %v2658_v61, %v1798_v20  ;;  %v1811_v2 = vshrl.u32 %v2659_v63, %v1799_v24 }
 0x1b7   : > { %v1038_v56 = vsub.s32 4, %v3431_v34  ;;  %v3468_v62 = vand.u32 8388607, %v848_v5  ;;  %v858_v11 = vadd.s32 1, %v2312_v16  ;;  %v1800_v44 = vshrl.u32 %v2655_v53, %v1799_v24 }
 0x1b8   : > { %v1020_v52 = vclz %v2317_v40  ;;  %v1812_v18 = vor.u32 %v1811_v2, %v1810_v21  ;;  %v1813_v47 = vshll.u32 %v2659_v63, %v1798_v20  ;;  %v1814_v26 = vshrl.u32 %v2660_v6, %v1799_v24 }
 0x1b9   : > { %vm1816_vm2 = vcmp.lt.s32.totalorder %v1797_v17, 1  ;;  %vm1818_vm3 = vcmp.lt.s32.totalorder %v1797_v17, 3  ;;  %vm1819_vm5 = vcmp.lt.s32.totalorder %v1797_v17, 4  ;;  %vm954_vm6 = vcmp.lt.s32.totalorder %v3271_v7, 0 }
 0x1ba   : > { %v2318_v38 = vadd.s32 4294967294, %v1020_v52  ;;  %v1815_v4 = vor.u32 %v1814_v26, %v1813_v47  ;;  %v1821_v25 = vsel %vm1819_vm5, %v1809_v14, 2102212464  ;;  %v1824_v1 = vsel %vm1816_vm2, %v1803_v8, %v1806_v48 }
 0x1bb   : > { %v1825_v10 = vsel %vm1819_vm5, %v1812_v18, 920167782  ;;  %vm1817_vm8 = vcmp.lt.s32.totalorder %v1797_v17, 2  ;;  %v1828_v58 = vsel %vm1816_vm2, %v1806_v48, %v1809_v14  ;;  %v1820_v42 = vsel %vm1816_vm2, %v1800_v44, %v1803_v8 }
 0x1bc   : > { %vm2319_vm7 = vcmp.lt.s32.totalorder %v2318_v38, 0  ;;  %v1826_v12 = vsel %vm1818_vm3, %v1809_v14, %v1825_v10  ;;  %v1829_v43 = vsel %vm1819_vm5, %v1815_v4, 1326507024  ;;  %vm3478_vm9 = vcmp.le.f32.partialorder %v952_v15, 0.7853982 }
 0x1bd   : > { %v1023_v27 = vsel %vm2319_vm7, 0, %v2318_v38  ;;  %v1827_v49 = vsel %vm1817_vm8, %v1824_v1, %v1826_v12  ;;  %v1822_v39 = vsel %vm1818_vm3, %v1806_v48, %v1821_v25  ;;  %v1830_v30 = vsel %vm1818_vm3, %v1812_v18, %v1829_v43 }
 0x1be   : > { %v1024_v19 = vsub.s32 32, %v1023_v27  ;;  %v1028_v28 = vsub.s32 4294967266, %v1023_v27  ;;  %vm1564_vm10 = vweird.f32 %v3209_v3  ;;  %v1025_v22 = vshll.u32 %v3443_v51, %v1023_v27 }
 0x1bf   : > { %v1831_v24 = vsel %vm1817_vm8, %v1828_v58, %v1830_v30  ;;  %v3488_v45 = vmul.u32.u64.low %v3449_v37, %v1827_v49  ;;  %v3489_v36 = vmul.u32.u64.high %v3449_v37, %v1827_v49, %v3488_v45  ;;  %vm1567_vm12 = vcmp.lt.s32.totalorder %v3440_v33, 2 }
 0x1c0   : > { %v1026_v15 = vshrl.u32 %v1008_v46, %v1024_v19  ;;  %v1029_v29 = vadd.s32 127, %v1028_v28  ;;  %v3493_v16 = vmul.u32.u64.low %v3449_v37, %v1831_v24  ;;  %v3494_v50 = vmul.u32.u64.high %v3449_v37, %v1831_v24, %v3493_v16 }
 0x1c1   : > { %vm1568_vm13 = vcmp.eq.s32.totalorder %v3440_v33, 0  ;;  %vm1571_vm11 = vcmp.eq.s32.totalorder %v3440_v33, 2  ;;  %vm859_vm14 = vcmp.gt.s32.totalorder %v858_v11, 0  ;;  %v2578_v51 = vpop.eup %2577  ;;  %v1823_v9 = vsel %vm1817_vm8, %v1820_v42, %v1822_v39 }
 0x1c2   : > { %v1027_v41 = vor.u32 %v1026_v15, %v1025_v22  ;;  %v1030_v35 = vshll.u32 %v1029_v29, 23  ;;  %v860_v32 = vsel %vm859_vm14, %v858_v11, 0  ;;  %v2580_v23 = vpop.eup %2579  ;;  %v1572_v46 = vxor.u32 2147483648, %v2578_v51 }
 0x1c3   : > { %v1842_v54 = vadd.s32 1, %v3489_v36  ;;  %v856_v40 = vor.u32 8388608, %v3468_v62  ;;  %v862_v8 = vand.u32 31, %v860_v32  ;;  %v1569_v48 = vxor.u32 2147483648, %v2580_v23 }
 0x1c4   : > { %v1031_v14 = vor.u32 4788187, %v1030_v35  ;;  %v1039_v21 = vsel %vm954_vm6, %v1038_v56, %v3431_v34  ;;  %v1680_v2 = vand.u32 2147483647, %v3438_v31  ;;  %v1573_v17 = vsel %vm1571_vm11, %v1572_v46, %v2580_v23 }
 0x1c5   : > { %v1839_v52 = vmul.u32 %v3449_v37, %v1823_v9  ;;  %vm1841_vm15 = vc.u32 %v3494_v50, %v3488_v45  ;;  %v863_v11 = vsub.s32 32, %v862_v8  ;;  %v1570_v62 = vsel %vm1568_vm13, %v2578_v51, %v1569_v48 }
 0x1c6   : > { %v1032_v44 = vand.u32 2147483647, %v1031_v14  ;;  %v1034_v18 = vcvt.s32.f32 %v1027_v41  ;;  %v1843_v47 = vsel %vm1841_vm15, %v1842_v54, %v3489_v36  ;;  %v1574_v34 = vsel %vm1567_vm12, %v1570_v62, %v1573_v17 }
 0x1c7   : > { %v1041_v56 = vsel %vm3478_vm9, 0, %v1039_v21  ;;  %v1844_v26 = vadd.s32 %v1843_v47, %v1839_v52  ;;  %v866_v37 = vshrl.u32 %v2656_v57, %v863_v11  ;;  %v1575_v38 = vsel %vm1564_vm10, nan, %v1574_v34 }
 0x1c8   : > { %v1035_v4 = vmul.f32 %v1034_v18, %v1032_v44  ;;  %v861_v25 = vshrl.u32 %v860_v32, 5  ;;  %v869_v1 = vshrl.u32 %v2657_v59, %v863_v11  ;;  %v2388_v10 = vpack.c.bf16 %v1575_v38, %v1575_v38 }
 0x1c9   : > { %v1845_v12 = vadd.s32 536870912, %v1844_v26  ;;  %v865_v58 = vshll.u32 %v2655_v53, %v862_v8  ;;  %v872_v33 = vshrl.u32 %v2658_v61, %v863_v11  ;;  %v868_v42 = vshll.u32 %v2656_v57, %v862_v8 }
 0x1ca   : > { %v1036_v27 = vxor.u32 2147483648, %v1035_v4  ;;  %v874_v49 = vshll.u32 %v2658_v61, %v862_v8  ;;  %v875_v43 = vshrl.u32 %v2659_v63, %v863_v11  ;;  %2171 = vst.msk [vmem:[%s3016_s6 + $0x28] sm:$0xf] %vm2160_vm4, %v2388_v10  ;;  %v871_v28 = vshll.u32 %v2657_v59, %v862_v8 }
 0x1cb   : > { %v1846_v3 = vshrl.u32 %v1845_v12, 30  ;;  %v867_v19 = vor.u32 %v866_v37, %v865_v58  ;;  %v878_v39 = vshrl.u32 %v2660_v6, %v863_v11  ;;  %v870_v22 = vor.u32 %v869_v1, %v868_v42 }
 0x1cc   : > { %v1037_v30 = vsel %vm954_vm6, %v1036_v27, %v1035_v4  ;;  %v876_v24 = vor.u32 %v875_v43, %v874_v49  ;;  %v877_v36 = vshll.u32 %v2659_v63, %v862_v8  ;;  %v1045_v29 = vadd.s32 3, %v1041_v56 }
 0x1cd   : > { %v1040_v15 = vsel %vm3478_vm9, %v3271_v7, %v1037_v30  ;;  %v1847_v16 = vshll.u32 %v1846_v3, 30  ;;  %v873_v51 = vor.u32 %v872_v33, %v871_v28  ;;  %v896_v35 = vshll.u32 %v856_v40, 8 }
 0x1ce   : > { %2581 = vcosq.f32 %v1040_v15  ;;  %v879_v41 = vor.u32 %v878_v39, %v877_v36  ;;  %v1683_v9 = vand.u32 2139095040, %v3438_v31  ;;  %vm880_vm1 = vcmp.lt.s32.totalorder %v861_v25, 1 }
 0x1cf   : > { %2583 = vsinq.f32 %v1040_v15  ;;  %v3538_v32 = vsub.s32 %v1844_v26, %v1847_v16  ;;  %vm883_vm0 = vcmp.lt.s32.totalorder %v861_v25, 4  ;;  %v864_v23 = vshrl.u32 %v2655_v53, %v863_v11 }
 0x1d0   : > { %vm882_vm2 = vcmp.lt.s32.totalorder %v861_v25, 3  ;;  %v888_v46 = vsel %vm880_vm1, %v867_v19, %v870_v22  ;;  %v889_v54 = vsel %vm883_vm0, %v876_v24, 920167782  ;;  %vm881_vm3 = vcmp.lt.s32.totalorder %v861_v25, 2 }
 0x1d1   : > { %v1850_v20 = vsub.s32 0, %v3538_v32  ;;  %v885_v8 = vsel %vm883_vm0, %v873_v51, 2102212464  ;;  %v890_v48 = vsel %vm882_vm2, %v873_v51, %v889_v54  ;;  %v1870_v14 = vsub.s32 4, %v1846_v3 }
 0x1d2   : > { %v891_v40 = vsel %vm881_vm3, %v888_v46, %v890_v48  ;;  %v892_v21 = vsel %vm880_vm1, %v870_v22, %v873_v51  ;;  %v893_v17 = vsel %vm883_vm0, %v879_v41, 1326507024  ;;  %v884_v62 = vsel %vm880_vm1, %v864_v23, %v867_v19 }
 0x1d3   : > { %v2349_v52 = vmin.u32 %v1850_v20, %v3538_v32  ;;  %v894_v44 = vsel %vm882_vm2, %v876_v24, %v893_v17  ;;  %v1684_v18 = vshrl.u32 %v1683_v9, 23  ;;  %v886_v47 = vsel %vm882_vm2, %v870_v22, %v885_v8  ;;  %v2424_v22 = vpop.f32.mrf.mxu0 }
 0x1d4   : > { %v895_v11 = vsel %vm881_vm3, %v892_v21, %v894_v44  ;;  %v3545_v34 = vmul.u32.u64.low %v896_v35, %v891_v40  ;;  %v3546_v56 = vmul.u32.u64.high %v896_v35, %v891_v40, %v3545_v34  ;;  %v1046_v26 = vand.u32 3, %v1045_v29 }
 0x1d5   : > { %v1852_v37 = vclz %v2349_v52  ;;  %v3549_v38 = vmul.u32.u64.low %v896_v35, %v895_v11  ;;  %v3550_v4 = vmul.u32.u64.high %v896_v35, %v895_v11, %v3549_v38  ;;  %v2344_v1 = vadd.s32 4294967169, %v1684_v18 }
 0x1d6   : > { %vm3554_vm5 = vcmp.le.f32.partialorder %v1784_v0, 0.7853982  ;;  %vm1786_vm6 = vcmp.lt.s32.totalorder %v3390_v13, 0  ;;  %v887_v58 = vsel %vm881_vm3, %v884_v62, %v886_v47  ;;  %v906_v27 = vadd.s32 1, %v3546_v56 }
 0x1d7   : > { %v2350_v12 = vadd.s32 4294967294, %v1852_v37  ;;  %v1871_v33 = vsel %vm1786_vm6, %v1870_v14, %v1846_v3  ;;  %v1687_v42 = vand.u32 8388607, %v1680_v2  ;;  %v1690_v49 = vadd.s32 1, %v2344_v1 }
 0x1d8   : > { %vm1048_vm7 = vcmp.eq.s32.totalorder %v1046_v26, 0  ;;  %vm1051_vm8 = vcmp.eq.s32.totalorder %v1046_v26, 2  ;;  %v1840_v0 = vadd.s32 %v3488_v45, %v3494_v50  ;;  %v903_v19 = vmul.u32 %v896_v35, %v887_v58 }
 0x1d9   : > { %vm2351_vm9 = vcmp.lt.s32.totalorder %v2350_v12, 0  ;;  %vm905_vm10 = vc.u32 %v3550_v4, %v3545_v34  ;;  %vm1691_vm12 = vcmp.gt.s32.totalorder %v1690_v49, 0  ;;  %v1873_v39 = vsel %vm3554_vm5, 0, %v1871_v33 }
 0x1da   : > { %v1855_v43 = vsel %vm2351_vm9, 0, %v2350_v12  ;;  %v907_v30 = vsel %vm905_vm10, %v906_v27, %v3546_v56  ;;  %v1688_v45 = vor.u32 8388608, %v1687_v42  ;;  %v1692_v50 = vsel %vm1691_vm12, %v1690_v49, 0 }
 0x1db   : > { %v2582_v25 = vpop.eup %2581  ;;  %v1856_v3 = vsub.s32 32, %v1855_v43  ;;  %v1860_v28 = vsub.s32 4294967266, %v1855_v43  ;;  %v908_v15 = vadd.s32 %v907_v30, %v903_v19  ;;  %v1857_v16 = vshll.u32 %v3538_v32, %v1855_v43 }
 0x1dc   : > { %v2584_v24 = vpop.eup %2583  ;;  %v1052_v36 = vxor.u32 2147483648, %v2582_v25  ;;  %v1694_v23 = vand.u32 31, %v1692_v50  ;;  %v3575_v46 = vadd.f32 %v3206_v55, %v2424_v22  ;;  %vm1047_vm13 = vcmp.lt.s32.totalorder %v1046_v26, 2 }
 0x1dd   : > { %v1049_v29 = vxor.u32 2147483648, %v2584_v24  ;;  %v1858_v51 = vshrl.u32 %v1840_v0, %v1856_v3  ;;  %v1861_v41 = vadd.s32 127, %v1860_v28  ;;  %v909_v9 = vadd.s32 536870912, %v908_v15 }
 0x1de   : > { %v1053_v35 = vsel %vm1051_vm8, %v1052_v36, %v2584_v24  ;;  %vm1044_vm11 = vweird.f32 %v3271_v7  ;;  %v1695_v32 = vsub.s32 32, %v1694_v23  ;;  %v3579_v17 = vadd.s32 3, %v1873_v39 }
 0x1df   : > { %v1050_v54 = vsel %vm1048_vm7, %v2582_v25, %v1049_v29  ;;  %v1859_v20 = vor.u32 %v1858_v51, %v1857_v16  ;;  %v1862_v8 = vshll.u32 %v1861_v41, 23  ;;  %v910_v14 = vshrl.u32 %v909_v9, 30 }
 0x1e0   : > { %v1054_v48 = vsel %vm1047_vm13, %v1050_v54, %v1053_v35  ;;  %vm850_vm14 = vcmp.lt.s32.totalorder %v3421_v60, 0  ;;  %v3582_v52 = vshll.u32 %v1688_v45, 8  ;;  %v1693_v44 = vshrl.u32 %v1692_v50, 5 }
 0x1e1   : > { %v1055_v40 = vsel %vm1044_vm11, nan, %v1054_v48  ;;  %v1863_v21 = vor.u32 4788187, %v1862_v8  ;;  %v911_v62 = vshll.u32 %v910_v14, 30  ;;  %v1163_v18 = vand.u32 2139095040, %v3575_v46 }
 0x1e2   : > { %v2383_v55 = vpack.c.bf16 %v1055_v40, %v1055_v40  ;;  %v1866_v11 = vcvt.s32.f32 %v1859_v20  ;;  %v1698_v7 = vshrl.u32 %v2656_v57, %v1695_v32  ;;  %v1701_v56 = vshrl.u32 %v2657_v59, %v1695_v32 }
 0x1e3   : > { %v1864_v47 = vand.u32 2147483647, %v1863_v21  ;;  %v3589_v26 = vsub.s32 %v908_v15, %v911_v62  ;;  %v1697_v37 = vshll.u32 %v2655_v53, %v1694_v23  ;;  %v1700_v38 = vshll.u32 %v2656_v57, %v1694_v23 }
 0x1e4   : > { %2166 = vst.msk [vmem:[%s3016_s6 + $0x14] sm:$0xf] %vm2160_vm4, %v2383_v55  ;;  %v1704_v1 = vshrl.u32 %v2658_v61, %v1695_v32  ;;  %v934_v58 = vsub.s32 4, %v910_v14  ;;  %v1703_v33 = vshll.u32 %v2657_v59, %v1694_v23  ;;  %v1706_v27 = vshll.u32 %v2658_v61, %v1694_v23 }
 0x1e5   : > { %v1867_v12 = vmul.f32 %v1866_v11, %v1864_v47  ;;  %v914_v42 = vsub.s32 0, %v3589_v26  ;;  %v1699_v49 = vor.u32 %v1698_v7, %v1697_v37  ;;  %v1702_v0 = vor.u32 %v1701_v56, %v1700_v38 }
 0x1e6   : > { %v1707_v43 = vshrl.u32 %v2659_v63, %v1695_v32  ;;  %v1705_v25 = vor.u32 %v1704_v1, %v1703_v33  ;;  %v1709_v3 = vshll.u32 %v2659_v63, %v1694_v23  ;;  %v1710_v28 = vshrl.u32 %v2660_v6, %v1695_v32 }
 0x1e7   : > { %v1868_v19 = vxor.u32 2147483648, %v1867_v12  ;;  %vm3602_vm15 = vcmp.le.f32.partialorder %v848_v5, 0.7853982  ;;  %v2313_v30 = vmin.u32 %v914_v42, %v3589_v26  ;;  %v1160_v24 = vand.u32 2147483647, %v3575_v46 }
 0x1e8   : > { %v1708_v22 = vor.u32 %v1707_v43, %v1706_v27  ;;  %v1164_v36 = vshrl.u32 %v1163_v18, 23  ;;  %v1696_v45 = vshrl.u32 %v2655_v53, %v1695_v32  ;;  %v1711_v50 = vor.u32 %v1710_v28, %v1709_v3 }
 0x1e9   : > { %v1869_v15 = vsel %vm1786_vm6, %v1868_v19, %v1867_v12  ;;  %vm1712_vm1 = vcmp.lt.s32.totalorder %v1693_v44, 1  ;;  %v916_v29 = vclz %v2313_v30  ;;  %v935_v16 = vsel %vm850_vm14, %v934_v58, %v910_v14 }
 0x1ea   : > { %v1872_v5 = vsel %vm3554_vm5, %v3390_v13, %v1869_v15  ;;  %vm1715_vm0 = vcmp.lt.s32.totalorder %v1693_v44, 4  ;;  %vm1713_vm2 = vcmp.lt.s32.totalorder %v1693_v44, 2  ;;  %v1720_v41 = vsel %vm1712_vm1, %v1699_v49, %v1702_v0 }
 0x1eb   : > { %2585 = vcosq.f32 %v1872_v5  ;;  %v1717_v51 = vsel %vm1715_vm0, %v1705_v25, 2102212464  ;;  %v2314_v35 = vadd.s32 4294967294, %v916_v29  ;;  %vm1714_vm3 = vcmp.lt.s32.totalorder %v1693_v44, 3 }
 0x1ec   : > { %2587 = vsinq.f32 %v1872_v5  ;;  %v1721_v9 = vsel %vm1715_vm0, %v1708_v22, 920167782  ;;  %v1716_v23 = vsel %vm1712_vm1, %v1696_v45, %v1699_v49  ;;  %v1724_v20 = vsel %vm1712_vm1, %v1702_v0, %v1705_v25 }
 0x1ed   : > { %v1722_v54 = vsel %vm1714_vm3, %v1705_v25, %v1721_v9  ;;  %v1725_v8 = vsel %vm1715_vm0, %v1711_v50, 1326507024  ;;  %vm2315_vm6 = vcmp.lt.s32.totalorder %v2314_v35, 0  ;;  %v1718_v10 = vsel %vm1714_vm3, %v1702_v0, %v1717_v51 }
 0x1ee   : > { %v1723_v48 = vsel %vm1713_vm2, %v1720_v41, %v1722_v54  ;;  %v1726_v32 = vsel %vm1714_vm3, %v1708_v22, %v1725_v8  ;;  %v919_v40 = vsel %vm2315_vm6, 0, %v2314_v35  ;;  %v904_v62 = vadd.s32 %v3545_v34, %v3550_v4  ;;  %v2436_v4 = vpop.f32.mrf.mxu1 }
 0x1ef   : > { %v1727_v14 = vsel %vm1713_vm2, %v1724_v20, %v1726_v32  ;;  %v3619_v21 = vmul.u32.u64.low %v3582_v52, %v1723_v48  ;;  %v3620_v55 = vmul.u32.u64.high %v3582_v52, %v1723_v48, %v3619_v21  ;;  %v920_v18 = vsub.s32 32, %v919_v40 }
 0x1f0   : > { %v924_v47 = vsub.s32 4294967266, %v919_v40  ;;  %v2324_v11 = vadd.s32 4294967169, %v1164_v36  ;;  %v937_v7 = vsel %vm3602_vm15, 0, %v935_v16  ;;  %v1719_v56 = vsel %vm1713_vm2, %v1716_v23, %v1718_v10 }
 0x1f1   : > { %v3629_v37 = vmul.u32.u64.low %v3582_v52, %v1727_v14  ;;  %v3630_v38 = vmul.u32.u64.high %v3582_v52, %v1727_v14, %v3629_v37  ;;  %v921_v1 = vshll.u32 %v3589_v26, %v919_v40  ;;  %v922_v12 = vshrl.u32 %v904_v62, %v920_v18 }
 0x1f2   : > { %v925_v58 = vadd.s32 127, %v924_v47  ;;  %v1170_v33 = vadd.s32 1, %v2324_v11  ;;  %v1878_v27 = vand.u32 3, %v3579_v17  ;;  %v1738_v34 = vadd.s32 1, %v3620_v55  ;;  %v3644_v17 = vld [vmem:[%s3927_s2] ss:$0 sm:$0xff] }
 0x1f3   : > { %v923_v42 = vor.u32 %v922_v12, %v921_v1  ;;  %v941_v0 = vadd.s32 3, %v937_v7  ;;  %v1735_v44 = vmul.u32 %v3582_v52, %v1719_v56  ;;  %vm1737_vm7 = vc.u32 %v3630_v38, %v3619_v21 }
 0x1f4   : > { %v926_v49 = vshll.u32 %v925_v58, 23  ;;  %vm1171_vm5 = vcmp.gt.s32.totalorder %v1170_v33, 0  ;;  %v1739_v26 = vsel %vm1737_vm7, %v1738_v34, %v3620_v55  ;;  %v1167_v25 = vand.u32 8388607, %v1160_v24 }
 0x1f5   : > { %v1172_v43 = vsel %vm1171_vm5, %v1170_v33, 0  ;;  %v3647_v3 = vadd.f32 %v3644_v17, %v2436_v4  ;;  %vm1876_vm8 = vweird.f32 %v3390_v13  ;;  %vm1879_vm9 = vcmp.lt.s32.totalorder %v1878_v27, 2 }
 0x1f6   : > { %v927_v19 = vor.u32 4788187, %v926_v49  ;;  %v1740_v52 = vadd.s32 %v1739_v26, %v1735_v44  ;;  %v1174_v28 = vand.u32 31, %v1172_v43  ;;  %vm1880_vm10 = vcmp.eq.s32.totalorder %v1878_v27, 0 }
 0x1f7   : > { %vm1883_vm12 = vcmp.eq.s32.totalorder %v1878_v27, 2  ;;  %v930_v36 = vcvt.s32.f32 %v923_v42  ;;  %v3650_v50 = vand.u32 3, %v941_v0  ;;  %v1168_v41 = vor.u32 8388608, %v1167_v25 }
 0x1f8   : > { %v2586_v30 = vpop.eup %2585  ;;  %v928_v22 = vand.u32 2147483647, %v927_v19  ;;  %v1741_v5 = vadd.s32 536870912, %v1740_v52  ;;  %v1175_v29 = vsub.s32 32, %v1174_v28  ;;  %v1995_v35 = vand.u32 2139095040, %v3647_v3 }
 0x1f9   : > { %v2588_v15 = vpop.eup %2587  ;;  %v1884_v45 = vxor.u32 2147483648, %v2586_v30  ;;  %v1177_v54 = vshll.u32 %v2655_v53, %v1174_v28  ;;  %v1173_v55 = vshrl.u32 %v1172_v43, 5  ;;  %v1183_v62 = vshll.u32 %v2657_v59, %v1174_v28 }
 0x1fa   : > { %v1881_v16 = vxor.u32 2147483648, %v2588_v15  ;;  %v931_v51 = vmul.f32 %v930_v36, %v928_v22  ;;  %v3653_v23 = vshrl.u32 %v1741_v5, 30  ;;  %v1178_v20 = vshrl.u32 %v2656_v57, %v1175_v29 }
 0x1fb   : > { %v1885_v9 = vsel %vm1883_vm12, %v1884_v45, %v2588_v15  ;;  %v1181_v48 = vshrl.u32 %v2657_v59, %v1175_v29  ;;  %v1184_v32 = vshrl.u32 %v2658_v61, %v1175_v29  ;;  %v1180_v7 = vshll.u32 %v2656_v57, %v1174_v28 }
 0x1fc   : > { %v1882_v8 = vsel %vm1880_vm10, %v2586_v30, %v1881_v16  ;;  %v932_v10 = vxor.u32 2147483648, %v931_v51  ;;  %v1743_v14 = vshll.u32 %v3653_v23, 30  ;;  %v1179_v11 = vor.u32 %v1178_v20, %v1177_v54 }
 0x1fd   : > { %v1886_v40 = vsel %vm1879_vm9, %v1882_v8, %v1885_v9  ;;  %v1185_v12 = vor.u32 %v1184_v32, %v1183_v62  ;;  %v1182_v58 = vor.u32 %v1181_v48, %v1180_v7  ;;  %v1186_v33 = vshll.u32 %v2658_v61, %v1174_v28 }
 0x1fe   : > { %v1887_v18 = vsel %vm1876_vm8, nan, %v1886_v40  ;;  %v933_v47 = vsel %vm850_vm14, %v932_v10, %v931_v51  ;;  %v3671_v1 = vsub.s32 %v1740_v52, %v1743_v14  ;;  %v1187_v13 = vshrl.u32 %v2659_v63, %v1175_v29 }
 0x1ff   : > { %v2391_v56 = vpack.c.bf16 %v1887_v18, %v1887_v18  ;;  %v936_v37 = vsel %vm3602_vm15, %v3421_v60, %v933_v47  ;;  %v1208_v34 = vshll.u32 %v1168_v41, 8  ;;  %v1996_v4 = vshrl.u32 %v1995_v35, 23 }
 0x200   : > { %2589 = vcosq.f32 %v936_v37  ;;  %v1746_v27 = vsub.s32 0, %v3671_v1  ;;  %v1188_v42 = vor.u32 %v1187_v13, %v1186_v33  ;;  %v1189_v39 = vshll.u32 %v2659_v63, %v1174_v28 }
 0x201   : > { %2174 = vst.msk [vmem:[%s3016_s6 + $0x34] sm:$0xf] %vm2160_vm4, %v2391_v56  ;;  %2591 = vsinq.f32 %v936_v37  ;;  %v1190_v49 = vshrl.u32 %v2660_v6, %v1175_v29  ;;  %vm1195_vm13 = vcmp.lt.s32.totalorder %v1173_v55, 4  ;;  %v1176_v44 = vshrl.u32 %v2655_v53, %v1175_v29 }
 0x202   : > { %v2345_v0 = vmin.u32 %v1746_v27, %v3671_v1  ;;  %vm1192_vm11 = vcmp.lt.s32.totalorder %v1173_v55, 1  ;;  %v1197_v43 = vsel %vm1195_vm13, %v1185_v12, 2102212464  ;;  %vm1194_vm14 = vcmp.lt.s32.totalorder %v1173_v55, 3 }
 0x203   : > { %v1191_v19 = vor.u32 %v1190_v49, %v1189_v39  ;;  %v1200_v26 = vsel %vm1192_vm11, %v1179_v11, %v1182_v58  ;;  %v1201_v25 = vsel %vm1195_vm13, %v1188_v42, 920167782  ;;  %v1196_v30 = vsel %vm1192_vm11, %v1176_v44, %v1179_v11 }
 0x204   : > { %v1748_v52 = vclz %v2345_v0  ;;  %v1198_v22 = vsel %vm1194_vm14, %v1182_v58, %v1197_v43  ;;  %v1204_v36 = vsel %vm1192_vm11, %v1182_v58, %v1185_v12  ;;  %vm1193_vm15 = vcmp.lt.s32.totalorder %v1173_v55, 2 }
 0x205   : > { %v1202_v15 = vsel %vm1194_vm14, %v1185_v12, %v1201_v25  ;;  %v1205_v28 = vsel %vm1195_vm13, %v1191_v19, 1326507024  ;;  %v2356_v45 = vadd.s32 4294967169, %v1996_v4  ;;  %v1992_v41 = vand.u32 2147483647, %v3647_v3 }
 0x206   : > { %v2346_v5 = vadd.s32 4294967294, %v1748_v52  ;;  %v1203_v16 = vsel %vm1193_vm15, %v1200_v26, %v1202_v15  ;;  %v1206_v51 = vsel %vm1194_vm14, %v1188_v42, %v1205_v28  ;;  %v1199_v29 = vsel %vm1193_vm15, %v1196_v30, %v1198_v22 }
 0x207   : > { %v1207_v35 = vsel %vm1193_vm15, %v1204_v36, %v1206_v51  ;;  %v3683_v9 = vmul.u32.u64.low %v1208_v34, %v1203_v16  ;;  %v3684_v54 = vmul.u32.u64.high %v1208_v34, %v1203_v16, %v3683_v9  ;;  %v2002_v10 = vadd.s32 1, %v2356_v45  ;;  %v383_v45 = vpop.f32.mrf.mxu0 }
 0x208   : > { %vm2347_vm1 = vcmp.lt.s32.totalorder %v2346_v5, 0  ;;  %v3687_v20 = vmul.u32.u64.low %v1208_v34, %v1207_v35  ;;  %v3688_v8 = vmul.u32.u64.high %v1208_v34, %v1207_v35, %v3687_v20  ;;  %vm940_vm0 = vweird.f32 %v3421_v60 }
 0x209   : > { %vm947_vm2 = vcmp.eq.s32.totalorder %v3650_v50, 2  ;;  %v1751_v48 = vsel %vm2347_vm1, 0, %v2346_v5  ;;  %v1736_v32 = vadd.s32 %v3619_v21, %v3630_v38  ;;  %vm2003_vm3 = vcmp.gt.s32.totalorder %v2002_v10, 0 }
 0x20a   : > { %v1752_v40 = vsub.s32 32, %v1751_v48  ;;  %v1756_v14 = vsub.s32 4294967266, %v1751_v48  ;;  %v1215_v55 = vmul.u32 %v1208_v34, %v1199_v29  ;;  %v1218_v62 = vadd.s32 1, %v3684_v54 }
 0x20b   : > { %v1999_v18 = vand.u32 8388607, %v1992_v41  ;;  %v2004_v47 = vsel %vm2003_vm3, %v2002_v10, 0  ;;  %v1753_v7 = vshll.u32 %v3671_v1, %v1751_v48  ;;  %vm1217_vm6 = vc.u32 %v3688_v8, %v3683_v9 }
 0x20c   : > { %v1754_v56 = vshrl.u32 %v1736_v32, %v1752_v40  ;;  %v1757_v37 = vadd.s32 127, %v1756_v14  ;;  %v1766_v38 = vsub.s32 4, %v3653_v23  ;;  %v1219_v58 = vsel %vm1217_vm6, %v1218_v62, %v3684_v54 }
 0x20d   : > { %v2590_v11 = vpop.eup %2589  ;;  %v2006_v33 = vand.u32 31, %v2004_v47  ;;  %v1220_v4 = vadd.s32 %v1219_v58, %v1215_v55  ;;  %vm944_vm5 = vcmp.eq.s32.totalorder %v3650_v50, 0  ;;  %vm3707_vm7 = vcmp.le.f32.partialorder %v1680_v2, 0.7853982 }
 0x20e   : > { %v2592_v12 = vpop.eup %2591  ;;  %v948_v21 = vxor.u32 2147483648, %v2590_v11  ;;  %v1755_v27 = vor.u32 %v1754_v56, %v1753_v7  ;;  %v1758_v34 = vshll.u32 %v1757_v37, 23  ;;  %vm1682_vm8 = vcmp.lt.s32.totalorder %v3438_v31, 0 }
 0x20f   : > { %v945_v13 = vxor.u32 2147483648, %v2592_v12  ;;  %v2007_v39 = vsub.s32 32, %v2006_v33  ;;  %vm943_vm9 = vcmp.lt.s32.totalorder %v3650_v50, 2  ;;  %v1221_v44 = vadd.s32 536870912, %v1220_v4 }
 0x210   : > { %v949_v1 = vsel %vm947_vm2, %v948_v21, %v2592_v12  ;;  %v1759_v0 = vor.u32 4788187, %v1758_v34  ;;  %v1767_v19 = vsel %vm1682_vm8, %v1766_v38, %v3653_v23  ;;  %v2000_v26 = vor.u32 8388608, %v1999_v18 }
 0x211   : > { %v946_v49 = vsel %vm944_vm5, %v2590_v11, %v945_v13  ;;  %v2005_v25 = vshrl.u32 %v2004_v47, 5  ;;  %v1762_v30 = vcvt.s32.f32 %v1755_v27  ;;  %v3718_v22 = vshrl.u32 %v1221_v44, 30 }
 0x212   : > { %v950_v43 = vsel %vm943_vm9, %v946_v49, %v949_v1  ;;  %v1760_v52 = vand.u32 2147483647, %v1759_v0  ;;  %v2010_v50 = vshrl.u32 %v2656_v57, %v2007_v39  ;;  %v2013_v15 = vshrl.u32 %v2657_v59, %v2007_v39 }
 0x213   : > { %v951_v2 = vsel %vm940_vm0, nan, %v950_v43  ;;  %v2016_v28 = vshrl.u32 %v2658_v61, %v2007_v39  ;;  %v1223_v23 = vshll.u32 %v3718_v22, 30  ;;  %v2009_v16 = vshll.u32 %v2655_v53, %v2006_v33 }
 0x214   : > { %v2382_v36 = vpack.c.bf16 %v951_v2, %v951_v2  ;;  %v1763_v5 = vmul.f32 %v1762_v30, %v1760_v52  ;;  %v2015_v60 = vshll.u32 %v2657_v59, %v2006_v33  ;;  %v2012_v51 = vshll.u32 %v2656_v57, %v2006_v33 }
 0x215   : > { %v2018_v29 = vshll.u32 %v2658_v61, %v2006_v33  ;;  %v2019_v35 = vshrl.u32 %v2659_v63, %v2007_v39  ;;  %v2022_v54 = vshrl.u32 %v2660_v6, %v2007_v39  ;;  %v3732_v10 = vsub.s32 %v1220_v4, %v1223_v23 }
 0x216   : > { %2165 = vst.msk [vmem:[%s3016_s6 + $0x10] sm:$0xf] %vm2160_vm4, %v2382_v36  ;;  %v1764_v20 = vxor.u32 2147483648, %v1763_v5  ;;  %v2017_v48 = vor.u32 %v2016_v28, %v2015_v60  ;;  %v3735_v32 = vadd.f32 %v3644_v17, %v383_v45  ;;  %v2011_v40 = vor.u32 %v2010_v50, %v2009_v16 }
 0x217   : > { %v2014_v14 = vor.u32 %v2013_v15, %v2012_v51  ;;  %v2020_v55 = vor.u32 %v2019_v35, %v2018_v29  ;;  %v2021_v62 = vshll.u32 %v2659_v63, %v2006_v33  ;;  %v1769_v47 = vsel %vm3707_vm7, 0, %v1767_v19 }
 0x218   : > { %v1765_v18 = vsel %vm1682_vm8, %v1764_v20, %v1763_v5  ;;  %v1226_v11 = vsub.s32 0, %v3732_v10  ;;  %v2040_v7 = vshll.u32 %v2000_v26, 8  ;;  %v2008_v37 = vshrl.u32 %v2655_v53, %v2007_v39 }
 0x219   : > { %v1768_v56 = vsel %vm3707_vm7, %v3438_v31, %v1765_v18  ;;  %v2023_v12 = vor.u32 %v2022_v54, %v2021_v62  ;;  %vm2027_vm10 = vcmp.lt.s32.totalorder %v2005_v25, 4  ;;  %vm2024_vm12 = vcmp.lt.s32.totalorder %v2005_v25, 1 }
 0x21a   : > { %2593 = vcosq.f32 %v1768_v56  ;;  %v2325_v21 = vmin.u32 %v1226_v11, %v3732_v10  ;;  %v2029_v38 = vsel %vm2027_vm10, %v2017_v48, 2102212464  ;;  %vm2025_vm13 = vcmp.lt.s32.totalorder %v2005_v25, 2 }
 0x21b   : > { %2595 = vsinq.f32 %v1768_v56  ;;  %v2032_v58 = vsel %vm2024_vm12, %v2011_v40, %v2014_v14  ;;  %v2033_v33 = vsel %vm2027_vm10, %v2020_v55, 920167782  ;;  %vm2026_vm11 = vcmp.lt.s32.totalorder %v2005_v25, 3 }
 0x21c   : > { %v1228_v13 = vclz %v2325_v21  ;;  %v2028_v27 = vsel %vm2024_vm12, %v2008_v37, %v2011_v40  ;;  %v2036_v34 = vsel %vm2024_vm12, %v2014_v14, %v2017_v48  ;;  %v2030_v4 = vsel %vm2026_vm11, %v2014_v14, %v2029_v38 }
 0x21d   : > { %v2034_v1 = vsel %vm2026_vm11, %v2017_v48, %v2033_v33  ;;  %v2037_v42 = vsel %vm2027_vm10, %v2023_v12, 1326507024  ;;  %v1059_v39 = vand.u32 2139095040, %v3735_v32  ;;  %v1773_v49 = vadd.s32 3, %v1769_v47  ;;  %v423_v12 = vpop.f32.mrf.mxu1 }
 0x21e   : > { %v2326_v0 = vadd.s32 4294967294, %v1228_v13  ;;  %v2035_v44 = vsel %vm2025_vm13, %v2032_v58, %v2034_v1  ;;  %v2038_v43 = vsel %vm2026_vm11, %v2020_v55, %v2037_v42  ;;  %v2031_v30 = vsel %vm2025_vm13, %v2028_v27, %v2030_v4 }
 0x21f   : > { %v2039_v19 = vsel %vm2025_vm13, %v2036_v34, %v2038_v43  ;;  %v3751_v26 = vmul.u32.u64.low %v2040_v7, %v2035_v44  ;;  %v3752_v2 = vmul.u32.u64.high %v2040_v7, %v2035_v44, %v3751_v26  ;;  %v1060_v52 = vshrl.u32 %v1059_v39, 23 }
 0x220   : > { %vm2327_vm14 = vcmp.lt.s32.totalorder %v2326_v0, 0  ;;  %v3756_v36 = vmul.u32.u64.low %v2040_v7, %v2039_v19  ;;  %v3757_v50 = vmul.u32.u64.high %v2040_v7, %v2039_v19, %v3756_v36  ;;  %vm1162_vm15 = vcmp.lt.s32.totalorder %v3575_v46, 0 }
 0x221   : > { %v1231_v15 = vsel %vm2327_vm14, 0, %v2326_v0  ;;  %v1246_v28 = vsub.s32 4, %v3718_v22  ;;  %v2320_v45 = vadd.s32 4294967169, %v1060_v52  ;;  %v1774_v5 = vand.u32 3, %v1773_v49 }
 0x222   : > { %v1216_v23 = vadd.s32 %v3683_v9, %v3688_v8  ;;  %v1232_v16 = vsub.s32 32, %v1231_v15  ;;  %v1236_v60 = vsub.s32 4294967266, %v1231_v15  ;;  %v2047_v51 = vmul.u32 %v2040_v7, %v2031_v30 }
 0x223   : > { %v2050_v29 = vadd.s32 1, %v3752_v2  ;;  %v1056_v25 = vand.u32 2147483647, %v3735_v32  ;;  %v1066_v35 = vadd.s32 1, %v2320_v45  ;;  %v1233_v54 = vshll.u32 %v3732_v10, %v1231_v15 }
 0x224   : > { %v1234_v20 = vshrl.u32 %v1216_v23, %v1232_v16  ;;  %v1237_v48 = vadd.s32 127, %v1236_v60  ;;  %vm2049_vm1 = vc.u32 %v3757_v50, %v3751_v26  ;;  %vm1772_vm0 = vweird.f32 %v3438_v31 }
 0x225   : > { %v1247_v9 = vsel %vm1162_vm15, %v1246_v28, %v3718_v22  ;;  %v2051_v8 = vsel %vm2049_vm1, %v2050_v29, %v3752_v2  ;;  %vm1067_vm2 = vcmp.gt.s32.totalorder %v1066_v35, 0  ;;  %vm1775_vm3 = vcmp.lt.s32.totalorder %v1774_v5, 2 }
 0x226   : > { %v1235_v40 = vor.u32 %v1234_v20, %v1233_v54  ;;  %v1238_v14 = vshll.u32 %v1237_v48, 23  ;;  %v2052_v55 = vadd.s32 %v2051_v8, %v2047_v51  ;;  %v1068_v62 = vsel %vm1067_vm2, %v1066_v35, 0 }
 0x227   : > { %v2594_v18 = vpop.eup %2593  ;;  %vm3775_vm6 = vcmp.le.f32.partialorder %v1160_v24, 0.7853982  ;;  %v1063_v47 = vand.u32 8388607, %v1056_v25  ;;  %v1070_v11 = vand.u32 31, %v1068_v62  ;;  %vm1776_vm5 = vcmp.eq.s32.totalorder %v1774_v5, 0 }
 0x228   : > { %v2596_v22 = vpop.eup %2595  ;;  %v1780_v7 = vxor.u32 2147483648, %v2594_v18  ;;  %v1239_v56 = vor.u32 4788187, %v1238_v14  ;;  %v2053_v37 = vadd.s32 536870912, %v2052_v55  ;;  %vm1779_vm7 = vcmp.eq.s32.totalorder %v1774_v5, 2 }
 0x229   : > { %v1777_v21 = vxor.u32 2147483648, %v2596_v22  ;;  %v1249_v38 = vsel %vm3775_vm6, 0, %v1247_v9  ;;  %v1071_v58 = vsub.s32 32, %v1070_v11  ;;  %v1242_v13 = vcvt.s32.f32 %v1235_v40 }
 0x22a   : > { %v1781_v24 = vsel %vm1779_vm7, %v1780_v7, %v2596_v22  ;;  %v1240_v33 = vand.u32 2147483647, %v1239_v56  ;;  %v3783_v27 = vshrl.u32 %v2053_v37, 30  ;;  %v1064_v4 = vor.u32 8388608, %v1063_v47 }
 0x22b   : > { %v1778_v34 = vsel %vm1776_vm5, %v2594_v18, %v1777_v21  ;;  %v1074_v1 = vshrl.u32 %v2656_v57, %v1071_v58  ;;  %v3787_v42 = vadd.f32 %v3644_v17, %v423_v12  ;;  %v1077_v44 = vshrl.u32 %v2657_v59, %v1071_v58 }
 0x22c   : > { %v1782_v39 = vsel %vm1775_vm3, %v1778_v34, %v1781_v24  ;;  %v1243_v49 = vmul.f32 %v1242_v13, %v1240_v33  ;;  %v2055_v0 = vshll.u32 %v3783_v27, 30  ;;  %v1073_v19 = vshll.u32 %v2655_v53, %v1070_v11 }
 0x22d   : > { %v1783_v43 = vsel %vm1772_vm0, nan, %v1782_v39  ;;  %v1076_v2 = vshll.u32 %v2656_v57, %v1070_v11  ;;  %v1080_v52 = vshrl.u32 %v2658_v61, %v1071_v58  ;;  %v1079_v15 = vshll.u32 %v2657_v59, %v1070_v11 }
 0x22e   : > { %v2390_v30 = vpack.c.bf16 %v1783_v43, %v1783_v43  ;;  %v1244_v17 = vxor.u32 2147483648, %v1243_v49  ;;  %v3797_v36 = vsub.s32 %v2052_v55, %v2055_v0  ;;  %v1069_v28 = vshrl.u32 %v1068_v62, 5 }
 0x22f   : > { %v1075_v45 = vor.u32 %v1074_v1, %v1073_v19  ;;  %v1082_v5 = vshll.u32 %v2658_v61, %v1070_v11  ;;  %v1083_v23 = vshrl.u32 %v2659_v63, %v1071_v58  ;;  %v1078_v60 = vor.u32 %v1077_v44, %v1076_v2 }
 0x230   : > { %2173 = vst.msk [vmem:[%s3016_s6 + $0x30] sm:$0xf] %vm2160_vm4, %v2390_v30  ;;  %v1245_v31 = vsel %vm1162_vm15, %v1244_v17, %v1243_v49  ;;  %v2058_v16 = vsub.s32 0, %v3797_v36  ;;  %v1081_v51 = vor.u32 %v1080_v52, %v1079_v15  ;;  %v1085_v54 = vshll.u32 %v2659_v63, %v1070_v11 }
 0x231   : > { %v1248_v29 = vsel %vm3775_vm6, %v3575_v46, %v1245_v31  ;;  %v1084_v35 = vor.u32 %v1083_v23, %v1082_v5  ;;  %v1086_v20 = vshrl.u32 %v2660_v6, %v1071_v58  ;;  %v1253_v48 = vadd.s32 3, %v1249_v38 }
 0x232   : > { %2597 = vcosq.f32 %v1248_v29  ;;  %v2357_v9 = vmin.u32 %v2058_v16, %v3797_v36  ;;  %v1104_v8 = vshll.u32 %v1064_v4, 8  ;;  %v1072_v40 = vshrl.u32 %v2655_v53, %v1071_v58 }
 0x233   : > { %2599 = vsinq.f32 %v1248_v29  ;;  %v1087_v14 = vor.u32 %v1086_v20, %v1085_v54  ;;  %v1891_v55 = vand.u32 2139095040, %v3787_v42  ;;  %vm1088_vm8 = vcmp.lt.s32.totalorder %v1069_v28, 1 }
 0x234   : > { %v2060_v62 = vclz %v2357_v9  ;;  %vm1089_vm9 = vcmp.lt.s32.totalorder %v1069_v28, 2  ;;  %vm1091_vm10 = vcmp.lt.s32.totalorder %v1069_v28, 4  ;;  %vm1090_vm12 = vcmp.lt.s32.totalorder %v1069_v28, 3 }
 0x235   : > { %v1093_v18 = vsel %vm1091_vm10, %v1081_v51, 2102212464  ;;  %v1096_v10 = vsel %vm1088_vm8, %v1075_v45, %v1078_v60  ;;  %v1097_v47 = vsel %vm1091_vm10, %v1084_v35, 920167782  ;;  %v1092_v22 = vsel %vm1088_vm8, %v1072_v40, %v1075_v45 }
 0x236   : > { %v2358_v11 = vadd.s32 4294967294, %v2060_v62  ;;  %v1098_v7 = vsel %vm1090_vm12, %v1081_v51, %v1097_v47  ;;  %v1100_v56 = vsel %vm1088_vm8, %v1078_v60, %v1081_v51  ;;  %v1094_v37 = vsel %vm1090_vm12, %v1078_v60, %v1093_v18 }
 0x237   : > { %v1099_v12 = vsel %vm1089_vm9, %v1096_v10, %v1098_v7  ;;  %v1101_v21 = vsel %vm1091_vm10, %v1087_v14, 1326507024  ;;  %v1892_v38 = vshrl.u32 %v1891_v55, 23  ;;  %v1254_v13 = vand.u32 3, %v1253_v48 }
 0x238   : > { %vm2359_vm13 = vcmp.lt.s32.totalorder %v2358_v11, 0  ;;  %v1102_v58 = vsel %vm1090_vm12, %v1084_v35, %v1101_v21  ;;  %v3816_v24 = vmul.u32.u64.low %v1104_v8, %v1099_v12  ;;  %v3817_v33 = vmul.u32.u64.high %v1104_v8, %v1099_v12, %v3816_v24 }
 0x239   : > { %v2063_v34 = vsel %vm2359_vm13, 0, %v2358_v11  ;;  %v1103_v4 = vsel %vm1089_vm9, %v1100_v56, %v1102_v58  ;;  %v2352_v1 = vadd.s32 4294967169, %v1892_v38  ;;  %v2048_v39 = vadd.s32 %v3751_v26, %v3757_v50 }
 0x23a   : > { %v2064_v49 = vsub.s32 32, %v2063_v34  ;;  %v2068_v0 = vsub.s32 4294967266, %v2063_v34  ;;  %v1095_v44 = vsel %vm1089_vm9, %v1092_v22, %v1094_v37  ;;  %v2065_v52 = vshll.u32 %v3797_v36, %v2063_v34 }
 0x23b   : > { %v3824_v43 = vmul.u32.u64.low %v1104_v8, %v1103_v4  ;;  %v3825_v19 = vmul.u32.u64.high %v1104_v8, %v1103_v4, %v3824_v43  ;;  %v1898_v2 = vadd.s32 1, %v2352_v1  ;;  %v1114_v15 = vadd.s32 1, %v3817_v33 }
 0x23c   : > { %v2066_v30 = vshrl.u32 %v2048_v39, %v2064_v49  ;;  %v2069_v17 = vadd.s32 127, %v2068_v0  ;;  %vm1252_vm11 = vweird.f32 %v3575_v46  ;;  %vm1255_vm14 = vcmp.lt.s32.totalorder %v1254_v13, 2 }
 0x23d   : > { %vm1994_vm15 = vcmp.lt.s32.totalorder %v3647_v3, 0  ;;  %vm1899_vm1 = vcmp.gt.s32.totalorder %v1898_v2, 0  ;;  %v1888_v28 = vand.u32 2147483647, %v3787_v42  ;;  %v2078_v23 = vsub.s32 4, %v3783_v27 }
 0x23e   : > { %v2067_v26 = vor.u32 %v2066_v30, %v2065_v52  ;;  %v2070_v50 = vshll.u32 %v2069_v17, 23  ;;  %v1900_v45 = vsel %vm1899_vm1, %v1898_v2, 0  ;;  %v1111_v31 = vmul.u32 %v1104_v8, %v1095_v44 }
 0x23f   : > { %v2598_v5 = vpop.eup %2597  ;;  %vm1113_vm0 = vc.u32 %v3825_v19, %v3816_v24  ;;  %v1902_v36 = vand.u32 31, %v1900_v45  ;;  %vm1256_vm2 = vcmp.eq.s32.totalorder %v1254_v13, 0  ;;  %vm3837_vm3 = vcmp.le.f32.partialorder %v1992_v41, 0.7853982 }
 0x240   : > { %v2600_v16 = vpop.eup %2599  ;;  %v1260_v60 = vxor.u32 2147483648, %v2598_v5  ;;  %v2071_v29 = vor.u32 4788187, %v2070_v50  ;;  %v1115_v35 = vsel %vm1113_vm0, %v1114_v15, %v3817_v33  ;;  %vm1259_vm6 = vcmp.eq.s32.totalorder %v1254_v13, 2 }
 0x241   : > { %v1257_v54 = vxor.u32 2147483648, %v2600_v16  ;;  %v1116_v20 = vadd.s32 %v1115_v35, %v1111_v31  ;;  %v1903_v48 = vsub.s32 32, %v1902_v36  ;;  %v2074_v40 = vcvt.s32.f32 %v2067_v26 }
 0x242   : > { %v1261_v9 = vsel %vm1259_vm6, %v1260_v60, %v2600_v16  ;;  %v2072_v8 = vand.u32 2147483647, %v2071_v29  ;;  %v1895_v14 = vand.u32 8388607, %v1888_v28  ;;  %v2079_v41 = vsel %vm1994_vm15, %v2078_v23, %v3783_v27 }
 0x243   : > { %v1258_v55 = vsel %vm1256_vm2, %v2598_v5, %v1257_v54  ;;  %v1117_v62 = vadd.s32 536870912, %v1116_v20  ;;  %v1906_v18 = vshrl.u32 %v2656_v57, %v1903_v48  ;;  %v1901_v11 = vshrl.u32 %v1900_v45, 5 }
 0x244   : > { %v1262_v10 = vsel %vm1255_vm14, %v1258_v55, %v1261_v9  ;;  %v2075_v47 = vmul.f32 %v2074_v40, %v2072_v8  ;;  %v1909_v22 = vshrl.u32 %v2657_v59, %v1903_v48  ;;  %v1905_v37 = vshll.u32 %v2655_v53, %v1902_v36 }
 0x245   : > { %v1263_v7 = vsel %vm1252_vm11, nan, %v1262_v10  ;;  %v3852_v56 = vshrl.u32 %v1117_v62, 30  ;;  %v1912_v12 = vshrl.u32 %v2658_v61, %v1903_v48  ;;  %v1908_v38 = vshll.u32 %v2656_v57, %v1902_v36 }
 0x246   : > { %v2385_v27 = vpack.c.bf16 %v1263_v7, %v1263_v7  ;;  %v2076_v21 = vxor.u32 2147483648, %v2075_v47  ;;  %v1911_v58 = vshll.u32 %v2657_v59, %v1902_v36  ;;  %v1907_v13 = vor.u32 %v1906_v18, %v1905_v37 }
 0x247   : > { %v1119_v33 = vshll.u32 %v3852_v56, 30  ;;  %v1914_v34 = vshll.u32 %v2658_v61, %v1902_v36  ;;  %v1915_v46 = vshrl.u32 %v2659_v63, %v1903_v48  ;;  %v1910_v1 = vor.u32 %v1909_v22, %v1908_v38 }
 0x248   : > { %2168 = vst.msk [vmem:[%s3016_s6 + $0x1c] sm:$0xf] %vm2160_vm4, %v2385_v27  ;;  %v2077_v4 = vsel %vm1994_vm15, %v2076_v21, %v2075_v47  ;;  %v1917_v39 = vshll.u32 %v2659_v63, %v1902_v36  ;;  %v1918_v49 = vshrl.u32 %v2660_v6, %v1903_v48  ;;  %v1913_v0 = vor.u32 %v1912_v12, %v1911_v58 }
 0x249   : > { %v2080_v57 = vsel %vm3837_vm3, %v3647_v3, %v2077_v4  ;;  %v1120_v59 = vsub.s32 %v1116_v20, %v1119_v33  ;;  %v1916_v44 = vor.u32 %v1915_v46, %v1914_v34  ;;  %v2081_v61 = vsel %vm3837_vm3, 0, %v2079_v41 }
 0x24a   : > { %2601 = vcosq.f32 %v2080_v57  ;;  %v1896_v43 = vor.u32 8388608, %v1895_v14  ;;  %v1919_v2 = vor.u32 %v1918_v49, %v1917_v39  ;;  %vm1920_vm5 = vcmp.lt.s32.totalorder %v1901_v11, 1 }
 0x24b   : > { %2603 = vsinq.f32 %v2080_v57  ;;  %v1122_v52 = vsub.s32 0, %v1120_v59  ;;  %vm1923_vm7 = vcmp.lt.s32.totalorder %v1901_v11, 4  ;;  %v1904_v63 = vshrl.u32 %v2655_v53, %v1903_v48 }
 0x24c   : > { %vm1922_vm8 = vcmp.lt.s32.totalorder %v1901_v11, 3  ;;  %v1928_v6 = vsel %vm1920_vm5, %v1907_v13, %v1910_v1  ;;  %v1929_v30 = vsel %vm1923_vm7, %v1916_v44, 920167782  ;;  %vm1921_vm9 = vcmp.lt.s32.totalorder %v1901_v11, 2 }
 0x24d   : > { %v2321_v17 = vmin.u32 %v1122_v52, %v1120_v59  ;;  %v1925_v15 = vsel %vm1923_vm7, %v1913_v0, 2102212464  ;;  %v1930_v26 = vsel %vm1922_vm8, %v1913_v0, %v1929_v30  ;;  %v1932_v45 = vsel %vm1920_vm5, %v1910_v1, %v1913_v0 }
 0x24e   : > { %v1931_v50 = vsel %vm1921_vm9, %v1928_v6, %v1930_v26  ;;  %v1933_v5 = vsel %vm1923_vm7, %v1919_v2, 1326507024  ;;  %v1936_v23 = vshll.u32 %v1896_v43, 8  ;;  %v1924_v36 = vsel %vm1920_vm5, %v1904_v63, %v1907_v13 }
 0x24f   : > { %v1124_v31 = vclz %v2321_v17  ;;  %v1926_v16 = vsel %vm1922_vm8, %v1910_v1, %v1925_v15  ;;  %v1934_v60 = vsel %vm1922_vm8, %v1916_v44, %v1933_v5  ;;  %v2085_v53 = vadd.s32 3, %v2081_v61 }
 0x250   : > { %v3874_v51 = vmul.u32.u64.low %v1936_v23, %v1931_v50  ;;  %v3875_v29 = vmul.u32.u64.high %v1936_v23, %v1931_v50, %v3874_v51  ;;  %v1935_v54 = vsel %vm1921_vm9, %v1932_v45, %v1934_v60  ;;  %v1927_v9 = vsel %vm1921_vm9, %v1924_v36, %v1926_v16 }
 0x251   : > { %v2322_v35 = vadd.s32 4294967294, %v1124_v31  ;;  %v3879_v20 = vmul.u32.u64.low %v1936_v23, %v1935_v54  ;;  %v3880_v48 = vmul.u32.u64.high %v1936_v23, %v1935_v54, %v3879_v20  ;;  %v2086_v14 = vand.u32 3, %v2085_v53 }
 0x252   : > { %v1946_v40 = vadd.s32 1, %v3875_v29  ;;  %v1112_v55 = vadd.s32 %v3816_v24, %v3825_v19  ;;  %v1943_v18 = vmul.u32 %v1936_v23, %v1927_v9  ;;  %vm2084_vm15 = vweird.f32 %v3647_v3 }
 0x253   : > { %vm2323_vm10 = vcmp.lt.s32.totalorder %v2322_v35, 0  ;;  %vm1945_vm12 = vc.u32 %v3880_v48, %v3874_v51  ;;  %vm2091_vm13 = vcmp.eq.s32.totalorder %v2086_v14, 2  ;;  %vm2088_vm11 = vcmp.eq.s32.totalorder %v2086_v14, 0 }
 0x254   : > { %v1127_v8 = vsel %vm2323_vm10, 0, %v2322_v35  ;;  %v1947_v11 = vsel %vm1945_vm12, %v1946_v40, %v3875_v29  ;;  %vm2087_vm14 = vcmp.lt.s32.totalorder %v2086_v14, 2  ;;  %vm1058_vm1 = vcmp.lt.s32.totalorder %v3735_v32, 0 }
 0x255   : > { %v1128_v41 = vsub.s32 32, %v1127_v8  ;;  %v1132_v62 = vsub.s32 4294967266, %v1127_v8  ;;  %v1129_v47 = vshll.u32 %v1120_v59, %v1127_v8  ;;  %v1948_v27 = vadd.s32 %v1947_v11, %v1943_v18 }
 0x256   : > { %v1142_v61 = vsub.s32 4, %v3852_v56  ;;  %vm1057_vm0 = vcmp.le.f32.partialorder %v1056_v25, 0.7853982  ;;  %v1944_v50 = vadd.s32 %v3874_v51, %v3880_v48  ;;  %vm1148_vm7 = vweird.f32 %v3735_v32 }
 0x257   : > { %v2602_v10 = vpop.eup %2601  ;;  %v1130_v22 = vshrl.u32 %v1112_v55, %v1128_v41  ;;  %v1133_v7 = vadd.s32 127, %v1132_v62  ;;  %v1949_v19 = vadd.s32 536870912, %v1948_v27  ;;  %vm1890_vm8 = vcmp.lt.s32.totalorder %v3787_v42, 0 }
 0x258   : > { %v2604_v37 = vpop.eup %2603  ;;  %v2092_v12 = vxor.u32 2147483648, %v2602_v10  ;;  %v1143_v63 = vsel %vm1058_vm1, %v1142_v61, %v3852_v56  ;;  %vm1889_vm9 = vcmp.le.f32.partialorder %v1888_v28, 0.7853982 }
 0x259   : > { %v2089_v21 = vxor.u32 2147483648, %v2604_v37  ;;  %v1131_v38 = vor.u32 %v1130_v22, %v1129_v47  ;;  %v1134_v58 = vshll.u32 %v1133_v7, 23  ;;  %v1950_v46 = vshrl.u32 %v1949_v19, 30 }
 0x25a   : > { %v2093_v24 = vsel %vm2091_vm13, %v2092_v12, %v2604_v37  ;;  %v1145_v17 = vsel %vm1057_vm0, 0, %v1143_v63 }
 0x25b   : > { %v2090_v33 = vsel %vm2088_vm11, %v2602_v10, %v2089_v21  ;;  %v1135_v13 = vor.u32 4788187, %v1134_v58  ;;  %v1138_v39 = vcvt.s32.f32 %v1131_v38  ;;  %v1951_v57 = vshll.u32 %v1950_v46, 30 }
 0x25c   : > { %v2094_v34 = vsel %vm2087_vm14, %v2090_v33, %v2093_v24  ;;  %v1149_v26 = vadd.s32 3, %v1145_v17  ;;  %v1974_v62 = vsub.s32 4, %v1950_v46  ;;  %vm1980_vm11 = vweird.f32 %v3787_v42 }
 0x25d   : > { %v2095_v4 = vsel %vm2084_vm15, nan, %v2094_v34  ;;  %v1136_v1 = vand.u32 2147483647, %v1135_v13  ;;  %v1952_v0 = vsub.s32 %v1948_v27, %v1951_v57 }
 0x25e   : > { %v2393_v49 = vpack.c.bf16 %v2095_v4, %v2095_v4  ;;  %v1150_v36 = vand.u32 3, %v1149_v26  ;;  %v1975_v47 = vsel %vm1890_vm8, %v1974_v62, %v1950_v46 }
 0x25f   : > { %v1139_v59 = vmul.f32 %v1138_v39, %v1136_v1  ;;  %v1954_v43 = vsub.s32 0, %v1952_v0  ;;  %v1977_v22 = vsel %vm1889_vm9, 0, %v1975_v47 }
 0x260   : > { %2176 = vst.msk [vmem:[%s3016_s6 + $0x3c] sm:$0xf] %vm2160_vm4, %v2393_v49  ;;  %vm1155_vm3 = vcmp.eq.s32.totalorder %v1150_v36, 2  ;;  %vm1152_vm6 = vcmp.eq.s32.totalorder %v1150_v36, 0  ;;  %vm1151_vm5 = vcmp.lt.s32.totalorder %v1150_v36, 2 }
 0x261   : > { %v1140_v44 = vxor.u32 2147483648, %v1139_v59  ;;  %v2353_v52 = vmin.u32 %v1954_v43, %v1952_v0 }
 0x263   : > { %v1141_v3 = vsel %vm1058_vm1, %v1140_v44, %v1139_v59  ;;  %v1956_v6 = vclz %v2353_v52 }
 0x264   : > { %v1144_v2 = vsel %vm1057_vm0, %v3735_v32, %v1141_v3  ;;  %v1981_v32 = vadd.s32 3, %v1977_v22 }
 0x265   : > { %2605 = vcosq.f32 %v1144_v2  ;;  %v2354_v30 = vadd.s32 4294967294, %v1956_v6 }
 0x266   : > { %2607 = vsinq.f32 %v1144_v2  ;;  %v1982_v7 = vand.u32 3, %v1981_v32 }
 0x267   : > { %vm2355_vm2 = vcmp.lt.s32.totalorder %v2354_v30, 0 }
 0x268   : > { %v1959_v15 = vsel %vm2355_vm2, 0, %v2354_v30  ;;  %vm1987_vm10 = vcmp.eq.s32.totalorder %v1982_v7, 2  ;;  %vm1984_vm12 = vcmp.eq.s32.totalorder %v1982_v7, 0  ;;  %vm1983_vm13 = vcmp.lt.s32.totalorder %v1982_v7, 2 }
 0x269   : > { %v1960_v45 = vsub.s32 32, %v1959_v15  ;;  %v1964_v5 = vsub.s32 4294967266, %v1959_v15  ;;  %v1961_v25 = vshll.u32 %v1952_v0, %v1959_v15 }
 0x26b   : > { %v1962_v23 = vshrl.u32 %v1944_v50, %v1960_v45  ;;  %v1965_v31 = vadd.s32 127, %v1964_v5 }
 0x26d   : > { %v1963_v16 = vor.u32 %v1962_v23, %v1961_v25  ;;  %v1966_v60 = vshll.u32 %v1965_v31, 23 }
 0x26f   : > { %v1967_v56 = vor.u32 4788187, %v1966_v60  ;;  %v1970_v9 = vcvt.s32.f32 %v1963_v16 }
 0x271   : > { %v1968_v20 = vand.u32 2147483647, %v1967_v56 }
 0x272   : > { %v2606_v29 = vpop.eup %2605 }
 0x273   : > { %v2608_v53 = vpop.eup %2607  ;;  %v1156_v35 = vxor.u32 2147483648, %v2606_v29  ;;  %v1971_v48 = vmul.f32 %v1970_v9, %v1968_v20 }
 0x274   : > { %v1153_v54 = vxor.u32 2147483648, %v2608_v53 }
 0x275   : > { %v1157_v8 = vsel %vm1155_vm3, %v1156_v35, %v2608_v53  ;;  %v1972_v55 = vxor.u32 2147483648, %v1971_v48 }
 0x276   : > { %v1154_v51 = vsel %vm1152_vm6, %v2606_v29, %v1153_v54 }
 0x277   : > { %v1158_v40 = vsel %vm1151_vm5, %v1154_v51, %v1157_v8  ;;  %v1973_v18 = vsel %vm1890_vm8, %v1972_v55, %v1971_v48 }
 0x278   : > { %v1159_v14 = vsel %vm1148_vm7, nan, %v1158_v40  ;;  %v1976_v10 = vsel %vm1889_vm9, %v3787_v42, %v1973_v18 }
 0x279   : > { %v2384_v41 = vpack.c.bf16 %v1159_v14, %v1159_v14  ;;  %2609 = vcosq.f32 %v1976_v10 }
 0x27a   : > { %2611 = vsinq.f32 %v1976_v10 }
 0x27b   : > { %2167 = vst.msk [vmem:[%s3016_s6 + $0x18] sm:$0xf] %vm2160_vm4, %v2384_v41 }
 0x286   : > { %v2610_v11 = vpop.eup %2609 }
 0x287   : > { %v2612_v37 = vpop.eup %2611  ;;  %v1988_v12 = vxor.u32 2147483648, %v2610_v11 }
 0x288   : > { %v1985_v27 = vxor.u32 2147483648, %v2612_v37 }
 0x289   : > { %v1989_v21 = vsel %vm1987_vm10, %v1988_v12, %v2612_v37 }
 0x28a   : > { %v1986_v28 = vsel %vm1984_vm12, %v2610_v11, %v1985_v27 }
 0x28b   : > { %v1990_v38 = vsel %vm1983_vm13, %v1986_v28, %v1989_v21 }
 0x28c   : > { %v1991_v58 = vsel %vm1980_vm11, nan, %v1990_v38 }
 0x28d   : > { %v2392_v24 = vpack.c.bf16 %v1991_v58, %v1991_v58 }
 0x28f   : > { %2175 = vst.msk [vmem:[%s3016_s6 + $0x38] sm:$0xf] %vm2160_vm4, %v2392_v24 }
 0x290 PF: > { %s13_s16 = sadd.s32 1, %s2653_s16   ;;  %s3957_s12 = smov %s2645_s14 }
 0x291   : > { %p10_p7 = scmp.ge.s32.totalorder %s13_s16, 6   ;;  %s3958_s13 = smov %s2649_s15 }
 0x292   : > { %s3959_s14 = smov %s3962_s17  ;;  %s3960_s15 = smov %s3966_s18 }
 0x293   :  { %12 = sbr.rel (!%p10_p7) target bundleno = 3 (0x3), region = 62 }

// kernel: _lambda_.3
= control target key start
LH: loop header
LB: loop body
LE: loop exit
PB: predicated region body
PF: predicated region fallthrough
CT: control target
= control target key end

     0   :  { %s3119_s0 = inlined_call_operand.vmem [shape: bf16[2,48,256], index: 0, kind: input, shape index: {}]   ;;  %s3120_s1 = inlined_call_operand.vmem [shape: bf16[2,4,256], index: 1, kind: input, shape index: {}]   ;;  %s3121_s2 = inlined_call_operand.vmem [shape: bf16[2,64,52], index: 2, kind: input, shape index: {}]   ;;  %s3122_s3 = inlined_call_operand.vmem [shape: bf16[128,64], index: 3, kind: input, shape index: {}]   ;;  %s3123_s4 = inlined_call_operand.vmem [shape: f32[128,1], index: 4, kind: input, shape index: {}]   ;;  %s3124_s5 = inlined_call_operand.vmem [shape: bf16[256,128], index: 5, kind: input, shape index: {}]   ;;  %s3125_s6 = inlined_call_operand.vmem [shape: f32[256,1], index: 6, kind: input, shape index: {}]   ;;  %s3126_s7 = inlined_call_operand.vmem [shape: bf16[64,256], index: 7, kind: input, shape index: {}]   ;;  %s3127_s8 = inlined_call_operand.vmem [shape: f32[64,1], index: 8, kind: input, shape index: {}]   ;;  %s3128_s9 = inlined_call_operand.vmem [shape: bf16[64,3], index: 9, kind: input, shape index: {}]   ;;  %s3129_s10 = inlined_call_operand.vmem [shape: f32[1,3], index: 10, kind: input, shape index: {}]   ;;  %s3130_s11 = inlined_call_operand.vmem [shape: f32[2,256,3], index: 11, kind: output, shape index: {}]  }
   0x1   :  { %3133 = sst [smem:[#allocation6_spill]] %s3119_s0 }
   0x2   :  { %3134 = sst [smem:[#allocation7_spill]] %s3130_s11 }
   0x3   :  { %s2557_s17 = smov 0   ;;  %s2559_s18 = smov 0  }
   0x4   :  { %s2561_s19 = smov 0   ;;  %s2563_s20 = smov 0  }
   0x5   :  { %s2565_s21 = smov 0   ;;  %s2567_s22 = smov 0  }
   0x6   :  { %s2569_s23 = smov 0  }
   0x7 LB: > { %s30_s24 = sadd.s32 1, %s2486_s21  ;;  %s33_s25 = sadd.s32 1, %s2490_s22  ;;  %s2494_s23 = sphi %s2569_s23, %s21_s23   ;;  %s2490_s22 = sphi %s2567_s22, %s3146_s22   ;;  %s2486_s21 = sphi %s2565_s21, %s3145_s21   ;;  %s2482_s20 = sphi %s2563_s20, %s3144_s20   ;;  %s2478_s19 = sphi %s2561_s19, %s3143_s19   ;;  %s2474_s18 = sphi %s2559_s18, %s3142_s18   ;;  %s2470_s17 = sphi %s2557_s17, %s3141_s17  }
   0x8   : > { %p31_p0 = scmp.ge.s32.totalorder %s30_s24, 2  ;;  %p49_p1 = scmp.ne.s32.totalorder %s2474_s18, %s2470_s17 }
   0x9   : > { %p50_p2 = scmp.eq.s32.totalorder %s2494_s23, 0  ;;  %s42_s29 = sadd.s32 1, %s2474_s18 }
   0xa   : > { %s3148_s24 = smov (%p31_p0, %s30_s24), 0  ;;  %s3150_s25 = smov (!%p31_p0, %s33_s25), %s2490_s22 }
   0xb   : > { %3135 = sst [smem:[#allocation4_spill]] %s3148_s24  ;;  %p51_p3 = por %p50_p2, %p49_p1 }
   0xc   : > { %p35_p4 = scmp.ge.s32.totalorder %s3150_s25, 2  ;;  %s38_s26 = ssub.s32 %s2486_s21, %s3148_s24 }
   0xd   : > { %p2043_p6 = scmp.ge.s32.totalorder %s2494_s23, 4 }
   0xe   : > { %s3152_s25 = smov (%p35_p4, %s3150_s25), 0 }
   0xf   : > { %3136 = sst [smem:[#allocation5_spill]] %s3152_s25  ;;  %s37_s27 = ssub.s32 %s2490_s22, %s3152_s25 }
  0x10   : > { %s39_s28 = sor.u32 %s38_s26, %s37_s27  ;;  %349 = sbr.rel (%p2043_p6) target bundleno = 34 (0x22), region = 48 }
  0x11   : > { %p40_p5 = scmp.eq.s32.totalorder %s39_s28, 0 }
  0x13   : > { %s2608_s30 = scalar_select %p40_p5, %s2474_s18, %s42_s29  }
  0x15   : > { %352 = sbr.rel (!%p51_p3) target bundleno = 34 (0x22), region = 52  ;;  %s354_s12 = sand.u32 (%p51_p3), 1, %s2474_s18  }
  0x16   : > { %s2331_s13 = smul.u32 (%p51_p3), 12, %s2490_s22  ;;  %s3137_s0 = sld [smem:[#allocation6_spill]] (%p51_p3) }
  0x17   : > { %s2330_s14 = smul.u32 (%p51_p3), 24, %s354_s12 }
  0x18   : > { %s358_s15 = sadd.s32 (%p51_p3), %s2486_s21, %s2331_s13 }
  0x19   : > { %s2044_s16 = sshll.u32 (%p51_p3), %s358_s15, 2  ;;  %s356_s27 = scalar_lea.vmem (%p51_p3), [#allocation3], %s2330_s14 }
  0x1c   : > { %s360_s26 = scalar_lea.vmem %s3137_s0, %s2044_s16 }
  0x1d   : > { %v377_v0 = vld [vmem:[%s360_s26] sm:$0xf]  ;;  %v379_v1 = vld [vmem:[%s360_s26 + $0x8] sm:$0xf]  ;;  %v381_v2 = vld [vmem:[%s360_s26 + $0x10] sm:$0xf] }
  0x1e   : > { %378 = vst [vmem:[%s356_s27] sm:$0xf] %v377_v0  ;;  %380 = vst [vmem:[%s356_s27 + $0x4] sm:$0xf] %v379_v1  ;;  %v383_v3 = vld [vmem:[%s360_s26 + $0x18] sm:$0xf] }
  0x1f   : > { %382 = vst [vmem:[%s356_s27 + $0x8] sm:$0xf] %v381_v2  ;;  %v385_v4 = vld [vmem:[%s360_s26 + $0x20] sm:$0xf]  ;;  %v387_v5 = vld [vmem:[%s360_s26 + $0x28] sm:$0xf] }
  0x20   : > { %384 = vst [vmem:[%s356_s27 + $0xc] sm:$0xf] %v383_v3  ;;  %386 = vst [vmem:[%s356_s27 + $0x10] sm:$0xf] %v385_v4 }
  0x21   : > { %388 = vst [vmem:[%s356_s27 + $0x14] sm:$0xf] %v387_v5 }
  0x22 PF: > { %p2045_p7 = scmp.ge.s32.totalorder %s2494_s23, 1  ;;  %p442_p8 = scmp.lt.s32.totalorder %s2494_s23, 5 }
  0x24   : > { %p443_p9 = pnand %p2045_p7, %p442_p8 }
  0x25   : > { %p505_p10 = scmp.lt.s32.totalorder (!%p443_p9), %s2482_s20, 1  ;;  %p507_p11 = scmp.lt.s32.totalorder (!%p443_p9), %s2478_s19, 1 }
  0x26   : > { %446 = sbr.rel (%p443_p9) target bundleno = 1401 (0x579), region = 101  ;;  %s449_s11 = sand.u32 (!%p443_p9), 1, %s2470_s17  }
  0x27   : > { %s2332_s29 = smul.u32 (!%p443_p9), 24, %s449_s11 }
  0x29   : > { %s451_s27 = scalar_lea.vmem (!%p443_p9), [#allocation3], %s2332_s29 }
  0x2b   : > { %s3154_s20 = smov (!%p505_p10, %s2482_s20), 1  ;;  %v533_v6 = vld [vmem:[%s451_s27 + $0x10] sm:$0xff]   ;;  %v531_v7 = vld [vmem:[%s451_s27 + $0x8] sm:$0xff]   ;;  %v529_v8 = vld [vmem:[%s451_s27] sm:$0xff]   ;;  %vm599_vm0 = vcmask 424960   ;;  %vm612_vm1 = vcmask 1041408  }
  0x2c   : > { %s508_s24 = scalar_select %p507_p11, %s2478_s19, 1  ;;  %539 = vst [vmem:[#allocation2 + $0x10] sm:$0xff] %v533_v6   ;;  %537 = vst [vmem:[#allocation2 + $0x8] sm:$0xff] %v531_v7   ;;  %v2496_v19 = vmov 0   ;;  %v723_v20 = vld [vmem:[%s3123_s4 + $0x70] sm:$0xff]  ;;  %v724_v21 = vld [vmem:[%s3123_s4 + $0x78] sm:$0xff] }
  0x2d   : > { %s2046_s28 = sshll.u32 %s3154_s20, 1  ;;  %s2120_s13 = sshll.u32 %s3154_s20, 5  ;;  %535 = vst [vmem:[#allocation2] sm:$0xff] %v529_v8   ;;  %2390 = vset.pattern.permute.xlu0 %v2496_v19  ;;  %2391 = vset.pattern.permute.xlu1 %v2496_v19  ;;  %v721_v22 = vld [vmem:[%s3123_s4 + $0x60] sm:$0xff]  ;;  %v722_v23 = vld [vmem:[%s3123_s4 + $0x68] sm:$0xff]  ;;  %v719_v24 = vld [vmem:[%s3123_s4 + $0x50] sm:$0xff] }
  0x2e   : > { %s510_s12 = sadd.s32 %s2046_s28, %s508_s24  ;;  %s517_s25 = scalar_lea.vmem %s3121_s2, %s2120_s13  ;;  %797 = vperm.xlu0 %2390, %v723_v20   ;;  %787 = vperm.xlu1 %2391, %v721_v22   ;;  %v720_v25 = vld [vmem:[%s3123_s4 + $0x58] sm:$0xff]  ;;  %v717_v26 = vld [vmem:[%s3123_s4 + $0x40] sm:$0xff]  ;;  %vm845_vm2 = vcmask 523264   ;;  %v718_v28 = vld [vmem:[%s3123_s4 + $0x48] sm:$0xff]  ;;  %vm1901_vm3 = vcmask 23552  }
  0x2f   : > { %s2047_s14 = sshll.u32 %s510_s12, 1  ;;  %v2396_v10 = vld [vmem:[%s517_s25] sm:$0xff]   ;;  %v2397_v16 = vld [vmem:[%s517_s25 + $0x8] sm:$0xff]   ;;  %v2398_v17 = vld [vmem:[%s517_s25 + $0x10] sm:$0xff]   ;;  %s2050_s24 = sshll.u32 %s2478_s19, 4 }
  0x30   : > { %s512_s26 = scalar_lea.vmem %s3120_s1, %s2047_s14  ;;  %2225 = vmatprep.mubr.msk.bf16.mxu0 %vm599_vm0, %v2396_v10  ;;  %v2399_v18 = vld [vmem:[%s517_s25 + $0x18] sm:$0xff]   ;;  %v2400_v27 = vld [vmem:[%s3122_s3] sm:$0xff]   ;;  %v715_v29 = vld [vmem:[%s3123_s4 + $0x30] sm:$0xff]  ;;  %p521_p12 = scmp.lt.s32.totalorder %s2050_s24, 31 }
  0x31   : > { %v541_v9 = vld [vmem:[%s512_s26] sm:$0x3]  ;;  %2241 = vmatprep.mubr.msk.bf16.mxu1 %vm845_vm2, %v2400_v27  ;;  %v716_v30 = vld [vmem:[%s3123_s4 + $0x38] sm:$0xff]  ;;  %v714_v32 = vld [vmem:[%s3123_s4 + $0x28] sm:$0xff]  ;;  %s3138_s19 = sld [smem:[#allocation7_spill]] }
  0x32   : > { %542 = vst [vmem:[#allocation2 + $0x18] sm:$0x3] %v541_v9  ;;  %802 = vperm.xlu0 %2390, %v724_v21   ;;  %792 = vperm.xlu1 %2391, %v722_v23   ;;  %v713_v31 = vld [vmem:[%s3123_s4 + $0x20] sm:$0xff]  ;;  %v711_v33 = vld [vmem:[%s3123_s4 + $0x10] sm:$0xff]  ;;  %v712_v34 = vld [vmem:[%s3123_s4 + $0x18] sm:$0xff]  ;;  %s3156_s24 = smov (!%p521_p12, %s2050_s24), 31 }
  0x33   : > { %v2393_v12 = vld [vmem:[#allocation2 + $0x10] sm:$0xff]   ;;  %v2394_v14 = vld [vmem:[#allocation2 + $0x8] sm:$0xff]   ;;  %v709_v35 = vld [vmem:[%s3123_s4] sm:$0xff]  ;;  %s524_s28 = sadd.s32 %s2120_s13, %s3156_s24 }
  0x34   : > { %v2395_v15 = vld [vmem:[#allocation2] sm:$0xff]   ;;  %v710_v36 = vld [vmem:[%s3123_s4 + $0x8] sm:$0xff]  ;;  %v1053_v37 = vld [vmem:[%s3125_s6 + $0xf0] sm:$0xff]  ;;  %s2052_s25 = sshll.u32 %s524_s28, 3 }
  0x35   : > { %v1054_v38 = vld [vmem:[%s3125_s6 + $0xf8] sm:$0xff]  ;;  %v1037_v39 = vld [vmem:[%s3125_s6 + $0x70] sm:$0xff]  ;;  %v1051_v41 = vld [vmem:[%s3125_s6 + $0xe0] sm:$0xff] }
  0x36   : > { %777 = vperm.xlu0 %2390, %v719_v24   ;;  %782 = vperm.xlu1 %2391, %v720_v25   ;;  %v1038_v40 = vld [vmem:[%s3125_s6 + $0x78] sm:$0xff]  ;;  %v1052_v42 = vld [vmem:[%s3125_s6 + $0xe8] sm:$0xff]  ;;  %v1035_v43 = vld [vmem:[%s3125_s6 + $0x60] sm:$0xff] }
  0x37   : > { %v1036_v44 = vld [vmem:[%s3125_s6 + $0x68] sm:$0xff]  ;;  %v1049_v45 = vld [vmem:[%s3125_s6 + $0xd0] sm:$0xff]  ;;  %v1050_v46 = vld [vmem:[%s3125_s6 + $0xd8] sm:$0xff]  ;;  %s3050_s16 = scalar_lea.vmem %s3138_s19, %s2052_s25 }
  0x38   : > { %v1033_v47 = vld [vmem:[%s3125_s6 + $0x50] sm:$0xff]  ;;  %v1034_v48 = vld [vmem:[%s3125_s6 + $0x58] sm:$0xff]  ;;  %v1047_v49 = vld [vmem:[%s3125_s6 + $0xc0] sm:$0xff] }
  0x39   : > { %v2392_v11 = vld [vmem:[#allocation2 + $0x18] ss:$0 sps:$4 sm:$0x33]   ;;  %v1048_v50 = vld [vmem:[%s3125_s6 + $0xc8] sm:$0xff]  ;;  %v1031_v51 = vld [vmem:[%s3125_s6 + $0x40] sm:$0xff] }
  0x3a   : > { %2329 = vmatprep.subr.msk.bf16.mxu0 %vm612_vm1, %v2392_v11  ;;  %v614_v13 = vsel %vm612_vm1, %v2392_v11, 0  ;;  %767 = vperm.xlu0 %2390, %v717_v26   ;;  %v1032_v52 = vld [vmem:[%s3125_s6 + $0x48] sm:$0xff]  ;;  %v1045_v53 = vld [vmem:[%s3125_s6 + $0xb0] sm:$0xff]  ;;  %v1046_v54 = vld [vmem:[%s3125_s6 + $0xb8] sm:$0xff] }
  0x3b   : > { %2218 = vmatpush3.bf16.msra.mxu0 %v614_v13  ;;  %772 = vperm.xlu1 %2391, %v718_v28   ;;  %v1029_v55 = vld [vmem:[%s3125_s6 + $0x30] sm:$0xff]  ;;  %v1030_v56 = vld [vmem:[%s3125_s6 + $0x38] sm:$0xff]  ;;  %v1043_v57 = vld [vmem:[%s3125_s6 + $0xa0] sm:$0xff] }
  0x3c   : > { %2219 = vmatprep.subr.bf16.mxu0 %v2393_v12  ;;  %v1044_v58 = vld [vmem:[%s3125_s6 + $0xa8] sm:$0xff]  ;;  %v1027_v59 = vld [vmem:[%s3125_s6 + $0x20] sm:$0xff]  ;;  %v1041_v61 = vld [vmem:[%s3125_s6 + $0x90] sm:$0xff] }
  0x3d   : > { %v1028_v60 = vld [vmem:[%s3125_s6 + $0x28] sm:$0xff]  ;;  %v1042_v62 = vld [vmem:[%s3125_s6 + $0x98] sm:$0xff]  ;;  %v1025_v63 = vld [vmem:[%s3125_s6 + $0x10] sm:$0xff] }
  0x3e   : > { %757 = vperm.xlu0 %2390, %v715_v29   ;;  %v1026_v0 = vld [vmem:[%s3125_s6 + $0x18] sm:$0xff]  ;;  %v1039_v1 = vld [vmem:[%s3125_s6 + $0x80] sm:$0xff]  ;;  %v1040_v2 = vld [vmem:[%s3125_s6 + $0x88] sm:$0xff] }
  0x3f   : > { %2220 = vmatpush3.bf16.msra.mxu0 %v2393_v12  ;;  %762 = vperm.xlu1 %2391, %v716_v30   ;;  %v1023_v3 = vld [vmem:[%s3125_s6] sm:$0xff]  ;;  %v1024_v4 = vld [vmem:[%s3125_s6 + $0x8] sm:$0xff]  ;;  %v1530_v7 = vld [vmem:[%s3127_s8 + $0x10] sm:$0xff] }
  0x40   : > { %2221 = vmatprep.subr.bf16.mxu0 %v2394_v14  ;;  %v1528_v5 = vld [vmem:[%s3127_s8] sm:$0xff]  ;;  %v1529_v6 = vld [vmem:[%s3127_s8 + $0x8] sm:$0xff]  ;;  %v1531_v8 = vld [vmem:[%s3127_s8 + $0x18] sm:$0xff] }
  0x41   : > { %v1532_v9 = vld [vmem:[%s3127_s8 + $0x20] sm:$0xff]  ;;  %v1533_v10 = vld [vmem:[%s3127_s8 + $0x28] sm:$0xff]  ;;  %v1534_v11 = vld [vmem:[%s3127_s8 + $0x30] sm:$0xff] }
  0x42   : > { %747 = vperm.xlu0 %2390, %v713_v31   ;;  %v1535_v12 = vld [vmem:[%s3127_s8 + $0x38] sm:$0xff] }
  0x43   : > { %2222 = vmatpush3.bf16.msra.mxu0 %v2394_v14  ;;  %752 = vperm.xlu1 %2391, %v714_v32  }
  0x44   : > { %2223 = vmatprep.subr.bf16.mxu0 %v2395_v15 }
  0x46   : > { %737 = vperm.xlu0 %2390, %v711_v33   ;;  %v2401_v33 = vld [vmem:[%s3122_s3 + $0x8] sm:$0xff]  }
  0x47   : > { %2224 = vmatpush3.bf16.msra.mxu0 %v2395_v15  ;;  %742 = vperm.xlu1 %2391, %v712_v34   ;;  %v2402_v34 = vld [vmem:[%s3122_s3 + $0x10] sm:$0xff]  }
  0x4a   : > { %2226 = vmatmul.mubr.msk.bf16.vlgmr.msra.gmra.mxu0 %vm599_vm0, %v2397_v16  ;;  %727 = vperm.xlu0 %2390, %v709_v35   ;;  %v2403_v35 = vld [vmem:[%s3122_s3 + $0x18] sm:$0xff]  }
  0x4b   : > { %2229 = vmatprep.mubr.msk.bf16.mxu0 %vm599_vm0, %v2398_v17  ;;  %732 = vperm.xlu1 %2391, %v710_v36   ;;  %v2404_v36 = vld [vmem:[%s3122_s3 + $0x20] sm:$0xff]  }
  0x4e   : > { %1207 = vperm.xlu0 %2390, %v1053_v37   ;;  %v2405_v37 = vld [vmem:[%s3122_s3 + $0x28] sm:$0xff]  }
  0x4f   : > { %1212 = vperm.xlu1 %2391, %v1054_v38   ;;  %v2406_v38 = vld [vmem:[%s3122_s3 + $0x30] sm:$0xff]  }
  0x52   : > { %2230 = vmatmul.mubr.msk.bf16.gmra.mxu0 %vm599_vm0, %v2399_v18  ;;  %1127 = vperm.xlu0 %2390, %v1037_v39   ;;  %v2407_v39 = vld [vmem:[%s3122_s3 + $0x38] sm:$0xff]  }
  0x53   : > { %1132 = vperm.xlu1 %2391, %v1038_v40   ;;  %v2408_v40 = vld [vmem:[%s3124_s5] sm:$0xff]  }
  0x54   : > { %2273 = vmatprep.mubr.bf16.mxu0 %v2408_v40 }
  0x56   : > { %1197 = vperm.xlu0 %2390, %v1051_v41  }
  0x57   : > { %1202 = vperm.xlu1 %2391, %v1052_v42  }
  0x5a   : > { %1117 = vperm.xlu0 %2390, %v1035_v43  }
  0x5b   : > { %1122 = vperm.xlu1 %2391, %v1036_v44  }
  0x5e   : > { %1187 = vperm.xlu0 %2390, %v1049_v45  }
  0x5f   : > { %1192 = vperm.xlu1 %2391, %v1050_v46  }
  0x62   : > { %1107 = vperm.xlu0 %2390, %v1033_v47  }
  0x63   : > { %1112 = vperm.xlu1 %2391, %v1034_v48  }
  0x66   : > { %1177 = vperm.xlu0 %2390, %v1047_v49  }
  0x67   : > { %1182 = vperm.xlu1 %2391, %v1048_v50  }
  0x6a   : > { %1097 = vperm.xlu0 %2390, %v1031_v51  }
  0x6b   : > { %1102 = vperm.xlu1 %2391, %v1032_v52  }
  0x6e   : > { %1167 = vperm.xlu0 %2390, %v1045_v53  }
  0x6f   : > { %1172 = vperm.xlu1 %2391, %v1046_v54  }
  0x72   : > { %1087 = vperm.xlu0 %2390, %v1029_v55  }
  0x73   : > { %1092 = vperm.xlu1 %2391, %v1030_v56  }
  0x76   : > { %1157 = vperm.xlu0 %2390, %v1043_v57  }
  0x77   : > { %1162 = vperm.xlu1 %2391, %v1044_v58  }
  0x7a   : > { %1077 = vperm.xlu0 %2390, %v1027_v59  }
  0x7b   : > { %1082 = vperm.xlu1 %2391, %v1028_v60  }
  0x7e   : > { %1147 = vperm.xlu0 %2390, %v1041_v61  }
  0x7f   : > { %1152 = vperm.xlu1 %2391, %v1042_v62  }
  0x82   : > { %1067 = vperm.xlu0 %2390, %v1025_v63  }
  0x83   : > { %1072 = vperm.xlu1 %2391, %v1026_v0  }
  0x86   : > { %1137 = vperm.xlu0 %2390, %v1039_v1  }
  0x87   : > { %1142 = vperm.xlu1 %2391, %v1040_v2  }
  0x8a   : > { %1057 = vperm.xlu0 %2390, %v1023_v3  }
  0x8b   : > { %1062 = vperm.xlu1 %2391, %v1024_v4  }
  0x8e   : > { %1538 = vperm.xlu0 %2390, %v1528_v5  }
  0x8f   : > { %1543 = vperm.xlu1 %2391, %v1529_v6  }
  0x92   : > { %1548 = vperm.xlu0 %2390, %v1530_v7  }
  0x93   : > { %1553 = vperm.xlu1 %2391, %v1531_v8  }
  0x96   : > { %1558 = vperm.xlu0 %2390, %v1532_v9  }
  0x97   : > { %1563 = vperm.xlu1 %2391, %v1533_v10  }
  0x9a   : > { %1568 = vperm.xlu0 %2390, %v1534_v11  }
  0x9b   : > { %1573 = vperm.xlu1 %2391, %v1535_v12  }
  0xa9   : > { %v788_v45 = vpop.permute.xlu1 %787  ;;  %v798_v47 = vpop.permute.xlu0 %797 }
  0xad   : > { %v793_v50 = vpop.permute.xlu1 %792  ;;  %v803_v52 = vpop.permute.xlu0 %802 }
  0xb1   : > { %v783_v55 = vpop.permute.xlu1 %782  ;;  %v778_v57 = vpop.permute.xlu0 %777 }
  0xb5   : > { %v768_v63 = vpop.permute.xlu0 %767 }
  0xb6   : > { %v773_v60 = vpop.permute.xlu1 %772 }
  0xba   : > { %v763_v8 = vpop.permute.xlu1 %762 }
 0x10a   : > { %v2227_v13 = vpop.f32.mrf.mxu0 }
 0x10b   : > { %v683_v28 = vmax.f32 %v2227_v13, 0.0  ;;  %v758_v13 = vpop.permute.xlu0 %757 }
 0x10c   : > { %v650_v14 = vpop.f32.mrf.mxu0 }
 0x10d   : > { %v681_v31 = vmax.f32 %v650_v14, 0.0 }
 0x10e   : > { %v2228_v15 = vpop.f32.mrf.mxu0 }
 0x10f   : > { %v684_v26 = vmax.f32 %v2228_v15, 0.0 }
 0x110   : > { %v653_v16 = vpop.f32.mrf.mxu0 }
 0x111   : > { %v706_v29 = vpack.c.bf16 %v684_v26, %v683_v28  ;;  %v682_v30 = vmax.f32 %v653_v16, 0.0 }
 0x112   : > { %v2231_v17 = vpop.f32.mrf.mxu0 }
 0x113   : > { %v687_v20 = vmax.f32 %v2231_v17, 0.0  ;;  %v705_v32 = vpack.c.bf16 %v682_v30, %v681_v31 }
 0x114   : > { %v666_v18 = vpop.f32.mrf.mxu0 }
 0x115   : > { %v685_v23 = vmax.f32 %v666_v18, 0.0 }
 0x116   : > { %v2232_v19 = vpop.f32.mrf.mxu0 }
 0x117   : > { %v688_v21 = vmax.f32 %v2232_v19, 0.0  ;;  %v753_v19 = vpop.permute.xlu1 %752 }
 0x118   : > { %v669_v22 = vpop.f32.mrf.mxu0 }
 0x119   : > { %v686_v24 = vmax.f32 %v669_v22, 0.0  ;;  %v708_v25 = vpack.c.bf16 %v688_v21, %v687_v20 }
 0x11b   : > { %v707_v27 = vpack.c.bf16 %v686_v24, %v685_v23  ;;  %2233 = vmatprep.subr.bf16.mxu1 %v708_v25  ;;  %v748_v23 = vpop.permute.xlu0 %747 }
 0x11c   : > { %2234 = vmatpush3.bf16.msra.mxu1 %v708_v25 }
 0x11d   : > { %2235 = vmatprep.subr.bf16.mxu1 %v707_v27 }
 0x120   : > { %2236 = vmatpush3.bf16.msra.mxu1 %v707_v27 }
 0x121   : > { %2237 = vmatprep.subr.bf16.mxu1 %v706_v29 }
 0x124   : > { %2238 = vmatpush3.bf16.msra.mxu1 %v706_v29  ;;  %v743_v29 = vpop.permute.xlu1 %742 }
 0x125   : > { %2239 = vmatprep.subr.bf16.mxu1 %v705_v32 }
 0x128   : > { %2240 = vmatpush3.bf16.msra.mxu1 %v705_v32  ;;  %v738_v32 = vpop.permute.xlu0 %737 }
 0x12b   : > { %2242 = vmatmul.mubr.msk.bf16.vlgmr.msra.gmra.mxu1 %vm845_vm2, %v2401_v33 }
 0x12c   : > { %2245 = vmatprep.mubr.msk.bf16.mxu1 %vm845_vm2, %v2402_v34 }
 0x133   : > { %2246 = vmatmul.mubr.msk.bf16.gmra.mxu1 %vm845_vm2, %v2403_v35 }
 0x134   : > { %2249 = vmatprep.mubr.msk.bf16.mxu1 %vm845_vm2, %v2404_v36 }
 0x13b   : > { %2250 = vmatmul.mubr.msk.bf16.gmra.mxu1 %vm845_vm2, %v2405_v37 }
 0x13c   : > { %2253 = vmatprep.mubr.msk.bf16.mxu1 %vm845_vm2, %v2406_v38  ;;  %v733_v38 = vpop.permute.xlu1 %732 }
 0x143   : > { %2254 = vmatmul.mubr.msk.bf16.gmra.mxu1 %vm845_vm2, %v2407_v39 }
 0x1eb   : > { %v2843_v41 = vpop.f32.mrf.mxu1 }
 0x1ec   : > { %v913_v36 = vadd.f32 %v2843_v41, %v738_v32  ;;  %v2409_v41 = vld [vmem:[%s3124_s5 + $0x8] sm:$0xff]  }
 0x1ed   : > { %v2845_v42 = vpop.f32.mrf.mxu1 }
 0x1ef   : > { %v2244_v43 = vpop.f32.mrf.mxu1 }
 0x1f0   : > { %v916_v33 = vadd.f32 %v2244_v43, %v743_v29 }
 0x1f1   : > { %v2847_v44 = vpop.f32.mrf.mxu1 }
 0x1f2   : > { %v970_v39 = vmax.f32 %v916_v33, 0.0  ;;  %v908_v40 = vadd.f32 %v2847_v44, %v733_v38  ;;  %v2410_v44 = vld [vmem:[%s3124_s5 + $0x10] sm:$0xff]  }
 0x1f3   : > { %v2247_v46 = vpop.f32.mrf.mxu1 }
 0x1f4   : > { %v929_v24 = vadd.f32 %v2247_v46, %v758_v13  ;;  %v728_v46 = vpop.permute.xlu0 %727  ;;  %v968_v43 = vmax.f32 %v908_v40, 0.0 }
 0x1f5   : > { %v920_v48 = vpop.f32.mrf.mxu1 }
 0x1f6   : > { %v973_v30 = vmax.f32 %v929_v24, 0.0  ;;  %v921_v31 = vadd.f32 %v920_v48, %v748_v23  ;;  %v905_v48 = vadd.f32 %v2845_v42, %v728_v46  ;;  %v2411_v42 = vld [vmem:[%s3124_s5 + $0x18] sm:$0xff]  }
 0x1f7   : > { %v2248_v49 = vpop.f32.mrf.mxu1 }
 0x1f8   : > { %v932_v20 = vadd.f32 %v2248_v49, %v763_v8  ;;  %v971_v37 = vmax.f32 %v921_v31, 0.0 }
 0x1f9   : > { %v923_v51 = vpop.f32.mrf.mxu1 }
 0x1fa   : > { %v974_v26 = vmax.f32 %v932_v20, 0.0  ;;  %v924_v27 = vadd.f32 %v923_v51, %v753_v19  ;;  %v2426_v19 = vld [vmem:[%s3126_s7 + $0x4] ss:$8 sps:$4 sm:$0xff]  }
 0x1fb   : > { %v2251_v53 = vpop.f32.mrf.mxu1  ;;  %1648 = vmatprep.mubr.bf16.mxu1 %v2426_v19 }
 0x1fc   : > { %v945_v9 = vadd.f32 %v2251_v53, %v778_v57  ;;  %v1018_v34 = vpack.c.bf16 %v974_v26, %v973_v30  ;;  %v972_v35 = vmax.f32 %v924_v27, 0.0  ;;  %v2413_v53 = vld [vmem:[%s3124_s5 + $0x28] sm:$0xff]  }
 0x1fd   : > { %v936_v54 = vpop.f32.mrf.mxu1  ;;  %v2417_v57 = vld [vmem:[%s3124_s5 + $0x48] sm:$0xff]  }
 0x1fe   : > { %v977_v17 = vmax.f32 %v945_v9, 0.0  ;;  %v937_v18 = vadd.f32 %v936_v54, %v768_v63  ;;  %v2414_v54 = vld [vmem:[%s3124_s5 + $0x30] sm:$0xff]   ;;  %v2423_v63 = vld [vmem:[%s3124_s5 + $0x78] sm:$0xff]  }
 0x1ff   : > { %v2252_v56 = vpop.f32.mrf.mxu1 }
 0x200   : > { %v948_v4 = vadd.f32 %v2252_v56, %v783_v55  ;;  %v975_v25 = vmax.f32 %v937_v18, 0.0  ;;  %v2415_v55 = vld [vmem:[%s3124_s5 + $0x38] sm:$0xff]   ;;  %v2416_v56 = vld [vmem:[%s3124_s5 + $0x40] sm:$0xff]  }
 0x201   : > { %v939_v58 = vpop.f32.mrf.mxu1 }
 0x202   : > { %v978_v14 = vmax.f32 %v948_v4, 0.0  ;;  %v940_v15 = vadd.f32 %v939_v58, %v773_v60  ;;  %v2418_v58 = vld [vmem:[%s3124_s5 + $0x50] sm:$0xff]   ;;  %v2420_v60 = vld [vmem:[%s3124_s5 + $0x60] sm:$0xff]  }
 0x203   : > { %v2255_v59 = vpop.f32.mrf.mxu1 }
 0x204   : > { %v961_v62 = vadd.f32 %v2255_v59, %v798_v47  ;;  %v1020_v21 = vpack.c.bf16 %v978_v14, %v977_v17  ;;  %v976_v22 = vmax.f32 %v940_v15, 0.0  ;;  %v969_v47 = vmax.f32 %v913_v36, 0.0  ;;  %v2419_v59 = vld [vmem:[%s3124_s5 + $0x58] sm:$0xff]  }
 0x205   : > { %v952_v61 = vpop.f32.mrf.mxu1 }
 0x206   : > { %v953_v1 = vadd.f32 %v952_v61, %v788_v45  ;;  %v981_v5 = vmax.f32 %v961_v62, 0.0  ;;  %v1019_v28 = vpack.c.bf16 %v976_v22, %v975_v25  ;;  %v1017_v45 = vpack.c.bf16 %v972_v35, %v971_v37  ;;  %v2421_v61 = vld [vmem:[%s3124_s5 + $0x68] sm:$0xff]   ;;  %v2422_v62 = vld [vmem:[%s3124_s5 + $0x70] sm:$0xff]  }
 0x207   : > { %v2256_v0 = vpop.f32.mrf.mxu1  ;;  %v1016_v49 = vpack.c.bf16 %v970_v39, %v969_v47 }
 0x208   : > { %v964_v2 = vadd.f32 %v2256_v0, %v803_v52  ;;  %v979_v10 = vmax.f32 %v953_v1, 0.0  ;;  %v2412_v52 = vld [vmem:[%s3124_s5 + $0x20] sm:$0xff]   ;;  %v2897_v0 = vpop.permute.xlu0 %1207  ;;  %v2899_v1 = vpop.permute.xlu1 %1212 }
 0x209   : > { %v955_v3 = vpop.f32.mrf.mxu1 }
 0x20a   : > { %v982_v6 = vmax.f32 %v964_v2, 0.0  ;;  %v956_v7 = vadd.f32 %v955_v3, %v793_v50  ;;  %v967_v50 = vmax.f32 %v905_v48, 0.0 }
 0x20c   : > { %v1022_v11 = vpack.c.bf16 %v982_v6, %v981_v5  ;;  %v980_v12 = vmax.f32 %v956_v7, 0.0  ;;  %v1015_v51 = vpack.c.bf16 %v968_v43, %v967_v50  ;;  %v2901_v2 = vpop.permute.xlu0 %1127  ;;  %v2903_v3 = vpop.permute.xlu1 %1132 }
 0x20e   : > { %v1021_v16 = vpack.c.bf16 %v980_v12, %v979_v10  ;;  %2257 = vmatprep.subr.bf16.mxu0 %v1022_v11 }
 0x20f   : > { %2258 = vmatpush3.bf16.msra.mxu0 %v1022_v11 }
 0x210   : > { %2259 = vmatprep.subr.bf16.mxu0 %v1021_v16  ;;  %v2905_v4 = vpop.permute.xlu0 %1197  ;;  %v2907_v5 = vpop.permute.xlu1 %1202 }
 0x213   : > { %2260 = vmatpush3.bf16.msra.mxu0 %v1021_v16 }
 0x214   : > { %2261 = vmatprep.subr.bf16.mxu0 %v1020_v21  ;;  %v2909_v6 = vpop.permute.xlu0 %1117  ;;  %v2911_v7 = vpop.permute.xlu1 %1122 }
 0x217   : > { %2262 = vmatpush3.bf16.msra.mxu0 %v1020_v21 }
 0x218   : > { %2263 = vmatprep.subr.bf16.mxu0 %v1019_v28  ;;  %v2913_v8 = vpop.permute.xlu0 %1187  ;;  %v2915_v9 = vpop.permute.xlu1 %1192 }
 0x21b   : > { %2264 = vmatpush3.bf16.msra.mxu0 %v1019_v28 }
 0x21c   : > { %2265 = vmatprep.subr.bf16.mxu0 %v1018_v34  ;;  %v2917_v10 = vpop.permute.xlu0 %1107  ;;  %v2919_v11 = vpop.permute.xlu1 %1112 }
 0x21f   : > { %2266 = vmatpush3.bf16.msra.mxu0 %v1018_v34 }
 0x220   : > { %2267 = vmatprep.subr.bf16.mxu0 %v1017_v45  ;;  %v2921_v12 = vpop.permute.xlu0 %1177  ;;  %v2923_v13 = vpop.permute.xlu1 %1182 }
 0x223   : > { %2268 = vmatpush3.bf16.msra.mxu0 %v1017_v45 }
 0x224   : > { %2269 = vmatprep.subr.bf16.mxu0 %v1016_v49  ;;  %v2925_v14 = vpop.permute.xlu0 %1097  ;;  %v2927_v15 = vpop.permute.xlu1 %1102 }
 0x227   : > { %2270 = vmatpush3.bf16.msra.mxu0 %v1016_v49 }
 0x228   : > { %2271 = vmatprep.subr.bf16.mxu0 %v1015_v51  ;;  %v2929_v16 = vpop.permute.xlu0 %1167  ;;  %v2931_v17 = vpop.permute.xlu1 %1172 }
 0x22b   : > { %2272 = vmatpush3.bf16.msra.mxu0 %v1015_v51 }
 0x22c   : > { %v1088_v18 = vpop.permute.xlu0 %1087  ;;  %v1093_v20 = vpop.permute.xlu1 %1092 }
 0x22e   : > { %2274 = vmatmul.mubr.bf16.vlgmr.msra.gmra.mxu0 %v2409_v41 }
 0x22f   : > { %2277 = vmatprep.mubr.bf16.mxu0 %v2410_v44 }
 0x230   : > { %v2936_v21 = vpop.permute.xlu0 %1157  ;;  %v2938_v22 = vpop.permute.xlu1 %1162 }
 0x234   : > { %v1078_v23 = vpop.permute.xlu0 %1077  ;;  %v1083_v24 = vpop.permute.xlu1 %1082 }
 0x236   : > { %2278 = vmatmul.mubr.bf16.gmra.mxu0 %v2411_v42 }
 0x237   : > { %2281 = vmatprep.mubr.bf16.mxu0 %v2412_v52 }
 0x238   : > { %v2940_v25 = vpop.permute.xlu0 %1147  ;;  %v2942_v26 = vpop.permute.xlu1 %1152 }
 0x23c   : > { %v1068_v27 = vpop.permute.xlu0 %1067  ;;  %v1073_v28 = vpop.permute.xlu1 %1072 }
 0x23e   : > { %2282 = vmatmul.mubr.bf16.gmra.mxu0 %v2413_v53 }
 0x23f   : > { %2285 = vmatprep.mubr.bf16.mxu0 %v2414_v54 }
 0x240   : > { %v2944_v29 = vpop.permute.xlu0 %1137  ;;  %v2946_v30 = vpop.permute.xlu1 %1142 }
 0x244   : > { %v1058_v34 = vpop.permute.xlu0 %1057  ;;  %v1063_v38 = vpop.permute.xlu1 %1062 }
 0x246   : > { %2286 = vmatmul.mubr.bf16.gmra.mxu0 %v2415_v55 }
 0x247   : > { %2289 = vmatprep.mubr.bf16.mxu0 %v2416_v56 }
 0x24e   : > { %2290 = vmatmul.mubr.bf16.gmra.mxu0 %v2417_v57 }
 0x24f   : > { %2293 = vmatprep.mubr.bf16.mxu0 %v2418_v58 }
 0x256   : > { %2294 = vmatmul.mubr.bf16.gmra.mxu0 %v2419_v59 }
 0x257   : > { %2297 = vmatprep.mubr.bf16.mxu0 %v2420_v60 }
 0x25e   : > { %2298 = vmatmul.mubr.bf16.gmra.mxu0 %v2421_v61 }
 0x25f   : > { %2301 = vmatprep.mubr.bf16.mxu0 %v2422_v62 }
 0x266   : > { %2302 = vmatmul.mubr.bf16.gmra.mxu0 %v2423_v63 }
 0x2ee   : > { %v2275_v31 = vpop.f32.mrf.mxu0 }
 0x2ef   : > { %v1354_v33 = vadd.f32 %v2275_v31, %v1068_v27 }
 0x2f0   : > { %v1345_v32 = vpop.f32.mrf.mxu0 }
 0x2f1   : > { %v1346_v36 = vadd.f32 %v1345_v32, %v1058_v34  ;;  %v1474_v40 = vmax.f32 %v1354_v33, 0.0 }
 0x2f2   : > { %v2276_v35 = vpop.f32.mrf.mxu0 }
 0x2f3   : > { %v1357_v37 = vadd.f32 %v2276_v35, %v1073_v28  ;;  %v1472_v48 = vmax.f32 %v1346_v36, 0.0 }
 0x2f4   : > { %v1348_v39 = vpop.f32.mrf.mxu0 }
 0x2f5   : > { %v1475_v45 = vmax.f32 %v1357_v37, 0.0  ;;  %v1349_v46 = vadd.f32 %v1348_v39, %v1063_v38 }
 0x2f6   : > { %v2279_v47 = vpop.f32.mrf.mxu0 }
 0x2f7   : > { %v2948_v49 = vpack.c.bf16 %v1475_v45, %v1474_v40  ;;  %v1473_v43 = vmax.f32 %v1349_v46, 0.0  ;;  %v1370_v41 = vadd.f32 %v2279_v47, %v1088_v18 }
 0x2f8   : > { %v1361_v50 = vpop.f32.mrf.mxu0 }
 0x2f9   : > { %v2950_v51 = vpack.c.bf16 %v1473_v43, %v1472_v48  ;;  %v1362_v42 = vadd.f32 %v1361_v50, %v1078_v23  ;;  %v1478_v54 = vmax.f32 %v1370_v41, 0.0 }
 0x2fa   : > { %v2280_v44 = vpop.f32.mrf.mxu0 }
 0x2fb   : > { %v1373_v52 = vadd.f32 %v2280_v44, %v1093_v20  ;;  %v1476_v58 = vmax.f32 %v1362_v42, 0.0 }
 0x2fc   : > { %v1364_v53 = vpop.f32.mrf.mxu0 }
 0x2fd   : > { %v1479_v55 = vmax.f32 %v1373_v52, 0.0  ;;  %v1365_v56 = vadd.f32 %v1364_v53, %v1083_v24 }
 0x2fe   : > { %v2283_v57 = vpop.f32.mrf.mxu0 }
 0x2ff   : > { %v2952_v59 = vpack.c.bf16 %v1479_v55, %v1478_v54  ;;  %v1477_v60 = vmax.f32 %v1365_v56, 0.0 }
 0x300   : > { %v1377_v61 = vpop.f32.mrf.mxu0 }
 0x301   : > { %v2954_v62 = vpack.c.bf16 %v1477_v60, %v1476_v58 }
 0x302   : > { %v2284_v63 = vpop.f32.mrf.mxu0 }
 0x304   : > { %v1380_v19 = vpop.f32.mrf.mxu0 }
 0x306   : > { %v2287_v27 = vpop.f32.mrf.mxu0 }
 0x307   : > { %v1402_v43 = vadd.f32 %v2287_v27, %v2901_v2 }
 0x308   : > { %v1393_v28 = vpop.f32.mrf.mxu0 }
 0x309   : > { %v1486_v58 = vmax.f32 %v1402_v43, 0.0 }
 0x30a   : > { %v2288_v18 = vpop.f32.mrf.mxu0 }
 0x30b   : > { %v1405_v46 = vadd.f32 %v2288_v18, %v2903_v3 }
 0x30c   : > { %v1396_v31 = vpop.f32.mrf.mxu0 }
 0x30d   : > { %v1487_v42 = vmax.f32 %v1405_v46, 0.0  ;;  %v1397_v52 = vadd.f32 %v1396_v31, %v2911_v7 }
 0x30e   : > { %v2956_v23 = vpop.f32.mrf.mxu0 }
 0x30f   : > { %v1519_v18 = vpack.c.bf16 %v1487_v42, %v1486_v58  ;;  %v1539_v58 = vpop.permute.xlu0 %1538 }
 0x310   : > { %v2958_v20 = vpop.f32.mrf.mxu0 }
 0x312   : > { %v2960_v32 = vpop.f32.mrf.mxu0 }
 0x314   : > { %v2962_v24 = vpop.f32.mrf.mxu0 }
 0x316   : > { %v2295_v33 = vpop.f32.mrf.mxu0 }
 0x318   : > { %v1425_v34 = vpop.f32.mrf.mxu0 }
 0x31a   : > { %v2296_v35 = vpop.f32.mrf.mxu0 }
 0x31c   : > { %v1428_v36 = vpop.f32.mrf.mxu0 }
 0x31e   : > { %v2299_v37 = vpop.f32.mrf.mxu0 }
 0x31f   : > { %v1450_v2 = vadd.f32 %v2299_v37, %v2913_v8 }
 0x320   : > { %v1441_v38 = vpop.f32.mrf.mxu0 }
 0x321   : > { %v1498_v46 = vmax.f32 %v1450_v2, 0.0 }
 0x322   : > { %v2300_v39 = vpop.f32.mrf.mxu0 }
 0x323   : > { %v1453_v54 = vadd.f32 %v2300_v39, %v2915_v9  ;;  %v1386_v39 = vadd.f32 %v2283_v57, %v2917_v10  ;;  %v1434_v10 = vadd.f32 %v2295_v33, %v2929_v16  ;;  %v1418_v33 = vadd.f32 %v2956_v23, %v2940_v25  ;;  %v2435_v23 = vld [vmem:[%s3126_s7 + $0x30] ss:$8 sps:$4 sm:$0xff]  }
 0x324   : > { %v1444_v40 = vpop.f32.mrf.mxu0 }
 0x325   : > { %v1499_v7 = vmax.f32 %v1453_v54, 0.0  ;;  %v1445_v31 = vadd.f32 %v1444_v40, %v2923_v13  ;;  %v1378_v13 = vadd.f32 %v1377_v61, %v2925_v14  ;;  %v1421_v14 = vadd.f32 %v2960_v32, %v2942_v26 }
 0x326   : > { %v2303_v45 = vpop.f32.mrf.mxu0 }
 0x327   : > { %v1466_v48 = vadd.f32 %v2303_v45, %v2897_v0  ;;  %v1394_v0 = vadd.f32 %v1393_v28, %v2909_v6  ;;  %v1485_v45 = vmax.f32 %v1397_v52, 0.0  ;;  %v1442_v6 = vadd.f32 %v1441_v38, %v2921_v12  ;;  %v2438_v52 = vld [vmem:[%s3128_s9 + $0x8] sm:$0xff]  }
 0x328   : > { %v1457_v47 = vpop.f32.mrf.mxu0  ;;  %v1381_v28 = vadd.f32 %v1380_v19, %v2927_v15  ;;  %v1429_v38 = vadd.f32 %v1428_v36, %v2938_v22  ;;  %v1480_v15 = vmax.f32 %v1378_v13, 0.0  ;;  %v1494_v19 = vmax.f32 %v1434_v10, 0.0 }
 0x329   : > { %v1458_v41 = vadd.f32 %v1457_v47, %v2905_v4  ;;  %v1502_v55 = vmax.f32 %v1466_v48, 0.0  ;;  %v1497_v47 = vmax.f32 %v1445_v31, 0.0  ;;  %v1482_v48 = vmax.f32 %v1386_v39, 0.0 }
 0x32a   : > { %v2304_v50 = vpop.f32.mrf.mxu0  ;;  %v1496_v57 = vmax.f32 %v1442_v6, 0.0  ;;  %v1481_v43 = vmax.f32 %v1381_v28, 0.0  ;;  %v1493_v16 = vmax.f32 %v1429_v38, 0.0  ;;  %v1491_v22 = vmax.f32 %v1421_v14, 0.0 }
 0x32b   : > { %v1469_v44 = vadd.f32 %v2304_v50, %v2899_v1  ;;  %v1500_v60 = vmax.f32 %v1458_v41, 0.0  ;;  %v1389_v1 = vadd.f32 %v2284_v63, %v2919_v11  ;;  %v1437_v11 = vadd.f32 %v2296_v35, %v2931_v17 }
 0x32c   : > { %v1460_v53 = vpop.f32.mrf.mxu0  ;;  %v1525_v63 = vpack.c.bf16 %v1499_v7, %v1498_v46  ;;  %v1524_v50 = vpack.c.bf16 %v1497_v47, %v1496_v57  ;;  %v1426_v17 = vadd.f32 %v1425_v34, %v2936_v21  ;;  %v1516_v35 = vpack.c.bf16 %v1481_v43, %v1480_v15 }
 0x32d   : > { %v1503_v56 = vmax.f32 %v1469_v44, 0.0  ;;  %v1461_v3 = vadd.f32 %v1460_v53, %v2907_v5  ;;  %v1484_v5 = vmax.f32 %v1394_v0, 0.0  ;;  %v1483_v8 = vmax.f32 %v1389_v1, 0.0  ;;  %v2439_v53 = vld [vmem:[%s3128_s9] sm:$0xff]  }
 0x32e   : > { %v1495_v12 = vmax.f32 %v1437_v11, 0.0  ;;  %v1492_v41 = vmax.f32 %v1426_v17, 0.0  ;;  %v1413_v36 = vadd.f32 %v2962_v24, %v2946_v30  ;;  %v1490_v21 = vmax.f32 %v1418_v33, 0.0  ;;  %v2424_v30 = vld [vmem:[%s3126_s7] ss:$8 sps:$4 sm:$0xff]   ;;  %v2437_v24 = vld [vmem:[%s3128_s9 + $0x10] sm:$0xff]  }
 0x32f   : > { %v1527_v27 = vpack.c.bf16 %v1503_v56, %v1502_v55  ;;  %v1501_v4 = vmax.f32 %v1461_v3, 0.0  ;;  %v1518_v37 = vpack.c.bf16 %v1485_v45, %v1484_v5  ;;  %v1517_v40 = vpack.c.bf16 %v1483_v8, %v1482_v48  ;;  %v1549_v5 = vpop.permute.xlu0 %1548 }
 0x330   : > { %v1523_v61 = vpack.c.bf16 %v1495_v12, %v1494_v19  ;;  %v1522_v44 = vpack.c.bf16 %v1493_v16, %v1492_v41  ;;  %v1410_v34 = vadd.f32 %v2958_v20, %v2944_v29  ;;  %v1521_v26 = vpack.c.bf16 %v1491_v22, %v1490_v21  ;;  %v2427_v29 = vld [vmem:[%s3126_s7 + $0x14] ss:$8 sps:$4 sm:$0xff]  }
 0x331   : > { %v1526_v9 = vpack.c.bf16 %v1501_v4, %v1500_v60  ;;  %2165 = vmatprep.subr.bf16.mxu1 %v1527_v27  ;;  %v1489_v32 = vmax.f32 %v1413_v36, 0.0  ;;  %v2436_v20 = vld [vmem:[%s3128_s9 + $0x18] sm:$0xff]   ;;  %v1544_v27 = vpop.permute.xlu1 %1543 }
 0x332   : > { %2166 = vmatpush3.bf16.msra.mxu1 %v1519_v18  ;;  %v1488_v42 = vmax.f32 %v1410_v34, 0.0 }
 0x333   : > { %2167 = vmatprep.subr.bf16.mxu1 %v1526_v9 }
 0x334   : > { %v1520_v25 = vpack.c.bf16 %v1489_v32, %v1488_v42 }
 0x335   : > { %v1554_v28 = vpop.permute.xlu1 %1553 }
 0x336   : > { %2168 = vmatpush3.bf16.msra.mxu1 %v1518_v37 }
 0x337   : > { %2169 = vmatprep.subr.bf16.mxu1 %v1525_v63 }
 0x33a   : > { %2170 = vmatpush3.bf16.msra.mxu1 %v1517_v40  ;;  %v1559_v40 = vpop.permute.xlu0 %1558 }
 0x33b   : > { %2171 = vmatprep.subr.bf16.mxu1 %v1524_v50  ;;  %v1564_v50 = vpop.permute.xlu1 %1563 }
 0x33e   : > { %2172 = vmatpush3.bf16.msra.mxu1 %v1516_v35  ;;  %v1569_v41 = vpop.permute.xlu0 %1568 }
 0x33f   : > { %2173 = vmatprep.subr.bf16.mxu1 %v1523_v61  ;;  %v1574_v21 = vpop.permute.xlu1 %1573 }
 0x342   : > { %2174 = vmatpush3.bf16.msra.mxu1 %v2952_v59  ;;  %v2429_v59 = vld [vmem:[%s3126_s7 + $0x10] ss:$8 sps:$4 sm:$0xff]  }
 0x343   : > { %2175 = vmatprep.subr.bf16.mxu1 %v1522_v44 }
 0x346   : > { %2176 = vmatpush3.bf16.msra.mxu1 %v2954_v62  ;;  %v2433_v62 = vld [vmem:[%s3126_s7 + $0x34] ss:$8 sps:$4 sm:$0xff]  }
 0x347   : > { %2177 = vmatprep.subr.bf16.mxu1 %v1521_v26 }
 0x34a   : > { %2178 = vmatpush3.bf16.msra.mxu1 %v2948_v49  ;;  %v2430_v49 = vld [vmem:[%s3126_s7 + $0x24] ss:$8 sps:$4 sm:$0xff]  }
 0x34b   : > { %2179 = vmatprep.subr.bf16.mxu1 %v1520_v25 }
 0x34e   : > { %2180 = vmatpush3.bf16.msra.mxu1 %v2950_v51  ;;  %v2432_v51 = vld [vmem:[%s3126_s7 + $0x20] ss:$8 sps:$4 sm:$0xff]  }
 0x34f   : > { %2305 = vmatprep.subr.bf16.mxu1 %v2436_v20 }
 0x351   : > { %1649 = vmatmul.mubr.bf16.vlgmr.msra.gmra.mxu1 %v2424_v30 }
 0x352   : > { %1656 = vmatprep.mubr.bf16.mxu1 %v2427_v29  ;;  %2306 = vmatpush3.bf16.msra.mxu1 %v2436_v20  ;;  %v3043_v20 = vld [vmem:[%s3129_s10] ss:$0 sm:$0xff] }
 0x353   : > { %2307 = vmatprep.subr.bf16.mxu1 %v2437_v24 }
 0x356   : > { %2308 = vmatpush3.bf16.msra.mxu1 %v2437_v24 }
 0x357   : > { %2309 = vmatprep.subr.bf16.mxu1 %v2438_v52 }
 0x359   : > { %1657 = vmatmul.mubr.bf16.gmra.mxu1 %v2429_v59 }
 0x35a   : > { %1664 = vmatprep.mubr.bf16.mxu1 %v2430_v49  ;;  %2310 = vmatpush3.bf16.msra.mxu1 %v2438_v52 }
 0x35b   : > { %2311 = vmatprep.subr.bf16.mxu1 %v2439_v53 }
 0x35e   : > { %2312 = vmatpush3.bf16.msra.mxu1 %v2439_v53 }
 0x361   : > { %1665 = vmatmul.mubr.bf16.gmra.mxu1 %v2432_v51 }
 0x362   : > { %1672 = vmatprep.mubr.bf16.mxu1 %v2433_v62 }
 0x369   : > { %1673 = vmatmul.mubr.bf16.gmra.mxu1 %v2435_v23 }
 0x411   : > { %v2181_v54 = vpop.f32.mrf.mxu1 }
 0x413   : > { %v2182_v55 = vpop.f32.mrf.mxu1 }
 0x414   : > { %v2183_v56 = vadd.f32 %v2182_v55, %v2181_v54 }
 0x415   : > { %v2184_v3 = vpop.f32.mrf.mxu1 }
 0x416   : > { %v1651_v2 = vadd.f32 %v2183_v56, %v1539_v58 }
 0x417   : > { %v2185_v0 = vpop.f32.mrf.mxu1 }
 0x418   : > { %v2186_v60 = vadd.f32 %v2185_v0, %v2184_v3  ;;  %v1681_v45 = vmax.f32 %v1651_v2, 0.0 }
 0x419   : > { %v2187_v4 = vpop.f32.mrf.mxu1 }
 0x41a   : > { %v1654_v1 = vadd.f32 %v2186_v60, %v1544_v27 }
 0x41b   : > { %v2188_v18 = vpop.f32.mrf.mxu1 }
 0x41c   : > { %v1682_v7 = vmax.f32 %v1654_v1, 0.0  ;;  %v2189_v31 = vadd.f32 %v2188_v18, %v2187_v4 }
 0x41d   : > { %v2190_v9 = vpop.f32.mrf.mxu1 }
 0x41e   : > { %v1689_v39 = vpack.c.bf16 %v1682_v7, %v1681_v45  ;;  %v1659_v6 = vadd.f32 %v2189_v31, %v1549_v5 }
 0x41f   : > { %v2191_v46 = vpop.f32.mrf.mxu1 }
 0x420   : > { %v2192_v8 = vadd.f32 %v2191_v46, %v2190_v9  ;;  %1708 = vxpose.xlu0.c.b16.start [1/4] (short) %v1689_v39, 128  ;;  %v1683_v47 = vmax.f32 %v1659_v6, 0.0 }
 0x421   : > { %v2193_v37 = vpop.f32.mrf.mxu1 }
 0x422   : > { %v1662_v11 = vadd.f32 %v2192_v8, %v1554_v28 }
 0x423   : > { %v2194_v63 = vpop.f32.mrf.mxu1 }
 0x424   : > { %v1684_v48 = vmax.f32 %v1662_v11, 0.0  ;;  %v2195_v13 = vadd.f32 %v2194_v63, %v2193_v37 }
 0x425   : > { %v2196_v10 = vpop.f32.mrf.mxu1 }
 0x426   : > { %v1690_v57 = vpack.c.bf16 %v1684_v48, %v1683_v47  ;;  %v1667_v12 = vadd.f32 %v2195_v13, %v1559_v40 }
 0x427   : > { %v2197_v43 = vpop.f32.mrf.mxu1 }
 0x428   : > { %v2198_v38 = vadd.f32 %v2197_v43, %v2196_v10  ;;  %1709 = vxpose.xlu0.c.b16.cont [2/4] (short) %v1690_v57, 128  ;;  %v1685_v35 = vmax.f32 %v1667_v12, 0.0 }
 0x429   : > { %v2199_v15 = vpop.f32.mrf.mxu1 }
 0x42a   : > { %v1670_v19 = vadd.f32 %v2198_v38, %v1564_v50 }
 0x42b   : > { %v2200_v17 = vpop.f32.mrf.mxu1 }
 0x42c   : > { %v1686_v14 = vmax.f32 %v1670_v19, 0.0  ;;  %v2201_v61 = vadd.f32 %v2200_v17, %v2199_v15 }
 0x42d   : > { %v2202_v16 = vpop.f32.mrf.mxu1 }
 0x42e   : > { %v1691_v33 = vpack.c.bf16 %v1686_v14, %v1685_v35  ;;  %v1675_v36 = vadd.f32 %v2201_v61, %v1569_v41 }
 0x42f   : > { %v2203_v22 = vpop.f32.mrf.mxu1 }
 0x430   : > { %v2204_v44 = vadd.f32 %v2203_v22, %v2202_v16  ;;  %1710 = vxpose.xlu0.c.b16.cont [3/4] (short) %v1691_v33, 128  ;;  %v1687_v26 = vmax.f32 %v1675_v36, 0.0 }
 0x432   : > { %v1678_v34 = vadd.f32 %v2204_v44, %v1574_v21 }
 0x434   : > { %v1688_v32 = vmax.f32 %v1678_v34, 0.0 }
 0x436   : > { %v1692_v42 = vpack.c.bf16 %v1688_v32, %v1687_v26 }
 0x438   : > { %1711 = vxpose.xlu0.c.b16.end [4/4] (short) %v1692_v42, 128 }
 0x48e   : > { %v1716_v25 = vpop.trf.xlu0 }
 0x48f   : > { %2313 = vmatprep.mubr.msk.bf16.mxu1 %vm845_vm2, %v1716_v25 }
 0x492   : > { %v1717_v30 = vpop.trf.xlu0 }
 0x493   : > { %2314 = vmatmul.mubr.msk.bf16.vlgmr.msra.gmra.mxu1 %vm845_vm2, %v1717_v30 }
 0x496   : > { %v1718_v29 = vpop.trf.xlu0 }
 0x497   : > { %2317 = vmatprep.mubr.msk.bf16.mxu1 %vm845_vm2, %v1718_v29 }
 0x49a   : > { %v1719_v59 = vpop.trf.xlu0 }
 0x49b   : > { %2318 = vmatmul.mubr.msk.bf16.gmra.mxu1 %vm845_vm2, %v1719_v59 }
 0x49e   : > { %v1720_v49 = vpop.trf.xlu0 }
 0x49f   : > { %2321 = vmatprep.mubr.msk.bf16.mxu1 %vm845_vm2, %v1720_v49 }
 0x4a2   : > { %v1721_v51 = vpop.trf.xlu0 }
 0x4a3   : > { %2322 = vmatmul.mubr.msk.bf16.gmra.mxu1 %vm845_vm2, %v1721_v51 }
 0x4a6   : > { %v1722_v62 = vpop.trf.xlu0 }
 0x4a7   : > { %2325 = vmatprep.mubr.msk.bf16.mxu1 %vm845_vm2, %v1722_v62 }
 0x4aa   : > { %v1723_v23 = vpop.trf.xlu0 }
 0x4ab   : > { %2326 = vmatmul.mubr.msk.bf16.gmra.mxu1 %vm845_vm2, %v1723_v23 }
 0x553   : > { %v2315_v24 = vpop.f32.mrf.mxu1 }
 0x554   : > { %v1815_v52 = vadd.f32 %v2315_v24, %v3043_v20 }
 0x555   : > { %v1806_v53 = vpop.f32.mrf.mxu1 }
 0x556   : > { %v1871_v54 = vmax.f32 %v1815_v52, 0.0  ;;  %v1807_v55 = vadd.f32 %v3043_v20, %v1806_v53 }
 0x557   : > { %v2316_v56 = vpop.f32.mrf.mxu1 }
 0x558   : > { %v1887_v3 = vmin.f32 %v1871_v54, 1.0  ;;  %v1869_v58 = vmax.f32 %v1807_v55, 0.0  ;;  %v1818_v0 = vadd.f32 %v2316_v56, %v3043_v20 }
 0x559   : > { %v1809_v2 = vpop.f32.mrf.mxu1 }
 0x55a   : > { %1904 = vst.msk [vmem:[%s3050_s16 + $0x10] sm:$0xff] %vm1901_vm3, %v1887_v3  ;;  %v1885_v60 = vmin.f32 %v1869_v58, 1.0  ;;  %v1872_v27 = vmax.f32 %v1818_v0, 0.0  ;;  %v1810_v4 = vadd.f32 %v3043_v20, %v1809_v2 }
 0x55b   : > { %v2319_v1 = vpop.f32.mrf.mxu1 }
 0x55c   : > { %1902 = vst.msk [vmem:[%s3050_s16] sm:$0xff] %vm1901_vm3, %v1885_v60  ;;  %v1888_v18 = vmin.f32 %v1872_v27, 1.0  ;;  %v1870_v45 = vmax.f32 %v1810_v4, 0.0  ;;  %v1831_v7 = vadd.f32 %v2319_v1, %v3043_v20 }
 0x55d   : > { %v1822_v31 = vpop.f32.mrf.mxu1 }
 0x55e   : > { %1905 = vst.msk [vmem:[%s3050_s16 + $0x18] sm:$0xff] %vm1901_vm3, %v1888_v18  ;;  %v1886_v9 = vmin.f32 %v1870_v45, 1.0  ;;  %v1875_v39 = vmax.f32 %v1831_v7, 0.0  ;;  %v1823_v5 = vadd.f32 %v3043_v20, %v1822_v31 }
 0x55f   : > { %v2320_v46 = vpop.f32.mrf.mxu1 }
 0x560   : > { %1903 = vst.msk [vmem:[%s3050_s16 + $0x8] sm:$0xff] %vm1901_vm3, %v1886_v9  ;;  %v1891_v6 = vmin.f32 %v1875_v39, 1.0  ;;  %v1873_v8 = vmax.f32 %v1823_v5, 0.0  ;;  %v1834_v28 = vadd.f32 %v2320_v46, %v3043_v20 }
 0x561   : > { %v1825_v37 = vpop.f32.mrf.mxu1 }
 0x562   : > { %1908 = vst.msk [vmem:[%s3050_s16 + $0x30] sm:$0xff] %vm1901_vm3, %v1891_v6  ;;  %v1889_v11 = vmin.f32 %v1873_v8, 1.0  ;;  %v1876_v63 = vmax.f32 %v1834_v28, 0.0  ;;  %v1826_v47 = vadd.f32 %v3043_v20, %v1825_v37 }
 0x563   : > { %v2323_v48 = vpop.f32.mrf.mxu1 }
 0x564   : > { %1906 = vst.msk [vmem:[%s3050_s16 + $0x20] sm:$0xff] %vm1901_vm3, %v1889_v11  ;;  %v1892_v13 = vmin.f32 %v1876_v63, 1.0  ;;  %v1874_v10 = vmax.f32 %v1826_v47, 0.0  ;;  %v1847_v57 = vadd.f32 %v2323_v48, %v3043_v20 }
 0x565   : > { %v1838_v40 = vpop.f32.mrf.mxu1 }
 0x566   : > { %1909 = vst.msk [vmem:[%s3050_s16 + $0x38] sm:$0xff] %vm1901_vm3, %v1892_v13  ;;  %v1890_v43 = vmin.f32 %v1874_v10, 1.0  ;;  %v1879_v12 = vmax.f32 %v1847_v57, 0.0  ;;  %v1839_v38 = vadd.f32 %v3043_v20, %v1838_v40 }
 0x567   : > { %v2324_v50 = vpop.f32.mrf.mxu1 }
 0x568   : > { %1907 = vst.msk [vmem:[%s3050_s16 + $0x28] sm:$0xff] %vm1901_vm3, %v1890_v43  ;;  %v1895_v15 = vmin.f32 %v1879_v12, 1.0  ;;  %v1877_v19 = vmax.f32 %v1839_v38, 0.0  ;;  %v1850_v17 = vadd.f32 %v2324_v50, %v3043_v20 }
 0x569   : > { %v1841_v35 = vpop.f32.mrf.mxu1 }
 0x56a   : > { %1912 = vst.msk [vmem:[%s3050_s16 + $0x50] sm:$0xff] %vm1901_vm3, %v1895_v15  ;;  %v1893_v14 = vmin.f32 %v1877_v19, 1.0  ;;  %v1880_v61 = vmax.f32 %v1850_v17, 0.0  ;;  %v1842_v16 = vadd.f32 %v3043_v20, %v1841_v35 }
 0x56b   : > { %v2327_v33 = vpop.f32.mrf.mxu1 }
 0x56c   : > { %1910 = vst.msk [vmem:[%s3050_s16 + $0x40] sm:$0xff] %vm1901_vm3, %v1893_v14  ;;  %v1896_v41 = vmin.f32 %v1880_v61, 1.0  ;;  %v1878_v22 = vmax.f32 %v1842_v16, 0.0  ;;  %v1863_v36 = vadd.f32 %v2327_v33, %v3043_v20 }
 0x56d   : > { %v1854_v44 = vpop.f32.mrf.mxu1 }
 0x56e   : > { %1913 = vst.msk [vmem:[%s3050_s16 + $0x58] sm:$0xff] %vm1901_vm3, %v1896_v41  ;;  %v1894_v21 = vmin.f32 %v1878_v22, 1.0  ;;  %v1883_v34 = vmax.f32 %v1863_v36, 0.0  ;;  %v1855_v26 = vadd.f32 %v3043_v20, %v1854_v44 }
 0x56f   : > { %v2328_v32 = vpop.f32.mrf.mxu1 }
 0x570   : > { %1911 = vst.msk [vmem:[%s3050_s16 + $0x48] sm:$0xff] %vm1901_vm3, %v1894_v21  ;;  %v1899_v42 = vmin.f32 %v1883_v34, 1.0  ;;  %v1881_v25 = vmax.f32 %v1855_v26, 0.0  ;;  %v1866_v30 = vadd.f32 %v2328_v32, %v3043_v20 }
 0x571   : > { %v1857_v29 = vpop.f32.mrf.mxu1 }
 0x572   : > { %1916 = vst.msk [vmem:[%s3050_s16 + $0x70] sm:$0xff] %vm1901_vm3, %v1899_v42  ;;  %v1897_v59 = vmin.f32 %v1881_v25, 1.0  ;;  %v1884_v49 = vmax.f32 %v1866_v30, 0.0  ;;  %v1858_v51 = vadd.f32 %v3043_v20, %v1857_v29 }
 0x574   : > { %1914 = vst.msk [vmem:[%s3050_s16 + $0x60] sm:$0xff] %vm1901_vm3, %v1897_v59  ;;  %v1900_v62 = vmin.f32 %v1884_v49, 1.0  ;;  %v1882_v23 = vmax.f32 %v1858_v51, 0.0 }
 0x576   : > { %1917 = vst.msk [vmem:[%s3050_s16 + $0x78] sm:$0xff] %vm1901_vm3, %v1900_v62  ;;  %v1898_v24 = vmin.f32 %v1882_v23, 1.0 }
 0x578   : > { %1915 = vst.msk [vmem:[%s3050_s16 + $0x68] sm:$0xff] %vm1901_vm3, %v1898_v24 }
 0x579 PF: > { %s21_s23 = sadd.s32 1, %s2494_s23   ;;  %s3139_s13 = sld [smem:[#allocation4_spill]] }
 0x57a   : > { %p18_p13 = scmp.ge.s32.totalorder %s21_s23, 6   ;;  %s3140_s26 = sld [smem:[#allocation5_spill]] }
 0x57b   : > { %s3141_s17 = smov %s2474_s18  ;;  %s3142_s18 = smov %s2608_s30 }
 0x57c   : > { %s3143_s19 = smov %s2486_s21  ;;  %s3144_s20 = smov %s2490_s22 }
 0x57d   :  { %20 = sbr.rel (!%p18_p13) target bundleno = 7 (0x7), region = 146 }
 0x57f   : > { %s3145_s21 = smov %s3139_s13 }
 0x580   : > { %s3146_s22 = smov %s3140_s26 }

</bundles_post_ra>
